<compile_context>
chip_gen: v5e
topology: v5e:2x2
jax: 0.10.0
libtpu: 0.0.40
codegen_flags: <defaults>
</compile_context>

<pallas_src>
import jax
import jax.numpy as jnp
from jax import lax
from jax.experimental import pallas as pl

# ---------------- hyper-parameters (two_d_convs=False, complex_mask=False) ----------------
STFT_WIN = 16
STFT_HOP = 8
STFT_SIZE = STFT_WIN // 2 + 1          # 9 freq bins
HIDDEN_SIZE = 32                       # only used by AttentionChannelPonder (see TODO)
ENC_CH = [STFT_SIZE, 16, 16]           # encoder conv in/out channels (n_layers=2)
DEC_CH = [16, 16, STFT_SIZE]           # decoder conv in/out channels (n_layers=2)
KSIZE = 3

BATCH = 2
MICS = 2
SIG_LEN = 128
T_FRAMES = 1 + SIG_LEN // STFT_HOP     # 17 STFT frames
PITCH = 24                             # per-stream row pitch (multiple of 8, >= T+2)
ENC_STREAMS = BATCH * MICS             # 4 (mic-major stream order: stream = mic*BATCH + m)
DEC_STREAMS = BATCH                    # 2
NROWS_ENC = ENC_STREAMS * PITCH        # 96
NROWS_DEC = DEC_STREAMS * PITCH        # 48

# weight-slab row offsets (all multiples of 8 so in-kernel ref slices stay tile-aligned)
OFF_DFWD, R_DFWD = 0, STFT_WIN                    # [16, 18] fwd rDFT (re|im fused)
OFF_EW1, R_EW1 = 16, KSIZE * ENC_CH[0]            # [27, 16]
OFF_EW2, R_EW2 = 48, KSIZE * ENC_CH[1]            # [48, 16]
OFF_DW1, R_DW1 = 96, KSIZE * DEC_CH[0]            # [48, 16]
OFF_DW2, R_DW2 = 144, KSIZE * DEC_CH[1]           # [48, 9]
OFF_MW, R_MW = 192, STFT_SIZE                     # [9, 9]  1x1 mask conv
OFF_DINV, R_DINV = 208, 2 * STFT_SIZE             # [18, 16] inv rDFT (win + 1/env folded)
WSLAB_ROWS = 232
WSLAB_COLS = 2 * STFT_SIZE                        # 18
VSLAB_COLS = 16                                   # max channel count among vectors


# ---------------- fused Pallas kernel (single invocation, whole batch) ----------------
def _enhancer_kernel(hs_ref, w_ref, v_ref, out_ref):
    f32 = jnp.float32
    F = STFT_SIZE

    # valid-row mask for one 24-row stream block (data frames live at rows 1..17)
    ridx = lax.broadcasted_iota(jnp.int32, (PITCH, 1), 0)
    bmask = jnp.logical_and(ridx >= 1, ridx <= T_FRAMES).astype(f32)          # [24, 1]

    def conv_relu_gln(x, w, gamma, beta, n_streams):
        # x: [n_streams*PITCH, Cin] padded slab (pad rows are exactly 0)
        # w: [3*Cin, Cout] im2col weight (rows ordered k*Cin + cin); gamma/beta: [1, Cout]
        n, cin = x.shape
        zr = jnp.zeros((1, cin), f32)
        left = jnp.concatenate([zr, x[:n - 1, :]], axis=0)      # row r -> x[r-1]
        right = jnp.concatenate([x[1:, :], zr], axis=0)         # row r -> x[r+1]
        xcol = jnp.concatenate([left, x, right], axis=1)        # [n, 3*Cin]
        y = jnp.maximum(jnp.dot(xcol, w, preferred_element_type=f32), 0.0)
        cout = y.shape[1]
        inv_cnt = 1.0 / (T_FRAMES * cout)
        blocks = []
        for s in range(n_streams):                              # per-stream gLN, one pass
            blk = y[s * PITCH:(s + 1) * PITCH, :] * bmask       # exclude/zero pad rows
            mean = jnp.sum(blk) * inv_cnt
            ex2 = jnp.sum(blk * blk) * inv_cnt
            var = jnp.maximum(ex2 - mean * mean, 0.0)
            blocks.append(bmask * (gamma * (blk - mean) * lax.rsqrt(var + 1e-8) + beta))
        return jnp.concatenate(blocks, axis=0)

    # ---- in-kernel framing (sublane shift + lane concat) + fused re|im rDFT ----
    h = hs_ref[...]                                                           # [96, 8]
    h_next = jnp.concatenate([h[1:, :], jnp.zeros((1, STFT_HOP), f32)], axis=0)
    frames = jnp.concatenate([h, h_next], axis=1)                             # [96, 16]
    stft = jnp.dot(frames, w_ref[OFF_DFWD:OFF_DFWD + R_DFWD, :],
                   preferred_element_type=f32)                                # [96, 18]
    validf = jnp.concatenate([bmask] * ENC_STREAMS, axis=0)                   # [96, 1]
    re = stft[:, 0:F]
    im = stft[:, F:2 * F]
    mag = jnp.sqrt(re * re + im * im) * validf                                # [96, 9]

    # ---- encoder: both mics and both samples in one matmul per layer ----
    e = conv_relu_gln(mag, w_ref[OFF_EW1:OFF_EW1 + R_EW1, 0:ENC_CH[1]],
                      v_ref[0:1, 0:ENC_CH[1]], v_ref[1:2, 0:ENC_CH[1]], ENC_STREAMS)
    e = conv_relu_gln(e, w_ref[OFF_EW2:OFF_EW2 + R_EW2, 0:ENC_CH[2]],
                      v_ref[2:3, 0:ENC_CH[2]], v_ref[3:4, 0:ENC_CH[2]], ENC_STREAMS)

    # TODO(synk): AttentionChannelPonder is not provided in the source; stand-in reduces
    # the mic axis by mean and reports zero ponder cost (returned by the wrapper).
    pond = (e[0:NROWS_DEC, :] + e[NROWS_DEC:2 * NROWS_DEC, :]) * (1.0 / MICS)  # [48, 16]

    # ---- decoder + mask net (1x1 conv + exact sigmoid) ----
    d = conv_relu_gln(pond, w_ref[OFF_DW1:OFF_DW1 + R_DW1, 0:DEC_CH[1]],
                      v_ref[4:5, 0:DEC_CH[1]], v_ref[5:6, 0:DEC_CH[1]], DEC_STREAMS)
    d = conv_relu_gln(d, w_ref[OFF_DW2:OFF_DW2 + R_DW2, 0:DEC_CH[2]],
                      v_ref[6:7, 0:DEC_CH[2]], v_ref[7:8, 0:DEC_CH[2]], DEC_STREAMS)
    z = (jnp.dot(d, w_ref[OFF_MW:OFF_MW + R_MW, 0:F], preferred_element_type=f32)
         + v_ref[8:9, 0:F])
    mask = 1.0 / (1.0 + jnp.exp(-z))                                          # [48, 9]

    # masked_mag*cos(phase) == mask*re0 and masked_mag*sin(phase) == mask*im0.
    # Mic-0 streams are rows 0..47 of the STFT slab (mic-major stream order).
    masked = jnp.concatenate([mask, mask], axis=1) * stft[0:NROWS_DEC, :]     # [48, 18]

    # ---- inverse rDFT (synthesis window + 1/sum(win^2) OLA envelope folded in) ----
    fs = jnp.dot(masked, w_ref[OFF_DINV:OFF_DINV + R_DINV, 0:STFT_WIN],
                 preferred_element_type=f32)                                  # [48, 16]

    # ---- overlap-add (hop == win/2) + lane-dense relayout to one [1,128] row/sample ----
    lane = lax.broadcasted_iota(jnp.int32, (T_FRAMES - 1, SIG_LEN), 1)
    row = lax.broadcasted_iota(jnp.int32, (T_FRAMES - 1, SIG_LEN), 0)
    sel = jnp.logical_and(lane >= row * STFT_HOP, lane < row * STFT_HOP + STFT_HOP)
    out_rows = []
    for m in range(BATCH):
        base = m * PITCH
        ym = (fs[base + 2:base + 2 + (T_FRAMES - 1), 0:STFT_HOP]
              + fs[base + 1:base + 1 + (T_FRAMES - 1), STFT_HOP:STFT_WIN])    # [16, 8]
        wide = jnp.concatenate([ym] * (SIG_LEN // STFT_HOP), axis=1)          # [16, 128]
        out_rows.append(jnp.sum(jnp.where(sel, wide, 0.0), axis=0, keepdims=True))
    out_ref[...] = jnp.concatenate(out_rows, axis=0).astype(out_ref.dtype)    # [2, 128]


# ---------------- constants: fused windowed rDFT matrices (envelope folded) ----------------
def make_consts():
    w, hop, f = STFT_WIN, STFT_HOP, STFT_SIZE
    n = jnp.arange(w, dtype=jnp.float32)
    win = 0.5 - 0.5 * jnp.cos(2.0 * jnp.pi * n / w)                # periodic Hann
    freqs = jnp.arange(f, dtype=jnp.float32)
    ang = 2.0 * jnp.pi * jnp.outer(n, freqs) / w                   # [W, F]
    scale = 1.0 / (w ** 0.5)                                       # stft normalized=True
    crw = jnp.cos(ang) * scale * win[:, None]                      # [W, F]
    ciw = -jnp.sin(ang) * scale * win[:, None]                     # [W, F]
    dfwd = jnp.concatenate([crw, ciw], axis=1)                     # [W, 2F]  (re | im)
    a = jnp.where((freqs == 0) | (freqs == w // 2), 1.0, 2.0)      # Hermitian weights
    cinv = a[:, None] * jnp.cos(ang).T * scale * win[None, :]      # [F, W]
    sinv = a[:, None] * jnp.sin(ang).T * scale * win[None, :]      # [F, W]
    # The trimmed OLA win^2 envelope is hop-periodic: env[8t+i] = win[i]^2 + win[i+8]^2
    # (>= 1 > 0), so its inverse can be folded straight into the inverse-rDFT columns.
    wn = jnp.arange(w) % hop
    inv_env = 1.0 / (win[wn] ** 2 + win[wn + hop] ** 2)            # [W]
    dinv = jnp.concatenate([cinv, -sinv], axis=0) * inv_env[None, :]   # [2F, W]
    return dfwd, dinv


# ---------------- parameter init (PyTorch-shaped, deterministic) + slab packing ----------------
def init_params(key):
    ks = jax.random.split(key, 6)

    def conv_w(k, cout, cin, ksz):
        return jax.random.normal(k, (cout, cin, ksz), jnp.float32) / jnp.sqrt(cin * ksz)

    return {
        "enc_w": [conv_w(ks[0], ENC_CH[1], ENC_CH[0], KSIZE),
                  conv_w(ks[1], ENC_CH[2], ENC_CH[1], KSIZE)],
        "enc_g": [jnp.ones((c,), jnp.float32) for c in ENC_CH[1:]],    # gLN gamma = 1
        "enc_b": [jnp.zeros((c,), jnp.float32) for c in ENC_CH[1:]],   # gLN beta  = 0
        "dec_w": [conv_w(ks[2], DEC_CH[1], DEC_CH[0], KSIZE),
                  conv_w(ks[3], DEC_CH[2], DEC_CH[1], KSIZE)],
        "dec_g": [jnp.ones((c,), jnp.float32) for c in DEC_CH[1:]],
        "dec_b": [jnp.zeros((c,), jnp.float32) for c in DEC_CH[1:]],
        "mask_w": jax.random.normal(ks[4], (STFT_SIZE, STFT_SIZE, 1), jnp.float32)
                  / jnp.sqrt(STFT_SIZE),
        "mask_b": 0.1 * jax.random.normal(ks[5], (STFT_SIZE,), jnp.float32),
    }


def pack_slabs(p):
    dfwd, dinv = make_consts()

    def im2col(wgt):            # [Cout, Cin, K] -> [K*Cin, Cout], row index = k*Cin + cin
        cout, cin, k = wgt.shape
        return jnp.transpose(wgt, (2, 1, 0)).reshape(k * cin, cout)

    def put(slab, off, mat):
        r, c = mat.shape
        return slab.at[off:off + r, 0:c].set(mat)

    wslab = jnp.zeros((WSLAB_ROWS, WSLAB_COLS), jnp.float32)
    wslab = put(wslab, OFF_DFWD, dfwd)
    wslab = put(wslab, OFF_EW1, im2col(p["enc_w"][0]))
    wslab = put(wslab, OFF_EW2, im2col(p["enc_w"][1]))
    wslab = put(wslab, OFF_DW1, im2col(p["dec_w"][0]))
    wslab = put(wslab, OFF_DW2, im2col(p["dec_w"][1]))
    wslab = put(wslab, OFF_MW, jnp.transpose(p["mask_w"][:, :, 0]))    # [Cin=F, Cout=F]
    wslab = put(wslab, OFF_DINV, dinv)

    vslab = jnp.zeros((9, VSLAB_COLS), jnp.float32)
    vecs = [p["enc_g"][0], p["enc_b"][0], p["enc_g"][1], p["enc_b"][1],
            p["dec_g"][0], p["dec_b"][0], p["dec_g"][1], p["dec_b"][1], p["mask_b"]]
    for i, v in enumerate(vecs):
        vslab = vslab.at[i, 0:v.shape[0]].set(v)
    return wslab, vslab


# ---------------- wrapper ----------------
def _prep_frames(x):
    # torch.stft(center=True) reflect pad, then hop-sized half blocks laid out at the
    # 24-row per-stream pitch the kernel expects (halves j=0..17 at rows 1..18, rest 0).
    m, mics, length = x.shape
    hop, w = STFT_HOP, STFT_WIN
    xs = jnp.transpose(x, (1, 0, 2)).reshape(mics * m, length)       # mic-major streams
    xp = jnp.pad(xs, ((0, 0), (w // 2, w // 2)), mode="reflect")     # [S, L+W]
    halves = xp.reshape(mics * m, (length + w) // hop, hop)          # [S, T+1, hop]
    n_half = halves.shape[1]
    halves = jnp.pad(halves, ((0, 0), (1, PITCH - 1 - n_half), (0, 0)))
    return halves.reshape(mics * m * PITCH, hop)                     # [S*24, hop]


def ponder_enhancer_forward(x, wslab, vslab):
    m, mics, length = x.shape
    assert (m, mics, length) == (BATCH, MICS, SIG_LEN)
    hslab = _prep_frames(x)                                          # [96, 8]

    final = pl.pallas_call(                                          # single invocation:
        _enhancer_kernel,                                            # no grid, whole-array
        out_shape=jax.ShapeDtypeStruct((m, length), jnp.float32),    # VMEM blocks, 3 DMAs
    )(hslab, wslab, vslab)

    # TODO(synk): AttentionChannelPonder is not provided in the source; the stand-in
    # mic-mean reduction runs inside the fused kernel and its ponder cost is zero.
    ponder_costs = jnp.zeros((m,), jnp.float32)
    return final, ponder_costs.mean()


# ---------------- main ----------------
if __name__ == "__main__":
    key = jax.random.PRNGKey(0)
    pkey, xkey = jax.random.split(key)
    wslab, vslab = pack_slabs(init_params(pkey))

    # x: [batch=2, mics=2, samples=128]
    x = jax.random.normal(xkey, (BATCH, MICS, SIG_LEN), jnp.float32)

    fwd = jax.jit(lambda xx: ponder_enhancer_forward(xx, wslab, vslab))
    final, cost = fwd(x)
    final = jax.block_until_ready(final)
    cost = jax.block_until_ready(cost)

    assert final.shape == (BATCH, SIG_LEN), final.shape
    assert bool(jnp.all(jnp.isfinite(final)))
    print("KERNEL_OK")
</pallas_src>

<mosaic_0001>
module attributes {stable_mosaic.version = 11 : i64} {
  func.func @_enhancer_kernel(%arg0: memref<96x8xf32, #tpu.memory_space<vmem>>, %arg1: memref<232x18xf32, #tpu.memory_space<vmem>>, %arg2: memref<9x16xf32, #tpu.memory_space<vmem>>, %arg3: memref<2x128xf32, #tpu.memory_space<vmem>>) attributes {dimension_semantics = [], scalar_prefetch = 0 : i64, scratch_operands = 0 : i64, tpu.core_type = #tpu.core_type<tc>} {
    %0 = tpu.iota {dimensions = array<i32: 0>} : vector<24x1xi32>
    %c1_i32 = arith.constant 1 : i32
    %1 = vector.broadcast %c1_i32 : i32 to vector<24x1xi32>
    %2 = arith.cmpi sge, %0, %1 : vector<24x1xi32>
    %c17_i32 = arith.constant 17 : i32
    %3 = vector.broadcast %c17_i32 : i32 to vector<24x1xi32>
    %4 = arith.cmpi sle, %0, %3 : vector<24x1xi32>
    %5 = arith.andi %2, %4 : vector<24x1xi1>
    %6 = arith.extui %5 : vector<24x1xi1> to vector<24x1xi32>
    %7 = arith.sitofp %6 : vector<24x1xi32> to vector<24x1xf32>
    %c0 = arith.constant 0 : index
    %c0_0 = arith.constant 0 : index
    %8 = vector.load %arg0[%c0, %c0_0] : memref<96x8xf32, #tpu.memory_space<vmem>>, vector<96x8xf32>
    %9 = vector.extract_strided_slice %8 {offsets = [1, 0], sizes = [95, 8], strides = [1, 1]} : vector<96x8xf32> to vector<95x8xf32>
    %cst = arith.constant 0.000000e+00 : f32
    %10 = vector.broadcast %cst : f32 to vector<1x8xf32>
    %11 = tpu.concatenate %9, %10 in 0 : vector<95x8xf32>, vector<1x8xf32> -> vector<96x8xf32>
    %12 = tpu.concatenate %8, %11 in 1 : vector<96x8xf32>, vector<96x8xf32> -> vector<96x16xf32>
    %c0_1 = arith.constant 0 : index
    %c0_2 = arith.constant 0 : index
    %13 = vector.load %arg1[%c0_1, %c0_2] : memref<232x18xf32, #tpu.memory_space<vmem>>, vector<16x18xf32>
    %cst_3 = arith.constant dense<0.000000e+00> : vector<96x18xf32>
    %14 = tpu.matmul %12, %13, %cst_3 {dimension_numbers = #tpu.dot_dimension_numbers<[1], [0], [0], [1], [0, 0, 1, 1], [], []>} : vector<96x16xf32>, vector<16x18xf32>, vector<96x18xf32> -> vector<96x18xf32>
    %15 = tpu.concatenate %7, %7, %7, %7 in 0 : vector<24x1xf32>, vector<24x1xf32>, vector<24x1xf32>, vector<24x1xf32> -> vector<96x1xf32>
    %16 = vector.extract_strided_slice %14 {offsets = [0, 0], sizes = [96, 9], strides = [1, 1]} : vector<96x18xf32> to vector<96x9xf32>
    %17 = vector.extract_strided_slice %14 {offsets = [0, 9], sizes = [96, 9], strides = [1, 1]} : vector<96x18xf32> to vector<96x9xf32>
    %18 = arith.mulf %16, %16 : vector<96x9xf32>
    %19 = arith.mulf %17, %17 : vector<96x9xf32>
    %20 = arith.addf %18, %19 : vector<96x9xf32>
    %21 = math.sqrt %20 : vector<96x9xf32>
    %22 = vector.broadcast %15 : vector<96x1xf32> to vector<96x9xf32>
    %23 = arith.mulf %21, %22 : vector<96x9xf32>
    %c16 = arith.constant 16 : index
    %c0_4 = arith.constant 0 : index
    %24 = vector.load %arg1[%c16, %c0_4] : memref<232x18xf32, #tpu.memory_space<vmem>>, vector<27x16xf32>
    %c0_5 = arith.constant 0 : index
    %c0_6 = arith.constant 0 : index
    %25 = vector.load %arg2[%c0_5, %c0_6] : memref<9x16xf32, #tpu.memory_space<vmem>>, vector<1x16xf32>
    %c1 = arith.constant 1 : index
    %c0_7 = arith.constant 0 : index
    %26 = vector.load %arg2[%c1, %c0_7] : memref<9x16xf32, #tpu.memory_space<vmem>>, vector<1x16xf32>
    %cst_8 = arith.constant 0.000000e+00 : f32
    %27 = vector.broadcast %cst_8 : f32 to vector<1x9xf32>
    %28 = vector.extract_strided_slice %23 {offsets = [0, 0], sizes = [95, 9], strides = [1, 1]} : vector<96x9xf32> to vector<95x9xf32>
    %29 = tpu.concatenate %27, %28 in 0 : vector<1x9xf32>, vector<95x9xf32> -> vector<96x9xf32>
    %30 = vector.extract_strided_slice %23 {offsets = [1, 0], sizes = [95, 9], strides = [1, 1]} : vector<96x9xf32> to vector<95x9xf32>
    %31 = tpu.concatenate %30, %27 in 0 : vector<95x9xf32>, vector<1x9xf32> -> vector<96x9xf32>
    %32 = tpu.concatenate %29, %23, %31 in 1 : vector<96x9xf32>, vector<96x9xf32>, vector<96x9xf32> -> vector<96x27xf32>
    %cst_9 = arith.constant dense<0.000000e+00> : vector<96x16xf32>
    %33 = tpu.matmul %32, %24, %cst_9 {dimension_numbers = #tpu.dot_dimension_numbers<[1], [0], [0], [1], [0, 0, 1, 1], [], []>} : vector<96x27xf32>, vector<27x16xf32>, vector<96x16xf32> -> vector<96x16xf32>
    %cst_10 = arith.constant 0.000000e+00 : f32
    %34 = vector.broadcast %cst_10 : f32 to vector<96x16xf32>
    %35 = arith.maximumf %33, %34 : vector<96x16xf32>
    %36 = vector.extract_strided_slice %35 {offsets = [0, 0], sizes = [24, 16], strides = [1, 1]} : vector<96x16xf32> to vector<24x16xf32>
    %37 = vector.broadcast %7 : vector<24x1xf32> to vector<24x16xf32>
    %38 = arith.mulf %36, %37 : vector<24x16xf32>
    %39 = vector.shape_cast %38 : vector<24x16xf32> to vector<1x24x16xf32>
    %cst_11 = arith.constant dense<0.000000e+00> : vector<1xf32>
    %40 = vector.multi_reduction <add>, %39, %cst_11 [1, 2] : vector<1x24x16xf32> to vector<1xf32>
    %41 = vector.shape_cast %40 : vector<1xf32> to vector<1x1x1xf32>
    %42 = vector.extract %41[0, 0, 0] : f32 from vector<1x1x1xf32>
    %cst_12 = arith.constant 0.0036764706 : f32
    %43 = arith.mulf %42, %cst_12 : f32
    %44 = arith.mulf %38, %38 : vector<24x16xf32>
    %45 = vector.shape_cast %44 : vector<24x16xf32> to vector<1x24x16xf32>
    %cst_13 = arith.constant dense<0.000000e+00> : vector<1xf32>
    %46 = vector.multi_reduction <add>, %45, %cst_13 [1, 2] : vector<1x24x16xf32> to vector<1xf32>
    %47 = vector.shape_cast %46 : vector<1xf32> to vector<1x1x1xf32>
    %48 = vector.extract %47[0, 0, 0] : f32 from vector<1x1x1xf32>
    %cst_14 = arith.constant 0.0036764706 : f32
    %49 = arith.mulf %48, %cst_14 : f32
    %50 = arith.mulf %43, %43 : f32
    %51 = arith.subf %49, %50 : f32
    %cst_15 = arith.constant 0.000000e+00 : f32
    %52 = arith.maximumf %51, %cst_15 : f32
    %53 = vector.broadcast %43 : f32 to vector<24x16xf32>
    %54 = arith.subf %38, %53 : vector<24x16xf32>
    %55 = vector.broadcast %25 : vector<1x16xf32> to vector<24x16xf32>
    %56 = arith.mulf %55, %54 : vector<24x16xf32>
    %cst_16 = arith.constant 9.99999993E-9 : f32
    %57 = arith.addf %52, %cst_16 : f32
    %58 = math.rsqrt %57 : f32
    %59 = vector.broadcast %58 : f32 to vector<24x16xf32>
    %60 = arith.mulf %56, %59 : vector<24x16xf32>
    %61 = vector.broadcast %26 : vector<1x16xf32> to vector<24x16xf32>
    %62 = arith.addf %60, %61 : vector<24x16xf32>
    %63 = vector.broadcast %7 : vector<24x1xf32> to vector<24x16xf32>
    %64 = arith.mulf %63, %62 : vector<24x16xf32>
    %65 = vector.extract_strided_slice %35 {offsets = [24, 0], sizes = [24, 16], strides = [1, 1]} : vector<96x16xf32> to vector<24x16xf32>
    %66 = vector.broadcast %7 : vector<24x1xf32> to vector<24x16xf32>
    %67 = arith.mulf %65, %66 : vector<24x16xf32>
    %68 = vector.shape_cast %67 : vector<24x16xf32> to vector<1x24x16xf32>
    %cst_17 = arith.constant dense<0.000000e+00> : vector<1xf32>
    %69 = vector.multi_reduction <add>, %68, %cst_17 [1, 2] : vector<1x24x16xf32> to vector<1xf32>
    %70 = vector.shape_cast %69 : vector<1xf32> to vector<1x1x1xf32>
    %71 = vector.extract %70[0, 0, 0] : f32 from vector<1x1x1xf32>
    %cst_18 = arith.constant 0.0036764706 : f32
    %72 = arith.mulf %71, %cst_18 : f32
    %73 = arith.mulf %67, %67 : vector<24x16xf32>
    %74 = vector.shape_cast %73 : vector<24x16xf32> to vector<1x24x16xf32>
    %cst_19 = arith.constant dense<0.000000e+00> : vector<1xf32>
    %75 = vector.multi_reduction <add>, %74, %cst_19 [1, 2] : vector<1x24x16xf32> to vector<1xf32>
    %76 = vector.shape_cast %75 : vector<1xf32> to vector<1x1x1xf32>
    %77 = vector.extract %76[0, 0, 0] : f32 from vector<1x1x1xf32>
    %cst_20 = arith.constant 0.0036764706 : f32
    %78 = arith.mulf %77, %cst_20 : f32
    %79 = arith.mulf %72, %72 : f32
    %80 = arith.subf %78, %79 : f32
    %cst_21 = arith.constant 0.000000e+00 : f32
    %81 = arith.maximumf %80, %cst_21 : f32
    %82 = vector.broadcast %72 : f32 to vector<24x16xf32>
    %83 = arith.subf %67, %82 : vector<24x16xf32>
    %84 = vector.broadcast %25 : vector<1x16xf32> to vector<24x16xf32>
    %85 = arith.mulf %84, %83 : vector<24x16xf32>
    %cst_22 = arith.constant 9.99999993E-9 : f32
    %86 = arith.addf %81, %cst_22 : f32
    %87 = math.rsqrt %86 : f32
    %88 = vector.broadcast %87 : f32 to vector<24x16xf32>
    %89 = arith.mulf %85, %88 : vector<24x16xf32>
    %90 = vector.broadcast %26 : vector<1x16xf32> to vector<24x16xf32>
    %91 = arith.addf %89, %90 : vector<24x16xf32>
    %92 = vector.broadcast %7 : vector<24x1xf32> to vector<24x16xf32>
    %93 = arith.mulf %92, %91 : vector<24x16xf32>
    %94 = vector.extract_strided_slice %35 {offsets = [48, 0], sizes = [24, 16], strides = [1, 1]} : vector<96x16xf32> to vector<24x16xf32>
    %95 = vector.broadcast %7 : vector<24x1xf32> to vector<24x16xf32>
    %96 = arith.mulf %94, %95 : vector<24x16xf32>
    %97 = vector.shape_cast %96 : vector<24x16xf32> to vector<1x24x16xf32>
    %cst_23 = arith.constant dense<0.000000e+00> : vector<1xf32>
    %98 = vector.multi_reduction <add>, %97, %cst_23 [1, 2] : vector<1x24x16xf32> to vector<1xf32>
    %99 = vector.shape_cast %98 : vector<1xf32> to vector<1x1x1xf32>
    %100 = vector.extract %99[0, 0, 0] : f32 from vector<1x1x1xf32>
    %cst_24 = arith.constant 0.0036764706 : f32
    %101 = arith.mulf %100, %cst_24 : f32
    %102 = arith.mulf %96, %96 : vector<24x16xf32>
    %103 = vector.shape_cast %102 : vector<24x16xf32> to vector<1x24x16xf32>
    %cst_25 = arith.constant dense<0.000000e+00> : vector<1xf32>
    %104 = vector.multi_reduction <add>, %103, %cst_25 [1, 2] : vector<1x24x16xf32> to vector<1xf32>
    %105 = vector.shape_cast %104 : vector<1xf32> to vector<1x1x1xf32>
    %106 = vector.extract %105[0, 0, 0] : f32 from vector<1x1x1xf32>
    %cst_26 = arith.constant 0.0036764706 : f32
    %107 = arith.mulf %106, %cst_26 : f32
    %108 = arith.mulf %101, %101 : f32
    %109 = arith.subf %107, %108 : f32
    %cst_27 = arith.constant 0.000000e+00 : f32
    %110 = arith.maximumf %109, %cst_27 : f32
    %111 = vector.broadcast %101 : f32 to vector<24x16xf32>
    %112 = arith.subf %96, %111 : vector<24x16xf32>
    %113 = vector.broadcast %25 : vector<1x16xf32> to vector<24x16xf32>
    %114 = arith.mulf %113, %112 : vector<24x16xf32>
    %cst_28 = arith.constant 9.99999993E-9 : f32
    %115 = arith.addf %110, %cst_28 : f32
    %116 = math.rsqrt %115 : f32
    %117 = vector.broadcast %116 : f32 to vector<24x16xf32>
    %118 = arith.mulf %114, %117 : vector<24x16xf32>
    %119 = vector.broadcast %26 : vector<1x16xf32> to vector<24x16xf32>
    %120 = arith.addf %118, %119 : vector<24x16xf32>
    %121 = vector.broadcast %7 : vector<24x1xf32> to vector<24x16xf32>
    %122 = arith.mulf %121, %120 : vector<24x16xf32>
    %123 = vector.extract_strided_slice %35 {offsets = [72, 0], sizes = [24, 16], strides = [1, 1]} : vector<96x16xf32> to vector<24x16xf32>
    %124 = vector.broadcast %7 : vector<24x1xf32> to vector<24x16xf32>
    %125 = arith.mulf %123, %124 : vector<24x16xf32>
    %126 = vector.shape_cast %125 : vector<24x16xf32> to vector<1x24x16xf32>
    %cst_29 = arith.constant dense<0.000000e+00> : vector<1xf32>
    %127 = vector.multi_reduction <add>, %126, %cst_29 [1, 2] : vector<1x24x16xf32> to vector<1xf32>
    %128 = vector.shape_cast %127 : vector<1xf32> to vector<1x1x1xf32>
    %129 = vector.extract %128[0, 0, 0] : f32 from vector<1x1x1xf32>
    %cst_30 = arith.constant 0.0036764706 : f32
    %130 = arith.mulf %129, %cst_30 : f32
    %131 = arith.mulf %125, %125 : vector<24x16xf32>
    %132 = vector.shape_cast %131 : vector<24x16xf32> to vector<1x24x16xf32>
    %cst_31 = arith.constant dense<0.000000e+00> : vector<1xf32>
    %133 = vector.multi_reduction <add>, %132, %cst_31 [1, 2] : vector<1x24x16xf32> to vector<1xf32>
    %134 = vector.shape_cast %133 : vector<1xf32> to vector<1x1x1xf32>
    %135 = vector.extract %134[0, 0, 0] : f32 from vector<1x1x1xf32>
    %cst_32 = arith.constant 0.0036764706 : f32
    %136 = arith.mulf %135, %cst_32 : f32
    %137 = arith.mulf %130, %130 : f32
    %138 = arith.subf %136, %137 : f32
    %cst_33 = arith.constant 0.000000e+00 : f32
    %139 = arith.maximumf %138, %cst_33 : f32
    %140 = vector.broadcast %130 : f32 to vector<24x16xf32>
    %141 = arith.subf %125, %140 : vector<24x16xf32>
    %142 = vector.broadcast %25 : vector<1x16xf32> to vector<24x16xf32>
    %143 = arith.mulf %142, %141 : vector<24x16xf32>
    %cst_34 = arith.constant 9.99999993E-9 : f32
    %144 = arith.addf %139, %cst_34 : f32
    %145 = math.rsqrt %144 : f32
    %146 = vector.broadcast %145 : f32 to vector<24x16xf32>
    %147 = arith.mulf %143, %146 : vector<24x16xf32>
    %148 = vector.broadcast %26 : vector<1x16xf32> to vector<24x16xf32>
    %149 = arith.addf %147, %148 : vector<24x16xf32>
    %150 = vector.broadcast %7 : vector<24x1xf32> to vector<24x16xf32>
    %151 = arith.mulf %150, %149 : vector<24x16xf32>
    %152 = tpu.concatenate %64, %93, %122, %151 in 0 : vector<24x16xf32>, vector<24x16xf32>, vector<24x16xf32>, vector<24x16xf32> -> vector<96x16xf32>
    %c48 = arith.constant 48 : index
    %c0_35 = arith.constant 0 : index
    %153 = vector.load %arg1[%c48, %c0_35] : memref<232x18xf32, #tpu.memory_space<vmem>>, vector<48x16xf32>
    %c2 = arith.constant 2 : index
    %c0_36 = arith.constant 0 : index
    %154 = vector.load %arg2[%c2, %c0_36] : memref<9x16xf32, #tpu.memory_space<vmem>>, vector<1x16xf32>
    %c3 = arith.constant 3 : index
    %c0_37 = arith.constant 0 : index
    %155 = vector.load %arg2[%c3, %c0_37] : memref<9x16xf32, #tpu.memory_space<vmem>>, vector<1x16xf32>
    %cst_38 = arith.constant 0.000000e+00 : f32
    %156 = vector.broadcast %cst_38 : f32 to vector<1x16xf32>
    %157 = vector.extract_strided_slice %152 {offsets = [0, 0], sizes = [95, 16], strides = [1, 1]} : vector<96x16xf32> to vector<95x16xf32>
    %158 = tpu.concatenate %156, %157 in 0 : vector<1x16xf32>, vector<95x16xf32> -> vector<96x16xf32>
    %159 = vector.extract_strided_slice %152 {offsets = [1, 0], sizes = [95, 16], strides = [1, 1]} : vector<96x16xf32> to vector<95x16xf32>
    %160 = tpu.concatenate %159, %156 in 0 : vector<95x16xf32>, vector<1x16xf32> -> vector<96x16xf32>
    %161 = tpu.concatenate %158, %152, %160 in 1 : vector<96x16xf32>, vector<96x16xf32>, vector<96x16xf32> -> vector<96x48xf32>
    %cst_39 = arith.constant dense<0.000000e+00> : vector<96x16xf32>
    %162 = tpu.matmul %161, %153, %cst_39 {dimension_numbers = #tpu.dot_dimension_numbers<[1], [0], [0], [1], [0, 0, 1, 1], [], []>} : vector<96x48xf32>, vector<48x16xf32>, vector<96x16xf32> -> vector<96x16xf32>
    %cst_40 = arith.constant 0.000000e+00 : f32
    %163 = vector.broadcast %cst_40 : f32 to vector<96x16xf32>
    %164 = arith.maximumf %162, %163 : vector<96x16xf32>
    %165 = vector.extract_strided_slice %164 {offsets = [0, 0], sizes = [24, 16], strides = [1, 1]} : vector<96x16xf32> to vector<24x16xf32>
    %166 = vector.broadcast %7 : vector<24x1xf32> to vector<24x16xf32>
    %167 = arith.mulf %165, %166 : vector<24x16xf32>
    %168 = vector.shape_cast %167 : vector<24x16xf32> to vector<1x24x16xf32>
    %cst_41 = arith.constant dense<0.000000e+00> : vector<1xf32>
    %169 = vector.multi_reduction <add>, %168, %cst_41 [1, 2] : vector<1x24x16xf32> to vector<1xf32>
    %170 = vector.shape_cast %169 : vector<1xf32> to vector<1x1x1xf32>
    %171 = vector.extract %170[0, 0, 0] : f32 from vector<1x1x1xf32>
    %cst_42 = arith.constant 0.0036764706 : f32
    %172 = arith.mulf %171, %cst_42 : f32
    %173 = arith.mulf %167, %167 : vector<24x16xf32>
    %174 = vector.shape_cast %173 : vector<24x16xf32> to vector<1x24x16xf32>
    %cst_43 = arith.constant dense<0.000000e+00> : vector<1xf32>
    %175 = vector.multi_reduction <add>, %174, %cst_43 [1, 2] : vector<1x24x16xf32> to vector<1xf32>
    %176 = vector.shape_cast %175 : vector<1xf32> to vector<1x1x1xf32>
    %177 = vector.extract %176[0, 0, 0] : f32 from vector<1x1x1xf32>
    %cst_44 = arith.constant 0.0036764706 : f32
    %178 = arith.mulf %177, %cst_44 : f32
    %179 = arith.mulf %172, %172 : f32
    %180 = arith.subf %178, %179 : f32
    %cst_45 = arith.constant 0.000000e+00 : f32
    %181 = arith.maximumf %180, %cst_45 : f32
    %182 = vector.broadcast %172 : f32 to vector<24x16xf32>
    %183 = arith.subf %167, %182 : vector<24x16xf32>
    %184 = vector.broadcast %154 : vector<1x16xf32> to vector<24x16xf32>
    %185 = arith.mulf %184, %183 : vector<24x16xf32>
    %cst_46 = arith.constant 9.99999993E-9 : f32
    %186 = arith.addf %181, %cst_46 : f32
    %187 = math.rsqrt %186 : f32
    %188 = vector.broadcast %187 : f32 to vector<24x16xf32>
    %189 = arith.mulf %185, %188 : vector<24x16xf32>
    %190 = vector.broadcast %155 : vector<1x16xf32> to vector<24x16xf32>
    %191 = arith.addf %189, %190 : vector<24x16xf32>
    %192 = vector.broadcast %7 : vector<24x1xf32> to vector<24x16xf32>
    %193 = arith.mulf %192, %191 : vector<24x16xf32>
    %194 = vector.extract_strided_slice %164 {offsets = [24, 0], sizes = [24, 16], strides = [1, 1]} : vector<96x16xf32> to vector<24x16xf32>
    %195 = vector.broadcast %7 : vector<24x1xf32> to vector<24x16xf32>
    %196 = arith.mulf %194, %195 : vector<24x16xf32>
    %197 = vector.shape_cast %196 : vector<24x16xf32> to vector<1x24x16xf32>
    %cst_47 = arith.constant dense<0.000000e+00> : vector<1xf32>
    %198 = vector.multi_reduction <add>, %197, %cst_47 [1, 2] : vector<1x24x16xf32> to vector<1xf32>
    %199 = vector.shape_cast %198 : vector<1xf32> to vector<1x1x1xf32>
    %200 = vector.extract %199[0, 0, 0] : f32 from vector<1x1x1xf32>
    %cst_48 = arith.constant 0.0036764706 : f32
    %201 = arith.mulf %200, %cst_48 : f32
    %202 = arith.mulf %196, %196 : vector<24x16xf32>
    %203 = vector.shape_cast %202 : vector<24x16xf32> to vector<1x24x16xf32>
    %cst_49 = arith.constant dense<0.000000e+00> : vector<1xf32>
    %204 = vector.multi_reduction <add>, %203, %cst_49 [1, 2] : vector<1x24x16xf32> to vector<1xf32>
    %205 = vector.shape_cast %204 : vector<1xf32> to vector<1x1x1xf32>
    %206 = vector.extract %205[0, 0, 0] : f32 from vector<1x1x1xf32>
    %cst_50 = arith.constant 0.0036764706 : f32
    %207 = arith.mulf %206, %cst_50 : f32
    %208 = arith.mulf %201, %201 : f32
    %209 = arith.subf %207, %208 : f32
    %cst_51 = arith.constant 0.000000e+00 : f32
    %210 = arith.maximumf %209, %cst_51 : f32
    %211 = vector.broadcast %201 : f32 to vector<24x16xf32>
    %212 = arith.subf %196, %211 : vector<24x16xf32>
    %213 = vector.broadcast %154 : vector<1x16xf32> to vector<24x16xf32>
    %214 = arith.mulf %213, %212 : vector<24x16xf32>
    %cst_52 = arith.constant 9.99999993E-9 : f32
    %215 = arith.addf %210, %cst_52 : f32
    %216 = math.rsqrt %215 : f32
    %217 = vector.broadcast %216 : f32 to vector<24x16xf32>
    %218 = arith.mulf %214, %217 : vector<24x16xf32>
    %219 = vector.broadcast %155 : vector<1x16xf32> to vector<24x16xf32>
    %220 = arith.addf %218, %219 : vector<24x16xf32>
    %221 = vector.broadcast %7 : vector<24x1xf32> to vector<24x16xf32>
    %222 = arith.mulf %221, %220 : vector<24x16xf32>
    %223 = vector.extract_strided_slice %164 {offsets = [48, 0], sizes = [24, 16], strides = [1, 1]} : vector<96x16xf32> to vector<24x16xf32>
    %224 = vector.broadcast %7 : vector<24x1xf32> to vector<24x16xf32>
    %225 = arith.mulf %223, %224 : vector<24x16xf32>
    %226 = vector.shape_cast %225 : vector<24x16xf32> to vector<1x24x16xf32>
    %cst_53 = arith.constant dense<0.000000e+00> : vector<1xf32>
    %227 = vector.multi_reduction <add>, %226, %cst_53 [1, 2] : vector<1x24x16xf32> to vector<1xf32>
    %228 = vector.shape_cast %227 : vector<1xf32> to vector<1x1x1xf32>
    %229 = vector.extract %228[0, 0, 0] : f32 from vector<1x1x1xf32>
    %cst_54 = arith.constant 0.0036764706 : f32
    %230 = arith.mulf %229, %cst_54 : f32
    %231 = arith.mulf %225, %225 : vector<24x16xf32>
    %232 = vector.shape_cast %231 : vector<24x16xf32> to vector<1x24x16xf32>
    %cst_55 = arith.constant dense<0.000000e+00> : vector<1xf32>
    %233 = vector.multi_reduction <add>, %232, %cst_55 [1, 2] : vector<1x24x16xf32> to vector<1xf32>
    %234 = vector.shape_cast %233 : vector<1xf32> to vector<1x1x1xf32>
    %235 = vector.extract %234[0, 0, 0] : f32 from vector<1x1x1xf32>
    %cst_56 = arith.constant 0.0036764706 : f32
    %236 = arith.mulf %235, %cst_56 : f32
    %237 = arith.mulf %230, %230 : f32
    %238 = arith.subf %236, %237 : f32
    %cst_57 = arith.constant 0.000000e+00 : f32
    %239 = arith.maximumf %238, %cst_57 : f32
    %240 = vector.broadcast %230 : f32 to vector<24x16xf32>
    %241 = arith.subf %225, %240 : vector<24x16xf32>
    %242 = vector.broadcast %154 : vector<1x16xf32> to vector<24x16xf32>
    %243 = arith.mulf %242, %241 : vector<24x16xf32>
    %cst_58 = arith.constant 9.99999993E-9 : f32
    %244 = arith.addf %239, %cst_58 : f32
    %245 = math.rsqrt %244 : f32
    %246 = vector.broadcast %245 : f32 to vector<24x16xf32>
    %247 = arith.mulf %243, %246 : vector<24x16xf32>
    %248 = vector.broadcast %155 : vector<1x16xf32> to vector<24x16xf32>
    %249 = arith.addf %247, %248 : vector<24x16xf32>
    %250 = vector.broadcast %7 : vector<24x1xf32> to vector<24x16xf32>
    %251 = arith.mulf %250, %249 : vector<24x16xf32>
    %252 = vector.extract_strided_slice %164 {offsets = [72, 0], sizes = [24, 16], strides = [1, 1]} : vector<96x16xf32> to vector<24x16xf32>
    %253 = vector.broadcast %7 : vector<24x1xf32> to vector<24x16xf32>
    %254 = arith.mulf %252, %253 : vector<24x16xf32>
    %255 = vector.shape_cast %254 : vector<24x16xf32> to vector<1x24x16xf32>
    %cst_59 = arith.constant dense<0.000000e+00> : vector<1xf32>
    %256 = vector.multi_reduction <add>, %255, %cst_59 [1, 2] : vector<1x24x16xf32> to vector<1xf32>
    %257 = vector.shape_cast %256 : vector<1xf32> to vector<1x1x1xf32>
    %258 = vector.extract %257[0, 0, 0] : f32 from vector<1x1x1xf32>
    %cst_60 = arith.constant 0.0036764706 : f32
    %259 = arith.mulf %258, %cst_60 : f32
    %260 = arith.mulf %254, %254 : vector<24x16xf32>
    %261 = vector.shape_cast %260 : vector<24x16xf32> to vector<1x24x16xf32>
    %cst_61 = arith.constant dense<0.000000e+00> : vector<1xf32>
    %262 = vector.multi_reduction <add>, %261, %cst_61 [1, 2] : vector<1x24x16xf32> to vector<1xf32>
    %263 = vector.shape_cast %262 : vector<1xf32> to vector<1x1x1xf32>
    %264 = vector.extract %263[0, 0, 0] : f32 from vector<1x1x1xf32>
    %cst_62 = arith.constant 0.0036764706 : f32
    %265 = arith.mulf %264, %cst_62 : f32
    %266 = arith.mulf %259, %259 : f32
    %267 = arith.subf %265, %266 : f32
    %cst_63 = arith.constant 0.000000e+00 : f32
    %268 = arith.maximumf %267, %cst_63 : f32
    %269 = vector.broadcast %259 : f32 to vector<24x16xf32>
    %270 = arith.subf %254, %269 : vector<24x16xf32>
    %271 = vector.broadcast %154 : vector<1x16xf32> to vector<24x16xf32>
    %272 = arith.mulf %271, %270 : vector<24x16xf32>
    %cst_64 = arith.constant 9.99999993E-9 : f32
    %273 = arith.addf %268, %cst_64 : f32
    %274 = math.rsqrt %273 : f32
    %275 = vector.broadcast %274 : f32 to vector<24x16xf32>
    %276 = arith.mulf %272, %275 : vector<24x16xf32>
    %277 = vector.broadcast %155 : vector<1x16xf32> to vector<24x16xf32>
    %278 = arith.addf %276, %277 : vector<24x16xf32>
    %279 = vector.broadcast %7 : vector<24x1xf32> to vector<24x16xf32>
    %280 = arith.mulf %279, %278 : vector<24x16xf32>
    %281 = tpu.concatenate %193, %222, %251, %280 in 0 : vector<24x16xf32>, vector<24x16xf32>, vector<24x16xf32>, vector<24x16xf32> -> vector<96x16xf32>
    %282 = vector.extract_strided_slice %281 {offsets = [0, 0], sizes = [48, 16], strides = [1, 1]} : vector<96x16xf32> to vector<48x16xf32>
    %283 = vector.extract_strided_slice %281 {offsets = [48, 0], sizes = [48, 16], strides = [1, 1]} : vector<96x16xf32> to vector<48x16xf32>
    %284 = arith.addf %282, %283 : vector<48x16xf32>
    %cst_65 = arith.constant 5.000000e-01 : f32
    %285 = vector.broadcast %cst_65 : f32 to vector<48x16xf32>
    %286 = arith.mulf %284, %285 : vector<48x16xf32>
    %c96 = arith.constant 96 : index
    %c0_66 = arith.constant 0 : index
    %287 = vector.load %arg1[%c96, %c0_66] : memref<232x18xf32, #tpu.memory_space<vmem>>, vector<48x16xf32>
    %c4 = arith.constant 4 : index
    %c0_67 = arith.constant 0 : index
    %288 = vector.load %arg2[%c4, %c0_67] : memref<9x16xf32, #tpu.memory_space<vmem>>, vector<1x16xf32>
    %c5 = arith.constant 5 : index
    %c0_68 = arith.constant 0 : index
    %289 = vector.load %arg2[%c5, %c0_68] : memref<9x16xf32, #tpu.memory_space<vmem>>, vector<1x16xf32>
    %cst_69 = arith.constant 0.000000e+00 : f32
    %290 = vector.broadcast %cst_69 : f32 to vector<1x16xf32>
    %291 = vector.extract_strided_slice %286 {offsets = [0, 0], sizes = [47, 16], strides = [1, 1]} : vector<48x16xf32> to vector<47x16xf32>
    %292 = tpu.concatenate %290, %291 in 0 : vector<1x16xf32>, vector<47x16xf32> -> vector<48x16xf32>
    %293 = vector.extract_strided_slice %286 {offsets = [1, 0], sizes = [47, 16], strides = [1, 1]} : vector<48x16xf32> to vector<47x16xf32>
    %294 = tpu.concatenate %293, %290 in 0 : vector<47x16xf32>, vector<1x16xf32> -> vector<48x16xf32>
    %295 = tpu.concatenate %292, %286, %294 in 1 : vector<48x16xf32>, vector<48x16xf32>, vector<48x16xf32> -> vector<48x48xf32>
    %cst_70 = arith.constant dense<0.000000e+00> : vector<48x16xf32>
    %296 = tpu.matmul %295, %287, %cst_70 {dimension_numbers = #tpu.dot_dimension_numbers<[1], [0], [0], [1], [0, 0, 1, 1], [], []>} : vector<48x48xf32>, vector<48x16xf32>, vector<48x16xf32> -> vector<48x16xf32>
    %cst_71 = arith.constant 0.000000e+00 : f32
    %297 = vector.broadcast %cst_71 : f32 to vector<48x16xf32>
    %298 = arith.maximumf %296, %297 : vector<48x16xf32>
    %299 = vector.extract_strided_slice %298 {offsets = [0, 0], sizes = [24, 16], strides = [1, 1]} : vector<48x16xf32> to vector<24x16xf32>
    %300 = vector.broadcast %7 : vector<24x1xf32> to vector<24x16xf32>
    %301 = arith.mulf %299, %300 : vector<24x16xf32>
    %302 = vector.shape_cast %301 : vector<24x16xf32> to vector<1x24x16xf32>
    %cst_72 = arith.constant dense<0.000000e+00> : vector<1xf32>
    %303 = vector.multi_reduction <add>, %302, %cst_72 [1, 2] : vector<1x24x16xf32> to vector<1xf32>
    %304 = vector.shape_cast %303 : vector<1xf32> to vector<1x1x1xf32>
    %305 = vector.extract %304[0, 0, 0] : f32 from vector<1x1x1xf32>
    %cst_73 = arith.constant 0.0036764706 : f32
    %306 = arith.mulf %305, %cst_73 : f32
    %307 = arith.mulf %301, %301 : vector<24x16xf32>
    %308 = vector.shape_cast %307 : vector<24x16xf32> to vector<1x24x16xf32>
    %cst_74 = arith.constant dense<0.000000e+00> : vector<1xf32>
    %309 = vector.multi_reduction <add>, %308, %cst_74 [1, 2] : vector<1x24x16xf32> to vector<1xf32>
    %310 = vector.shape_cast %309 : vector<1xf32> to vector<1x1x1xf32>
    %311 = vector.extract %310[0, 0, 0] : f32 from vector<1x1x1xf32>
    %cst_75 = arith.constant 0.0036764706 : f32
    %312 = arith.mulf %311, %cst_75 : f32
    %313 = arith.mulf %306, %306 : f32
    %314 = arith.subf %312, %313 : f32
    %cst_76 = arith.constant 0.000000e+00 : f32
    %315 = arith.maximumf %314, %cst_76 : f32
    %316 = vector.broadcast %306 : f32 to vector<24x16xf32>
    %317 = arith.subf %301, %316 : vector<24x16xf32>
    %318 = vector.broadcast %288 : vector<1x16xf32> to vector<24x16xf32>
    %319 = arith.mulf %318, %317 : vector<24x16xf32>
    %cst_77 = arith.constant 9.99999993E-9 : f32
    %320 = arith.addf %315, %cst_77 : f32
    %321 = math.rsqrt %320 : f32
    %322 = vector.broadcast %321 : f32 to vector<24x16xf32>
    %323 = arith.mulf %319, %322 : vector<24x16xf32>
    %324 = vector.broadcast %289 : vector<1x16xf32> to vector<24x16xf32>
    %325 = arith.addf %323, %324 : vector<24x16xf32>
    %326 = vector.broadcast %7 : vector<24x1xf32> to vector<24x16xf32>
    %327 = arith.mulf %326, %325 : vector<24x16xf32>
    %328 = vector.extract_strided_slice %298 {offsets = [24, 0], sizes = [24, 16], strides = [1, 1]} : vector<48x16xf32> to vector<24x16xf32>
    %329 = vector.broadcast %7 : vector<24x1xf32> to vector<24x16xf32>
    %330 = arith.mulf %328, %329 : vector<24x16xf32>
    %331 = vector.shape_cast %330 : vector<24x16xf32> to vector<1x24x16xf32>
    %cst_78 = arith.constant dense<0.000000e+00> : vector<1xf32>
    %332 = vector.multi_reduction <add>, %331, %cst_78 [1, 2] : vector<1x24x16xf32> to vector<1xf32>
    %333 = vector.shape_cast %332 : vector<1xf32> to vector<1x1x1xf32>
    %334 = vector.extract %333[0, 0, 0] : f32 from vector<1x1x1xf32>
    %cst_79 = arith.constant 0.0036764706 : f32
    %335 = arith.mulf %334, %cst_79 : f32
    %336 = arith.mulf %330, %330 : vector<24x16xf32>
    %337 = vector.shape_cast %336 : vector<24x16xf32> to vector<1x24x16xf32>
    %cst_80 = arith.constant dense<0.000000e+00> : vector<1xf32>
    %338 = vector.multi_reduction <add>, %337, %cst_80 [1, 2] : vector<1x24x16xf32> to vector<1xf32>
    %339 = vector.shape_cast %338 : vector<1xf32> to vector<1x1x1xf32>
    %340 = vector.extract %339[0, 0, 0] : f32 from vector<1x1x1xf32>
    %cst_81 = arith.constant 0.0036764706 : f32
    %341 = arith.mulf %340, %cst_81 : f32
    %342 = arith.mulf %335, %335 : f32
    %343 = arith.subf %341, %342 : f32
    %cst_82 = arith.constant 0.000000e+00 : f32
    %344 = arith.maximumf %343, %cst_82 : f32
    %345 = vector.broadcast %335 : f32 to vector<24x16xf32>
    %346 = arith.subf %330, %345 : vector<24x16xf32>
    %347 = vector.broadcast %288 : vector<1x16xf32> to vector<24x16xf32>
    %348 = arith.mulf %347, %346 : vector<24x16xf32>
    %cst_83 = arith.constant 9.99999993E-9 : f32
    %349 = arith.addf %344, %cst_83 : f32
    %350 = math.rsqrt %349 : f32
    %351 = vector.broadcast %350 : f32 to vector<24x16xf32>
    %352 = arith.mulf %348, %351 : vector<24x16xf32>
    %353 = vector.broadcast %289 : vector<1x16xf32> to vector<24x16xf32>
    %354 = arith.addf %352, %353 : vector<24x16xf32>
    %355 = vector.broadcast %7 : vector<24x1xf32> to vector<24x16xf32>
    %356 = arith.mulf %355, %354 : vector<24x16xf32>
    %357 = tpu.concatenate %327, %356 in 0 : vector<24x16xf32>, vector<24x16xf32> -> vector<48x16xf32>
    %c144 = arith.constant 144 : index
    %c0_84 = arith.constant 0 : index
    %358 = vector.load %arg1[%c144, %c0_84] : memref<232x18xf32, #tpu.memory_space<vmem>>, vector<48x9xf32>
    %c6 = arith.constant 6 : index
    %c0_85 = arith.constant 0 : index
    %359 = vector.load %arg2[%c6, %c0_85] : memref<9x16xf32, #tpu.memory_space<vmem>>, vector<1x9xf32>
    %c7 = arith.constant 7 : index
    %c0_86 = arith.constant 0 : index
    %360 = vector.load %arg2[%c7, %c0_86] : memref<9x16xf32, #tpu.memory_space<vmem>>, vector<1x9xf32>
    %cst_87 = arith.constant 0.000000e+00 : f32
    %361 = vector.broadcast %cst_87 : f32 to vector<1x16xf32>
    %362 = vector.extract_strided_slice %357 {offsets = [0, 0], sizes = [47, 16], strides = [1, 1]} : vector<48x16xf32> to vector<47x16xf32>
    %363 = tpu.concatenate %361, %362 in 0 : vector<1x16xf32>, vector<47x16xf32> -> vector<48x16xf32>
    %364 = vector.extract_strided_slice %357 {offsets = [1, 0], sizes = [47, 16], strides = [1, 1]} : vector<48x16xf32> to vector<47x16xf32>
    %365 = tpu.concatenate %364, %361 in 0 : vector<47x16xf32>, vector<1x16xf32> -> vector<48x16xf32>
    %366 = tpu.concatenate %363, %357, %365 in 1 : vector<48x16xf32>, vector<48x16xf32>, vector<48x16xf32> -> vector<48x48xf32>
    %cst_88 = arith.constant dense<0.000000e+00> : vector<48x9xf32>
    %367 = tpu.matmul %366, %358, %cst_88 {dimension_numbers = #tpu.dot_dimension_numbers<[1], [0], [0], [1], [0, 0, 1, 1], [], []>} : vector<48x48xf32>, vector<48x9xf32>, vector<48x9xf32> -> vector<48x9xf32>
    %cst_89 = arith.constant 0.000000e+00 : f32
    %368 = vector.broadcast %cst_89 : f32 to vector<48x9xf32>
    %369 = arith.maximumf %367, %368 : vector<48x9xf32>
    %370 = vector.extract_strided_slice %369 {offsets = [0, 0], sizes = [24, 9], strides = [1, 1]} : vector<48x9xf32> to vector<24x9xf32>
    %371 = vector.broadcast %7 : vector<24x1xf32> to vector<24x9xf32>
    %372 = arith.mulf %370, %371 : vector<24x9xf32>
    %373 = vector.shape_cast %372 : vector<24x9xf32> to vector<1x24x9xf32>
    %cst_90 = arith.constant dense<0.000000e+00> : vector<1xf32>
    %374 = vector.multi_reduction <add>, %373, %cst_90 [1, 2] : vector<1x24x9xf32> to vector<1xf32>
    %375 = vector.shape_cast %374 : vector<1xf32> to vector<1x1x1xf32>
    %376 = vector.extract %375[0, 0, 0] : f32 from vector<1x1x1xf32>
    %cst_91 = arith.constant 0.00653594779 : f32
    %377 = arith.mulf %376, %cst_91 : f32
    %378 = arith.mulf %372, %372 : vector<24x9xf32>
    %379 = vector.shape_cast %378 : vector<24x9xf32> to vector<1x24x9xf32>
    %cst_92 = arith.constant dense<0.000000e+00> : vector<1xf32>
    %380 = vector.multi_reduction <add>, %379, %cst_92 [1, 2] : vector<1x24x9xf32> to vector<1xf32>
    %381 = vector.shape_cast %380 : vector<1xf32> to vector<1x1x1xf32>
    %382 = vector.extract %381[0, 0, 0] : f32 from vector<1x1x1xf32>
    %cst_93 = arith.constant 0.00653594779 : f32
    %383 = arith.mulf %382, %cst_93 : f32
    %384 = arith.mulf %377, %377 : f32
    %385 = arith.subf %383, %384 : f32
    %cst_94 = arith.constant 0.000000e+00 : f32
    %386 = arith.maximumf %385, %cst_94 : f32
    %387 = vector.broadcast %377 : f32 to vector<24x9xf32>
    %388 = arith.subf %372, %387 : vector<24x9xf32>
    %389 = vector.broadcast %359 : vector<1x9xf32> to vector<24x9xf32>
    %390 = arith.mulf %389, %388 : vector<24x9xf32>
    %cst_95 = arith.constant 9.99999993E-9 : f32
    %391 = arith.addf %386, %cst_95 : f32
    %392 = math.rsqrt %391 : f32
    %393 = vector.broadcast %392 : f32 to vector<24x9xf32>
    %394 = arith.mulf %390, %393 : vector<24x9xf32>
    %395 = vector.broadcast %360 : vector<1x9xf32> to vector<24x9xf32>
    %396 = arith.addf %394, %395 : vector<24x9xf32>
    %397 = vector.broadcast %7 : vector<24x1xf32> to vector<24x9xf32>
    %398 = arith.mulf %397, %396 : vector<24x9xf32>
    %399 = vector.extract_strided_slice %369 {offsets = [24, 0], sizes = [24, 9], strides = [1, 1]} : vector<48x9xf32> to vector<24x9xf32>
    %400 = vector.broadcast %7 : vector<24x1xf32> to vector<24x9xf32>
    %401 = arith.mulf %399, %400 : vector<24x9xf32>
    %402 = vector.shape_cast %401 : vector<24x9xf32> to vector<1x24x9xf32>
    %cst_96 = arith.constant dense<0.000000e+00> : vector<1xf32>
    %403 = vector.multi_reduction <add>, %402, %cst_96 [1, 2] : vector<1x24x9xf32> to vector<1xf32>
    %404 = vector.shape_cast %403 : vector<1xf32> to vector<1x1x1xf32>
    %405 = vector.extract %404[0, 0, 0] : f32 from vector<1x1x1xf32>
    %cst_97 = arith.constant 0.00653594779 : f32
    %406 = arith.mulf %405, %cst_97 : f32
    %407 = arith.mulf %401, %401 : vector<24x9xf32>
    %408 = vector.shape_cast %407 : vector<24x9xf32> to vector<1x24x9xf32>
    %cst_98 = arith.constant dense<0.000000e+00> : vector<1xf32>
    %409 = vector.multi_reduction <add>, %408, %cst_98 [1, 2] : vector<1x24x9xf32> to vector<1xf32>
    %410 = vector.shape_cast %409 : vector<1xf32> to vector<1x1x1xf32>
    %411 = vector.extract %410[0, 0, 0] : f32 from vector<1x1x1xf32>
    %cst_99 = arith.constant 0.00653594779 : f32
    %412 = arith.mulf %411, %cst_99 : f32
    %413 = arith.mulf %406, %406 : f32
    %414 = arith.subf %412, %413 : f32
    %cst_100 = arith.constant 0.000000e+00 : f32
    %415 = arith.maximumf %414, %cst_100 : f32
    %416 = vector.broadcast %406 : f32 to vector<24x9xf32>
    %417 = arith.subf %401, %416 : vector<24x9xf32>
    %418 = vector.broadcast %359 : vector<1x9xf32> to vector<24x9xf32>
    %419 = arith.mulf %418, %417 : vector<24x9xf32>
    %cst_101 = arith.constant 9.99999993E-9 : f32
    %420 = arith.addf %415, %cst_101 : f32
    %421 = math.rsqrt %420 : f32
    %422 = vector.broadcast %421 : f32 to vector<24x9xf32>
    %423 = arith.mulf %419, %422 : vector<24x9xf32>
    %424 = vector.broadcast %360 : vector<1x9xf32> to vector<24x9xf32>
    %425 = arith.addf %423, %424 : vector<24x9xf32>
    %426 = vector.broadcast %7 : vector<24x1xf32> to vector<24x9xf32>
    %427 = arith.mulf %426, %425 : vector<24x9xf32>
    %428 = tpu.concatenate %398, %427 in 0 : vector<24x9xf32>, vector<24x9xf32> -> vector<48x9xf32>
    %c192 = arith.constant 192 : index
    %c0_102 = arith.constant 0 : index
    %429 = vector.load %arg1[%c192, %c0_102] : memref<232x18xf32, #tpu.memory_space<vmem>>, vector<9x9xf32>
    %cst_103 = arith.constant dense<0.000000e+00> : vector<48x9xf32>
    %430 = tpu.matmul %428, %429, %cst_103 {dimension_numbers = #tpu.dot_dimension_numbers<[1], [0], [0], [1], [0, 0, 1, 1], [], []>} : vector<48x9xf32>, vector<9x9xf32>, vector<48x9xf32> -> vector<48x9xf32>
    %c8 = arith.constant 8 : index
    %c0_104 = arith.constant 0 : index
    %431 = vector.load %arg2[%c8, %c0_104] : memref<9x16xf32, #tpu.memory_space<vmem>>, vector<1x9xf32>
    %432 = vector.broadcast %431 : vector<1x9xf32> to vector<48x9xf32>
    %433 = arith.addf %430, %432 : vector<48x9xf32>
    %cst_105 = arith.constant 0.000000e+00 : f32
    %434 = vector.broadcast %cst_105 : f32 to vector<48x9xf32>
    %435 = arith.subf %434, %433 : vector<48x9xf32>
    %436 = math.exp %435 : vector<48x9xf32>
    %cst_106 = arith.constant 1.000000e+00 : f32
    %437 = vector.broadcast %cst_106 : f32 to vector<48x9xf32>
    %438 = arith.addf %437, %436 : vector<48x9xf32>
    %cst_107 = arith.constant 1.000000e+00 : f32
    %439 = vector.broadcast %cst_107 : f32 to vector<48x9xf32>
    %440 = arith.divf %439, %438 : vector<48x9xf32>
    %441 = tpu.concatenate %440, %440 in 1 : vector<48x9xf32>, vector<48x9xf32> -> vector<48x18xf32>
    %442 = vector.extract_strided_slice %14 {offsets = [0, 0], sizes = [48, 18], strides = [1, 1]} : vector<96x18xf32> to vector<48x18xf32>
    %443 = arith.mulf %441, %442 : vector<48x18xf32>
    %c208 = arith.constant 208 : index
    %c0_108 = arith.constant 0 : index
    %444 = vector.load %arg1[%c208, %c0_108] : memref<232x18xf32, #tpu.memory_space<vmem>>, vector<18x16xf32>
    %cst_109 = arith.constant dense<0.000000e+00> : vector<48x16xf32>
    %445 = tpu.matmul %443, %444, %cst_109 {dimension_numbers = #tpu.dot_dimension_numbers<[1], [0], [0], [1], [0, 0, 1, 1], [], []>} : vector<48x18xf32>, vector<18x16xf32>, vector<48x16xf32> -> vector<48x16xf32>
    %446 = tpu.iota {dimensions = array<i32: 1>} : vector<16x128xi32>
    %447 = tpu.iota {dimensions = array<i32: 0>} : vector<16x128xi32>
    %c8_i32 = arith.constant 8 : i32
    %448 = vector.broadcast %c8_i32 : i32 to vector<16x128xi32>
    %449 = arith.muli %447, %448 : vector<16x128xi32>
    %450 = arith.cmpi sge, %446, %449 : vector<16x128xi32>
    %c8_i32_110 = arith.constant 8 : i32
    %451 = vector.broadcast %c8_i32_110 : i32 to vector<16x128xi32>
    %452 = arith.muli %447, %451 : vector<16x128xi32>
    %c8_i32_111 = arith.constant 8 : i32
    %453 = vector.broadcast %c8_i32_111 : i32 to vector<16x128xi32>
    %454 = arith.addi %452, %453 : vector<16x128xi32>
    %455 = arith.cmpi slt, %446, %454 : vector<16x128xi32>
    %456 = arith.andi %450, %455 : vector<16x128xi1>
    %457 = vector.extract_strided_slice %445 {offsets = [2, 0], sizes = [16, 8], strides = [1, 1]} : vector<48x16xf32> to vector<16x8xf32>
    %458 = vector.extract_strided_slice %445 {offsets = [1, 8], sizes = [16, 8], strides = [1, 1]} : vector<48x16xf32> to vector<16x8xf32>
    %459 = arith.addf %457, %458 : vector<16x8xf32>
    %460 = tpu.concatenate %459, %459, %459, %459, %459, %459, %459, %459, %459, %459, %459, %459, %459, %459, %459, %459 in 1 : vector<16x8xf32>, vector<16x8xf32>, vector<16x8xf32>, vector<16x8xf32>, vector<16x8xf32>, vector<16x8xf32>, vector<16x8xf32>, vector<16x8xf32>, vector<16x8xf32>, vector<16x8xf32>, vector<16x8xf32>, vector<16x8xf32>, vector<16x8xf32>, vector<16x8xf32>, vector<16x8xf32>, vector<16x8xf32> -> vector<16x128xf32>
    %cst_112 = arith.constant 0.000000e+00 : f32
    %461 = vector.broadcast %cst_112 : f32 to vector<16x128xf32>
    %462 = arith.select %456, %460, %461 : vector<16x128xi1>, vector<16x128xf32>
    %cst_113 = arith.constant dense<0.000000e+00> : vector<128xf32>
    %463 = vector.multi_reduction <add>, %462, %cst_113 [0] : vector<16x128xf32> to vector<128xf32>
    %464 = vector.shape_cast %463 : vector<128xf32> to vector<1x128xf32>
    %465 = vector.extract_strided_slice %445 {offsets = [26, 0], sizes = [16, 8], strides = [1, 1]} : vector<48x16xf32> to vector<16x8xf32>
    %466 = vector.extract_strided_slice %445 {offsets = [25, 8], sizes = [16, 8], strides = [1, 1]} : vector<48x16xf32> to vector<16x8xf32>
    %467 = arith.addf %465, %466 : vector<16x8xf32>
    %468 = tpu.concatenate %467, %467, %467, %467, %467, %467, %467, %467, %467, %467, %467, %467, %467, %467, %467, %467 in 1 : vector<16x8xf32>, vector<16x8xf32>, vector<16x8xf32>, vector<16x8xf32>, vector<16x8xf32>, vector<16x8xf32>, vector<16x8xf32>, vector<16x8xf32>, vector<16x8xf32>, vector<16x8xf32>, vector<16x8xf32>, vector<16x8xf32>, vector<16x8xf32>, vector<16x8xf32>, vector<16x8xf32>, vector<16x8xf32> -> vector<16x128xf32>
    %cst_114 = arith.constant 0.000000e+00 : f32
    %469 = vector.broadcast %cst_114 : f32 to vector<16x128xf32>
    %470 = arith.select %456, %468, %469 : vector<16x128xi1>, vector<16x128xf32>
    %cst_115 = arith.constant dense<0.000000e+00> : vector<128xf32>
    %471 = vector.multi_reduction <add>, %470, %cst_115 [0] : vector<16x128xf32> to vector<128xf32>
    %472 = vector.shape_cast %471 : vector<128xf32> to vector<1x128xf32>
    %473 = tpu.concatenate %464, %472 in 0 : vector<1x128xf32>, vector<1x128xf32> -> vector<2x128xf32>
    %c0_116 = arith.constant 0 : index
    %c0_117 = arith.constant 0 : index
    %474 = vector.load %arg3[%c0_116, %c0_117] : memref<2x128xf32, #tpu.memory_space<vmem>>, vector<2x128xf32>
    tpu.vector_store %arg3[%c0_116, %c0_117], %473 {strides = array<i32>} : memref<2x128xf32, #tpu.memory_space<vmem>>, vector<2x128xf32>,
    return
  }
}

</mosaic_0001>

<bundles_post_ra>
// kernel: _lambda_.1
= control target key start
LH: loop header
LB: loop body
LE: loop exit
PB: predicated region body
PF: predicated region fallthrough
CT: control target
= control target key end

     0   :  { %vm58_vm0 = vcmask 1046528   ;;  %s3225_s24 = smov 8   ;;  %s4888_s0 = inlined_call_operand.vmem [shape: f32[96,8], index: 0, kind: input, shape index: {}]   ;;  %s4889_s1 = inlined_call_operand.vmem [shape: f32[232,18], index: 1, kind: input, shape index: {}]   ;;  %s4890_s2 = inlined_call_operand.vmem [shape: f32[9,16], index: 2, kind: input, shape index: {}]   ;;  %s4891_s3 = inlined_call_operand.hbm [shape: f32[2,128], index: 3, kind: output, shape index: {}]  }
   0x1   :  { %v34_v0 = vld [vmem:[%s4888_s0] sm:$0xff]  ;;  %v35_v1 = vld [vmem:[%s4888_s0 + $0x8] sm:$0xff]  ;;  %v36_v2 = vld [vmem:[%s4888_s0 + $0x10] sm:$0xff] }
   0x2   :  { %v59_v3 = vrot.slane %v34_v0, 1  ;;  %v60_v4 = vrot.slane %v35_v1, 1  ;;  %v62_v5 = vrot.slane %v36_v2, 1  ;;  %v37_v6 = vld [vmem:[%s4888_s0 + $0x18] sm:$0xff]  ;;  %v135_v7 = vld [vmem:[%s4889_s1 + $0x8] sm:$0xff]  ;;  %v38_v9 = vld [vmem:[%s4888_s0 + $0x20] sm:$0xff] }
   0x3   :  { %v64_v8 = vrot.slane %v37_v6, 1  ;;  %187 = vmatpush.msra.mxu0 %v135_v7  ;;  %3010 = vmatpush.msra.mxu3 %v135_v7 }
   0x4   :  { %v61_v10 = vsel %vm58_vm0, %v59_v3, %v60_v4 }
   0x5   :  { %85 = vrot.lane.b32.xlu0 %v61_v10, %s3225_s24  ;;  %v65_v11 = vsel %vm58_vm0, %v62_v5, %v64_v8 }
   0x6   :  { %89 = vrot.lane.b32.xlu1 %v65_v11, %s3225_s24 }
   0x7   :  { %8 = vsyncpa [#allocation3], 0  ;;  %v66_v12 = vrot.slane %v38_v9, 1  ;;  %v63_v13 = vsel %vm58_vm0, %v60_v4, %v62_v5  ;;  %v134_v15 = vld [vmem:[%s4889_s1] sm:$0xff]  ;;  %v40_v16 = vld [vmem:[%s4888_s0 + $0x30] sm:$0xff]  ;;  %vm121_vm1 = vcmask 64512   ;;  %v15_v46 = vlaneseq }
   0x8   :  { %188 = vmatpush.msra.mxu0 %v134_v15  ;;  %3011 = vmatpush.msra.mxu3 %v134_v15  ;;  %v3302_v17 = vld [vmem:[%s4888_s0 + $0x38] sm:$0xff]  ;;  %v39_v18 = vld [vmem:[%s4888_s0 + $0x28] sm:$0xff]  ;;  %v70_v19 = vrot.slane %v40_v16, 1  ;;  %vm136_vm2 = vcmask 130048   ;;  %v42_v33 = vld [vmem:[%s4888_s0 + $0x40] sm:$0xff]  ;;  %v3226_v42 = vmov 0  }
   0x9   :  { %v67_v14 = vsel %vm58_vm0, %v64_v8, %v66_v12  ;;  %v72_v20 = vrot.slane %v3302_v17, 1  ;;  %v68_v21 = vrot.slane %v39_v18, 1  ;;  %v74_v34 = vrot.slane %v42_v33, 1  ;;  %v43_v39 = vld [vmem:[%s4888_s0 + $0x48] sm:$0xff]  ;;  %3117 = vset.pattern.permute.xlu0 %v3226_v42  ;;  %3111 = vset.pattern.permute.xlu2 %v3226_v42  ;;  %v3337_v43 = vld [vmem:[%s4888_s0 + $0x50] sm:$0xff]  ;;  %s3227_s12 = smov 119  }
   0xa   :  { %v76_v41 = vrot.slane %v43_v39, 1  ;;  %v78_v48 = vrot.slane %v3337_v43, 1  ;;  %v3349_v51 = vshrl.u32 %v15_v46, 7  ;;  %v3228_v54 = vmov 0.0   ;;  %v3366_v58 = vld [vmem:[%s4888_s0 + $0x58] sm:$0xff]  ;;  %s3229_s0 = smov 9  }
   0xb   :  { %v73_v22 = vsel %vm58_vm0, %v70_v19, %v72_v20  ;;  %v69_v23 = vsel %vm58_vm0, %v66_v12, %v68_v21  ;;  %v71_v26 = vsel %vm58_vm0, %v68_v21, %v70_v19  ;;  %v75_v35 = vsel %vm58_vm0, %v72_v20, %v74_v34  ;;  %s3230_s15 = smov 18   ;;  %s3231_s4 = smov 0.0  }
   0xc   :  { %93 = vrot.lane.b32.xlu2 %v69_v23, %s3225_s24  ;;  %v77_v44 = vsel %vm58_vm0, %v74_v34, %v76_v41  ;;  %v79_v52 = vsel %vm58_vm0, %v76_v41, %v78_v48  ;;  %vm19_vm3 = vcmp.ge.s32.totalorder %v3349_v51, 1  ;;  %v18_v61 = vadd.s32 16, %v3349_v51 }
   0xd   :  { %87 = vrot.lane.b32.xlu0 %v63_v13, %s3225_s24  ;;  %v3357_v55 = vsel %vm19_vm3, 1.0, %v3228_v54  ;;  %v80_v62 = vrot.slane %v3366_v58, 1  ;;  %vm4892_vm9 = vcmask 1040384   ;;  %vm685_vm14 = vcmask 1042432  }
   0xe   :  { %91 = vrot.lane.b32.xlu1 %v67_v14, %s3225_s24  ;;  %v3112_v57 = vpack.i.bf16 1.0, %v3357_v55  ;;  %vm24_vm4 = vcmp.le.s32.totalorder %v18_v61, 17  ;;  %vm622_vm15 = vcmask 72704   ;;  %vm635_vm3 = vcmask 146432  }
   0xf   :  { %v83_v63 = vsel %vm58_vm0, %v80_v62, 0.0  ;;  %v81_v3 = vsel %vm58_vm0, %v78_v48, %v80_v62 }
  0x14   :  { %95 = vrot.lane.b32.xlu2 %v71_v26, %s3225_s24 }
  0x15   :  { %97 = vrot.lane.b32.xlu0 %v73_v22, %s3225_s24 }
  0x16   :  { %99 = vrot.lane.b32.xlu1 %v75_v35, %s3225_s24 }
  0x1c   :  { %101 = vrot.lane.b32.xlu2 %v77_v44, %s3225_s24 }
  0x24   :  { %103 = vrot.lane.b32.xlu2 %v79_v52, %s3225_s24 }
  0x2c   :  { %3113 = vperm.xlu2 %3111, %v3112_v57  }
  0x34   :  { %107 = vrot.lane.b32.xlu2 %v83_v63, %s3225_s24 }
  0x66   :  { %v94_v36 = vpop.permute.xlu2 %93 }
  0x67   :  { %v126_v37 = vsel %vm121_vm1, %v38_v9, %v94_v36 }
  0x6e   :  { %v96_v38 = vpop.permute.xlu2 %95 }
  0x6f   :  { %v127_v40 = vsel %vm121_vm1, %v39_v18, %v96_v38 }
  0x77   :  { %v86_v24 = vpop.permute.xlu0 %85 }
  0x78   :  { %v122_v25 = vsel %vm121_vm1, %v34_v0, %v86_v24  ;;  %v90_v29 = vpop.permute.xlu1 %89 }
  0x79   :  { %2947 = vmatmul.msk.f32.vlgmr.msra.gmra.mxu0 %vm136_vm2, %v122_v25  ;;  %v124_v30 = vsel %vm121_vm1, %v36_v2, %v90_v29 }
  0x7f   :  { %v88_v27 = vpop.permute.xlu0 %87 }
  0x80   :  { %v123_v28 = vsel %vm121_vm1, %v35_v1, %v88_v27  ;;  %v92_v31 = vpop.permute.xlu1 %91  ;;  %v3379_v1 = vsel %vm24_vm4, 1.0, %v3228_v54  ;;  %vm648_vm4 = vcmask 220160  }
  0x81   :  { %2948 = vmatmul.msk.f32.gmra.mxu0 %vm136_vm2, %v123_v28  ;;  %v125_v32 = vsel %vm121_vm1, %v37_v6, %v92_v31  ;;  %v102_v6 = vpop.permute.xlu2 %101 }
  0x82   :  { %v130_v7 = vsel %vm121_vm1, %v42_v33, %v102_v6 }
  0x87   :  { %v98_v45 = vpop.permute.xlu0 %97 }
  0x88   :  { %v128_v50 = vsel %vm121_vm1, %v40_v16, %v98_v45  ;;  %v100_v4 = vpop.permute.xlu1 %99 }
  0x89   :  { %2949 = vmatmul.msk.f32.gmra.mxu0 %vm136_vm2, %v124_v30  ;;  %v129_v5 = vsel %vm121_vm1, %v3302_v17, %v100_v4  ;;  %v104_v8 = vpop.permute.xlu2 %103 }
  0x8a   :  { %v131_v9 = vsel %vm121_vm1, %v43_v39, %v104_v8 }
  0x91   :  { %2950 = vmatmul.msk.f32.gmra.mxu0 %vm136_vm2, %v125_v32  ;;  %v3114_v22 = vpop.permute.xlu2 %3113 }
  0x92   :  { %v3397_v25 = vunpack.i.l.bf16 %v3114_v22 }
  0x99   :  { %2951 = vmatmul.msk.f32.gmra.mxu0 %vm136_vm2, %v126_v37  ;;  %v108_v8 = vpop.permute.xlu2 %107 }
  0xa1   :  { %2952 = vmatmul.msk.f32.gmra.mxu0 %vm136_vm2, %v127_v40  ;;  %v3410_v40 = vunpack.i.h.bf16 %v3114_v22 }
  0xa9   :  { %2953 = vmatmul.msk.f32.gmra.mxu0 %vm136_vm2, %v128_v50 }
  0xb1   :  { %2954 = vmatmul.msk.f32.gmra.mxu0 %vm136_vm2, %v129_v5 }
  0xb9   :  { %2955 = vmatmul.msk.f32.gmra.mxu0 %vm136_vm2, %v130_v7 }
  0xc1   :  { %2956 = vmatmul.msk.f32.gmra.mxu0 %vm136_vm2, %v131_v9 }
  0xf6   :  { %v3341_v47 = vpop.f32.mrf.mxu0 }
  0xf7   :  { %v226_v49 = vmul.f32 %v3341_v47, %v3341_v47 }
  0xf9   :  { %250 = vrot.lane.b32.xlu0 %v226_v49, %s3227_s12 }
  0xfe   :  { %v3355_v53 = vpop.f32.mrf.mxu0 }
  0xff   :  { %v227_v56 = vmul.f32 %v3355_v53, %v3355_v53 }
 0x101   :  { %252 = vrot.lane.b32.xlu1 %v227_v56, %s3227_s12 }
 0x106   :  { %v3368_v59 = vpop.f32.mrf.mxu0 }
 0x107   :  { %v228_v60 = vmul.f32 %v3368_v59, %v3368_v59 }
 0x109   :  { %254 = vrot.lane.b32.xlu0 %v228_v60, %s3227_s12 }
 0x10e   :  { %v3377_v0 = vpop.f32.mrf.mxu0 }
 0x10f   :  { %v229_v2 = vmul.f32 %v3377_v0, %v3377_v0 }
 0x111   :  { %256 = vrot.lane.b32.xlu1 %v229_v2, %s3227_s12  ;;  %454 = vperm.xlu0 %3117, %v3379_v1  }
 0x116   :  { %v3399_v32 = vpop.f32.mrf.mxu0 }
 0x119   :  { %105 = vrot.lane.b32.xlu1 %v81_v3, %s3225_s24 }
 0x16b   :  { %v251_v10 = vpop.permute.xlu0 %250 }
 0x16c   :  { %v286_v11 = vadd.f32 %v251_v10, %v226_v49 }
 0x16e   :  { %3127 = vrsqrt.f32 %v286_v11  ;;  %vm305_vm5 = vcmp.eq.f32.partialorder %v286_v11, inf  ;;  %v308_v28 = vand.u32 2147483648, %v286_v11  ;;  %vm307_vm6 = vcmp.eq.f32.partialorder %v286_v11, 0.0 }
 0x173   :  { %v253_v12 = vpop.permute.xlu1 %252 }
 0x174   :  { %v3128_v13 = vpop.eup %3127  ;;  %v287_v14 = vadd.f32 %v253_v12, %v227_v56 }
 0x175   :  { %v299_v15 = vmul.f32 %v3128_v13, %v286_v11 }
 0x176   :  { %3129 = vrsqrt.f32 %v287_v14  ;;  %vm317_vm7 = vcmp.eq.f32.partialorder %v287_v14, inf  ;;  %v320_v44 = vand.u32 2147483648, %v287_v14  ;;  %vm319_vm8 = vcmp.eq.f32.partialorder %v287_v14, 0.0 }
 0x177   :  { %v300_v16 = vmul.f32 %v3128_v13, %v299_v15 }
 0x179   :  { %v301_v17 = vmul.f32 0.5, %v300_v16 }
 0x17b   :  { %v255_v18 = vpop.permute.xlu0 %254  ;;  %v302_v19 = vsub.f32 1.5, %v301_v17 }
 0x17c   :  { %v3130_v20 = vpop.eup %3129  ;;  %v3394_v21 = vadd.f32 %v255_v18, %v228_v60  ;;  %v3414_v60 = vpop.f32.mrf.mxu0 }
 0x17d   :  { %v303_v23 = vmul.f32 %v3128_v13, %v302_v19  ;;  %v311_v24 = vmul.f32 %v3130_v20, %v287_v14 }
 0x17e   :  { %3131 = vrsqrt.f32 %v3394_v21  ;;  %vm329_vm10 = vcmp.eq.f32.partialorder %v3394_v21, inf  ;;  %v332_v10 = vand.u32 2147483648, %v3394_v21  ;;  %vm331_vm11 = vcmp.eq.f32.partialorder %v3394_v21, 0.0 }
 0x17f   :  { %v304_v26 = vmul.f32 %v303_v23, %v286_v11  ;;  %v312_v27 = vmul.f32 %v3130_v20, %v311_v24 }
 0x181   :  { %v306_v29 = vsel %vm305_vm5, %v286_v11, %v304_v26  ;;  %v313_v30 = vmul.f32 0.5, %v312_v27 }
 0x182   :  { %v309_v31 = vsel %vm307_vm6, %v308_v28, %v306_v29 }
 0x183   :  { %v257_v33 = vpop.permute.xlu1 %256  ;;  %v3402_v34 = vmul.f32 %v3397_v25, %v309_v31  ;;  %v314_v35 = vsub.f32 1.5, %v313_v30  ;;  %v3430_v9 = vpop.permute.xlu0 %454 }
 0x184   :  { %v3132_v36 = vpop.eup %3131  ;;  %v3404_v37 = vadd.f32 %v257_v33, %v229_v2  ;;  %v208_v22 = vpop.f32.mrf.mxu0  ;;  %v231_v33 = vmul.f32 %v3414_v60, %v3414_v60 }
 0x185   :  { %549 = vrot.lane.b32.xlu1 %v3402_v34, %s3229_s0  ;;  %v315_v38 = vmul.f32 %v3130_v20, %v314_v35  ;;  %v323_v39 = vmul.f32 %v3132_v36, %v3394_v21  ;;  %v524_v57 = vrot.slane %v3402_v34, 1  ;;  %v488_v62 = vrot.slane %v3402_v34, 7 }
 0x186   :  { %3133 = vrsqrt.f32 %v3404_v37  ;;  %v230_v20 = vmul.f32 %v3399_v32, %v3399_v32  ;;  %vm341_vm12 = vcmp.eq.f32.partialorder %v3404_v37, inf  ;;  %v344_v24 = vand.u32 2147483648, %v3404_v37 }
 0x187   :  { %v316_v41 = vmul.f32 %v315_v38, %v287_v14  ;;  %v324_v42 = vmul.f32 %v3132_v36, %v323_v39  ;;  %v3452_v26 = vmul.f32 %v208_v22, %v208_v22  ;;  %vm343_vm13 = vcmp.eq.f32.partialorder %v3404_v37, 0.0  ;;  %v471_v38 = vld [vmem:[%s4889_s1 + $0x20] sm:$0xff]  ;;  %v470_v39 = vld [vmem:[%s4889_s1 + $0x18] sm:$0xff] }
 0x189   :  { %v318_v45 = vsel %vm317_vm7, %v287_v14, %v316_v41  ;;  %v325_v48 = vmul.f32 0.5, %v324_v42  ;;  %v133_v14 = vsel %vm121_vm1, %v3366_v58, %v108_v8  ;;  %v469_v41 = vld [vmem:[%s4889_s1 + $0x10] sm:$0xff] }
 0x18a   :  { %v321_v49 = vsel %vm319_vm8, %v320_v44, %v318_v45 }
 0x18b   :  { %v458_v50 = vmul.f32 %v3410_v40, %v321_v49  ;;  %v326_v52 = vsub.f32 1.5, %v325_v48  ;;  %v106_v54 = vpop.permute.xlu1 %105  ;;  %v523_v49 = vsel %vm4892_vm9, 0.0, %v488_v62 }
 0x18c   :  { %v3134_v56 = vpop.eup %3133  ;;  %v132_v61 = vsel %vm121_vm1, %v3337_v43, %v106_v54 }
 0x18d   :  { %551 = vrot.lane.b32.xlu0 %v458_v50, %s3229_s0  ;;  %v525_v63 = vrot.slane %v458_v50, 1  ;;  %v327_v2 = vmul.f32 %v3132_v36, %v326_v52  ;;  %2957 = vmatmul.msk.f32.vlgmr.msra.gmra.mxu3 %vm136_vm2, %v132_v61  ;;  %v335_v3 = vmul.f32 %v3134_v56, %v3404_v37  ;;  %v489_v4 = vrot.slane %v458_v50, 7 }
 0x18f   :  { %v526_v5 = vsel %vm58_vm0, %v524_v57, %v525_v63  ;;  %v328_v6 = vmul.f32 %v327_v2, %v3394_v21  ;;  %v336_v7 = vmul.f32 %v3134_v56, %v335_v3  ;;  %v3427_v43 = vsel %vm4892_vm9, %v488_v62, %v489_v4  ;;  %v211_v62 = vpop.f32.mrf.mxu0 }
 0x190   :  { %586 = vrot.lane.b32.xlu2 %v526_v5, %s3230_s15 }
 0x191   :  { %v330_v11 = vsel %vm329_vm10, %v3394_v21, %v328_v6  ;;  %v337_v12 = vmul.f32 0.5, %v336_v7 }
 0x192   :  { %v333_v13 = vsel %vm331_vm11, %v332_v10, %v330_v11 }
 0x193   :  { %v459_v15 = vmul.f32 %v3430_v9, %v333_v13  ;;  %v338_v16 = vsub.f32 1.5, %v337_v12 }
 0x195   :  { %553 = vrot.lane.b32.xlu0 %v459_v15, %s3229_s0  ;;  %v527_v17 = vrot.slane %v459_v15, 1  ;;  %v339_v18 = vmul.f32 %v3134_v56, %v338_v16  ;;  %2958 = vmatmul.msk.f32.gmra.mxu3 %vm136_vm2, %v133_v14  ;;  %v491_v19 = vrot.slane %v459_v15, 7 }
 0x197   :  { %v528_v21 = vsel %vm58_vm0, %v525_v63, %v527_v17  ;;  %v340_v23 = vmul.f32 %v339_v18, %v3404_v37  ;;  %v3446_v58 = vsel %vm4892_vm9, %v489_v4, %v491_v19 }
 0x198   :  { %258 = vrot.lane.b32.xlu2 %v230_v20, %s3227_s12  ;;  %588 = vrot.lane.b32.xlu1 %v528_v21, %s3230_s15 }
 0x199   :  { %v342_v27 = vsel %vm341_vm12, %v3404_v37, %v340_v23  ;;  %v472_v37 = vld [vmem:[%s4889_s1 + $0x28] sm:$0x7]  ;;  %v214_v23 = vpop.f32.mrf.mxu0 }
 0x19a   :  { %v345_v28 = vsel %vm343_vm13, %v344_v24, %v342_v27  ;;  %2959 = vmatpush.msk.msra.mxu1 %vm685_vm14, %v472_v37  ;;  %3012 = vmatpush.msk.msra.mxu2 %vm685_vm14, %v472_v37 }
 0x19b   :  { %v3457_v29 = vmul.f32 %v3397_v25, %v345_v28 }
 0x19c   :  { %702 = vmatpush.msra.mxu1 %v471_v38  ;;  %3013 = vmatpush.msra.mxu2 %v471_v38 }
 0x19d   :  { %262 = vrot.lane.b32.xlu0 %v3452_v26, %s3227_s12  ;;  %v529_v30 = vrot.slane %v3457_v29, 1  ;;  %v493_v31 = vrot.slane %v3457_v29, 7 }
 0x19e   :  { %703 = vmatpush.msra.mxu1 %v470_v39  ;;  %3014 = vmatpush.msra.mxu2 %v470_v39 }
 0x19f   :  { %v530_v35 = vsel %vm58_vm0, %v527_v17, %v529_v30  ;;  %v3471_v36 = vsel %vm4892_vm9, %v491_v19, %v493_v31 }
 0x1a0   :  { %260 = vrot.lane.b32.xlu2 %v231_v33, %s3227_s12  ;;  %590 = vrot.lane.b32.xlu1 %v530_v35, %s3230_s15 }
 0x1a1   :  { %704 = vmatpush.msra.mxu1 %v469_v41  ;;  %3015 = vmatpush.msra.mxu2 %v469_v41 }
 0x1a8   :  { %555 = vrot.lane.b32.xlu1 %v3457_v29, %s3229_s0 }
 0x1ea   :  { %v587_v42 = vpop.permute.xlu2 %586 }
 0x1f2   :  { %v259_v44 = vpop.permute.xlu2 %258 }
 0x1f3   :  { %v290_v45 = vadd.f32 %v259_v44, %v230_v20  ;;  %v233_v44 = vmul.f32 %v211_v62, %v211_v62 }
 0x1f5   :  { %3135 = vrsqrt.f32 %v290_v45  ;;  %vm353_vm5 = vcmp.eq.f32.partialorder %v290_v45, inf  ;;  %v356_v11 = vand.u32 2147483648, %v290_v45  ;;  %vm355_vm6 = vcmp.eq.f32.partialorder %v290_v45, 0.0 }
 0x1f7   :  { %v550_v48 = vpop.permute.xlu1 %549 }
 0x1f8   :  { %v623_v50 = vsel %vm622_vm15, %v523_v49, %v550_v48  ;;  %v217_v48 = vpop.f32.mrf.mxu0 }
 0x1f9   :  { %v636_v52 = vsel %vm635_vm3, %v623_v50, %v587_v42  ;;  %v3523_v50 = vmul.f32 %v217_v48, %v217_v48 }
 0x1fa   :  { %v261_v54 = vpop.permute.xlu2 %260  ;;  %2960 = vmatmul.msk.f32.vlgmr.msra.gmra.mxu1 %vm648_vm4, %v636_v52 }
 0x1fb   :  { %v3136_v56 = vpop.eup %3135  ;;  %v291_v57 = vadd.f32 %v261_v54, %v231_v33 }
 0x1fc   :  { %v347_v61 = vmul.f32 %v3136_v56, %v290_v45 }
 0x1fd   :  { %3137 = vrsqrt.f32 %v291_v57  ;;  %vm365_vm7 = vcmp.eq.f32.partialorder %v291_v57, inf  ;;  %v368_v33 = vand.u32 2147483648, %v291_v57  ;;  %vm367_vm8 = vcmp.eq.f32.partialorder %v291_v57, 0.0 }
 0x1fe   :  { %v348_v63 = vmul.f32 %v3136_v56, %v347_v61 }
 0x1ff   :  { %v552_v2 = vpop.permute.xlu0 %551 }
 0x200   :  { %v349_v3 = vmul.f32 0.5, %v348_v63  ;;  %v624_v15 = vsel %vm622_vm15, %v3427_v43, %v552_v2 }
 0x202   :  { %v350_v4 = vsub.f32 1.5, %v349_v3 }
 0x203   :  { %v3138_v5 = vpop.eup %3137 }
 0x204   :  { %v351_v34 = vmul.f32 %v3136_v56, %v350_v4  ;;  %v359_v6 = vmul.f32 %v3138_v5, %v291_v57  ;;  %v234_v56 = vmul.f32 %v214_v23, %v214_v23 }
 0x206   :  { %v352_v7 = vmul.f32 %v351_v34, %v290_v45  ;;  %v360_v8 = vmul.f32 %v3138_v5, %v359_v6 }
 0x207   :  { %v554_v10 = vpop.permute.xlu0 %553 }
 0x208   :  { %v354_v12 = vsel %vm353_vm5, %v290_v45, %v352_v7  ;;  %v361_v13 = vmul.f32 0.5, %v360_v8  ;;  %v625_v39 = vsel %vm622_vm15, %v3446_v58, %v554_v10 }
 0x209   :  { %v357_v14 = vsel %vm355_vm6, %v356_v11, %v354_v12 }
 0x20a   :  { %v589_v16 = vpop.permute.xlu1 %588  ;;  %v461_v17 = vmul.f32 %v3410_v40, %v357_v14  ;;  %v362_v18 = vsub.f32 1.5, %v361_v13 }
 0x20b   :  { %v637_v19 = vsel %vm635_vm3, %v624_v15, %v589_v16 }
 0x20c   :  { %557 = vrot.lane.b32.xlu0 %v461_v17, %s3229_s0  ;;  %2961 = vmatmul.msk.f32.gmra.mxu1 %vm648_vm4, %v637_v19  ;;  %v531_v20 = vrot.slane %v461_v17, 1  ;;  %v363_v22 = vmul.f32 %v3138_v5, %v362_v18  ;;  %v495_v21 = vrot.slane %v461_v17, 7 }
 0x20e   :  { %v532_v24 = vsel %vm58_vm0, %v529_v30, %v531_v20  ;;  %v364_v27 = vmul.f32 %v363_v22, %v291_v57  ;;  %v3507_v43 = vsel %vm4892_vm9, %v493_v31, %v495_v21 }
 0x20f   :  { %592 = vrot.lane.b32.xlu2 %v532_v24, %s3230_s15  ;;  %v263_v28 = vpop.permute.xlu0 %262 }
 0x210   :  { %v292_v35 = vadd.f32 %v263_v28, %v3452_v26  ;;  %v366_v37 = vsel %vm365_vm7, %v291_v57, %v364_v27  ;;  %v220_v52 = vpop.f32.mrf.mxu3 }
 0x211   :  { %v369_v38 = vsel %vm367_vm8, %v368_v33, %v366_v37  ;;  %v3528_v63 = vmul.f32 %v220_v52, %v220_v52 }
 0x212   :  { %3139 = vrsqrt.f32 %v292_v35  ;;  %v591_v30 = vpop.permute.xlu1 %590  ;;  %v462_v29 = vmul.f32 %v3430_v9, %v369_v38  ;;  %vm377_vm10 = vcmp.eq.f32.partialorder %v292_v35, inf  ;;  %v380_v4 = vand.u32 2147483648, %v292_v35 }
 0x213   :  { %v638_v31 = vsel %vm635_vm3, %v625_v39, %v591_v30  ;;  %vm379_vm11 = vcmp.eq.f32.partialorder %v292_v35, 0.0 }
 0x214   :  { %559 = vrot.lane.b32.xlu0 %v462_v29, %s3229_s0  ;;  %2962 = vmatmul.msk.f32.gmra.mxu1 %vm648_vm4, %v638_v31  ;;  %v533_v41 = vrot.slane %v462_v29, 1  ;;  %v497_v42 = vrot.slane %v462_v29, 7 }
 0x216   :  { %v534_v26 = vsel %vm58_vm0, %v531_v20, %v533_v41  ;;  %v3519_v45 = vsel %vm4892_vm9, %v495_v21, %v497_v42 }
 0x217   :  { %264 = vrot.lane.b32.xlu2 %v233_v44, %s3227_s12  ;;  %594 = vrot.lane.b32.xlu1 %v534_v26, %s3230_s15 }
 0x218   :  { %v3140_v58 = vpop.eup %3139  ;;  %v223_v5 = vpop.f32.mrf.mxu3 }
 0x219   :  { %v371_v49 = vmul.f32 %v3140_v58, %v292_v35  ;;  %v3533_v7 = vmul.f32 %v223_v5, %v223_v5 }
 0x21a   :  { %v556_v13 = vpop.permute.xlu1 %555 }
 0x21b   :  { %v372_v54 = vmul.f32 %v3140_v58, %v371_v49  ;;  %v626_v14 = vsel %vm622_vm15, %v3471_v36, %v556_v13 }
 0x21c   :  { %268 = vrot.lane.b32.xlu0 %v3523_v50, %s3227_s12 }
 0x21d   :  { %v373_v57 = vmul.f32 0.5, %v372_v54 }
 0x21f   :  { %266 = vrot.lane.b32.xlu2 %v234_v56, %s3227_s12  ;;  %v374_v61 = vsub.f32 1.5, %v373_v57 }
 0x221   :  { %v375_v2 = vmul.f32 %v3140_v58, %v374_v61 }
 0x223   :  { %v376_v3 = vmul.f32 %v375_v2, %v292_v35 }
 0x224   :  { %270 = vrot.lane.b32.xlu0 %v3528_v63, %s3227_s12 }
 0x225   :  { %v378_v34 = vsel %vm377_vm10, %v292_v35, %v376_v3 }
 0x226   :  { %v381_v6 = vsel %vm379_vm11, %v380_v4, %v378_v34 }
 0x227   :  { %v463_v62 = vmul.f32 %v3397_v25, %v381_v6 }
 0x229   :  { %v535_v8 = vrot.slane %v463_v62, 1  ;;  %v499_v10 = vrot.slane %v463_v62, 7 }
 0x22b   :  { %v536_v11 = vsel %vm58_vm0, %v533_v41, %v535_v8  ;;  %v3537_v12 = vsel %vm4892_vm9, %v497_v42, %v499_v10 }
 0x22c   :  { %272 = vrot.lane.b32.xlu0 %v3533_v7, %s3227_s12  ;;  %596 = vrot.lane.b32.xlu1 %v536_v11, %s3230_s15  ;;  %s3232_s12 = smov 16  }
 0x234   :  { %561 = vrot.lane.b32.xlu1 %v463_v62, %s3229_s0 }
 0x269   :  { %v593_v15 = vpop.permute.xlu2 %592 }
 0x26a   :  { %v639_v16 = vsel %vm635_vm3, %v626_v14, %v593_v15 }
 0x26b   :  { %2963 = vmatmul.msk.f32.gmra.mxu1 %vm648_vm4, %v639_v16 }
 0x271   :  { %v265_v17 = vpop.permute.xlu2 %264 }
 0x272   :  { %v293_v18 = vadd.f32 %v265_v17, %v233_v44 }
 0x274   :  { %3141 = vrsqrt.f32 %v293_v18  ;;  %vm389_vm12 = vcmp.eq.f32.partialorder %v293_v18, inf  ;;  %v392_v29 = vand.u32 2147483648, %v293_v18  ;;  %vm391_vm13 = vcmp.eq.f32.partialorder %v293_v18, 0.0 }
 0x277   :  { %v706_v28 = vpop.f32.mrf.mxu1 }
 0x278   :  { %v742_v61 = vmax.f32 %v706_v28, 0.0 }
 0x279   :  { %v267_v19 = vpop.permute.xlu2 %266 }
 0x27a   :  { %v3142_v20 = vpop.eup %3141  ;;  %v294_v22 = vadd.f32 %v267_v19, %v234_v56  ;;  %v3562_v11 = vmul.f32 %v3357_v55, %v742_v61 }
 0x27b   :  { %v383_v21 = vmul.f32 %v3142_v20, %v293_v18 }
 0x27c   :  { %3143 = vrsqrt.f32 %v294_v22  ;;  %vm401_vm14 = vcmp.eq.f32.partialorder %v294_v22, inf  ;;  %v404_v34 = vand.u32 2147483648, %v294_v22  ;;  %vm403_vm5 = vcmp.eq.f32.partialorder %v294_v22, 0.0 }
 0x27d   :  { %v384_v23 = vmul.f32 %v3142_v20, %v383_v21 }
 0x27e   :  { %v558_v24 = vpop.permute.xlu0 %557 }
 0x27f   :  { %v385_v27 = vmul.f32 0.5, %v384_v23  ;;  %v627_v44 = vsel %vm622_vm15, %v3507_v43, %v558_v24 }
 0x281   :  { %v386_v33 = vsub.f32 1.5, %v385_v27 }
 0x282   :  { %v3144_v35 = vpop.eup %3143 }
 0x283   :  { %v387_v36 = vmul.f32 %v3142_v20, %v386_v33  ;;  %v395_v37 = vmul.f32 %v3144_v35, %v294_v22 }
 0x285   :  { %v388_v38 = vmul.f32 %v387_v36, %v293_v18  ;;  %v396_v39 = vmul.f32 %v3144_v35, %v395_v37 }
 0x286   :  { %v560_v30 = vpop.permute.xlu0 %559 }
 0x287   :  { %v390_v31 = vsel %vm389_vm12, %v293_v18, %v388_v38  ;;  %v397_v41 = vmul.f32 0.5, %v396_v39  ;;  %v757_v18 = vsel %vm136_vm2, %v3562_v11, 0.0  ;;  %v628_v37 = vsel %vm622_vm15, %v3519_v45, %v560_v30 }
 0x288   :  { %v393_v42 = vsel %vm391_vm13, %v392_v29, %v390_v31 }
 0x289   :  { %v595_v26 = vpop.permute.xlu1 %594  ;;  %v709_v48 = vpop.f32.mrf.mxu1  ;;  %v464_v58 = vmul.f32 %v3410_v40, %v393_v42  ;;  %v398_v49 = vsub.f32 1.5, %v397_v41 }
 0x28a   :  { %v640_v52 = vsel %vm635_vm3, %v627_v44, %v595_v26  ;;  %v3557_v4 = vmax.f32 %v709_v48, 0.0 }
 0x28b   :  { %563 = vrot.lane.b32.xlu1 %v464_v58, %s3229_s0  ;;  %2964 = vmatmul.msk.f32.gmra.mxu1 %vm648_vm4, %v640_v52  ;;  %v537_v54 = vrot.slane %v464_v58, 1  ;;  %v399_v56 = vmul.f32 %v3144_v35, %v398_v49  ;;  %v501_v57 = vrot.slane %v464_v58, 7 }
 0x28c   :  { %v758_v15 = vsel %vm136_vm2, %v3557_v4, 0.0 }
 0x28d   :  { %v538_v2 = vsel %vm58_vm0, %v535_v8, %v537_v54  ;;  %v400_v3 = vmul.f32 %v399_v56, %v294_v22  ;;  %v3555_v43 = vsel %vm4892_vm9, %v499_v10, %v501_v57  ;;  %v759_v20 = vadd.f32 %v758_v15, %v757_v18 }
 0x28e   :  { %598 = vrot.lane.b32.xlu2 %v538_v2, %s3230_s15  ;;  %v269_v5 = vpop.permute.xlu0 %268 }
 0x28f   :  { %v295_v6 = vadd.f32 %v269_v5, %v3523_v50  ;;  %v402_v62 = vsel %vm401_vm14, %v294_v22, %v400_v3 }
 0x290   :  { %v405_v13 = vsel %vm403_vm5, %v404_v34, %v402_v62 }
 0x291   :  { %3145 = vrsqrt.f32 %v295_v6  ;;  %v712_v8 = vpop.f32.mrf.mxu1  ;;  %v465_v10 = vmul.f32 %v3430_v9, %v405_v13  ;;  %vm413_vm6 = vcmp.eq.f32.partialorder %v295_v6, inf  ;;  %v416_v58 = vand.u32 2147483648, %v295_v6 }
 0x292   :  { %v744_v14 = vmax.f32 %v712_v8, 0.0  ;;  %vm415_vm7 = vcmp.eq.f32.partialorder %v295_v6, 0.0 }
 0x293   :  { %565 = vrot.lane.b32.xlu1 %v465_v10, %s3229_s0  ;;  %v539_v16 = vrot.slane %v465_v10, 1  ;;  %v503_v17 = vrot.slane %v465_v10, 7 }
 0x294   :  { %v3569_v50 = vmul.f32 %v3379_v1, %v744_v14 }
 0x295   :  { %v540_v19 = vsel %vm58_vm0, %v537_v54, %v539_v16  ;;  %v3575_v22 = vsel %vm4892_vm9, %v501_v57, %v503_v17 }
 0x296   :  { %600 = vrot.lane.b32.xlu2 %v540_v19, %s3230_s15  ;;  %v271_v21 = vpop.permute.xlu0 %270  ;;  %v760_v23 = vsel %vm136_vm2, %v3569_v50, 0.0 }
 0x297   :  { %v3146_v24 = vpop.eup %3145  ;;  %v296_v27 = vadd.f32 %v271_v21, %v3528_v63  ;;  %v761_v28 = vadd.f32 %v760_v23, %v759_v20  ;;  %v772_v21 = vmul.f32 %v3562_v11, %v3562_v11 }
 0x298   :  { %v407_v33 = vmul.f32 %v3146_v24, %v295_v6 }
 0x299   :  { %3147 = vrsqrt.f32 %v296_v27  ;;  %762 = vadd.xlane.f32.xlu0 %v761_v28  ;;  %vm425_vm8 = vcmp.eq.f32.partialorder %v296_v27, inf  ;;  %vm427_vm10 = vcmp.eq.f32.partialorder %v296_v27, 0.0 }
 0x29a   :  { %v408_v35 = vmul.f32 %v3146_v24, %v407_v33 }
 0x29c   :  { %v409_v36 = vmul.f32 0.5, %v408_v35  ;;  %v775_v35 = vsel %vm136_vm2, %v772_v21, 0.0 }
 0x29e   :  { %v597_v38 = vpop.permute.xlu1 %596  ;;  %v273_v39 = vpop.permute.xlu0 %272  ;;  %v410_v29 = vsub.f32 1.5, %v409_v36 }
 0x29f   :  { %v3148_v31 = vpop.eup %3147  ;;  %v297_v41 = vadd.f32 %v273_v39, %v3533_v7  ;;  %v641_v42 = vsel %vm635_vm3, %v628_v37, %v597_v38 }
 0x2a0   :  { %2965 = vmatmul.msk.f32.gmra.mxu1 %vm648_vm4, %v641_v42  ;;  %v411_v63 = vmul.f32 %v3146_v24, %v410_v29  ;;  %v419_v44 = vmul.f32 %v3148_v31, %v296_v27 }
 0x2a1   :  { %3149 = vrsqrt.f32 %v297_v41  ;;  %vm437_vm11 = vcmp.eq.f32.partialorder %v297_v41, inf  ;;  %v440_v20 = vand.u32 2147483648, %v297_v41  ;;  %vm439_vm12 = vcmp.eq.f32.partialorder %v297_v41, 0.0 }
 0x2a2   :  { %v412_v26 = vmul.f32 %v411_v63, %v295_v6  ;;  %v420_v48 = vmul.f32 %v3148_v31, %v419_v44 }
 0x2a4   :  { %v414_v49 = vsel %vm413_vm6, %v295_v6, %v412_v26  ;;  %v421_v45 = vmul.f32 0.5, %v420_v48  ;;  %v428_v6 = vand.u32 2147483648, %v296_v27 }
 0x2a5   :  { %v417_v30 = vsel %vm415_vm7, %v416_v58, %v414_v49 }
 0x2a6   :  { %v466_v52 = vmul.f32 %v3397_v25, %v417_v30  ;;  %v422_v54 = vsub.f32 1.5, %v421_v45  ;;  %v562_v63 = vpop.permute.xlu1 %561 }
 0x2a7   :  { %v3150_v56 = vpop.eup %3149  ;;  %v629_v44 = vsel %vm622_vm15, %v3537_v12, %v562_v63 }
 0x2a8   :  { %v541_v7 = vrot.slane %v466_v52, 1  ;;  %v423_v57 = vmul.f32 %v3148_v31, %v422_v54  ;;  %v431_v61 = vmul.f32 %v3150_v56, %v297_v41  ;;  %v505_v2 = vrot.slane %v466_v52, 7 }
 0x2aa   :  { %v542_v3 = vsel %vm58_vm0, %v539_v16, %v541_v7  ;;  %v424_v5 = vmul.f32 %v423_v57, %v296_v27  ;;  %v432_v34 = vmul.f32 %v3150_v56, %v431_v61  ;;  %v3589_v62 = vsel %vm4892_vm9, %v503_v17, %v505_v2 }
 0x2ab   :  { %602 = vrot.lane.b32.xlu2 %v542_v3, %s3230_s15  ;;  %v773_v16 = vmul.f32 %v3557_v4, %v3557_v4 }
 0x2ac   :  { %v426_v13 = vsel %vm425_vm8, %v296_v27, %v424_v5  ;;  %v433_v25 = vmul.f32 0.5, %v432_v34  ;;  %vm1198_vm8 = vcmask 261120  }
 0x2ad   :  { %v429_v8 = vsel %vm427_vm10, %v428_v6, %v426_v13  ;;  %v776_v28 = vsel %vm136_vm2, %v773_v16, 0.0  ;;  %vm1211_vm10 = vcmask 392192  }
 0x2ae   :  { %v467_v10 = vmul.f32 %v3410_v40, %v429_v8  ;;  %v434_v14 = vsub.f32 1.5, %v433_v25  ;;  %v774_v40 = vmul.f32 %v3569_v50, %v3569_v50  ;;  %v777_v38 = vadd.f32 %v776_v28, %v775_v35 }
 0x2b0   :  { %v435_v15 = vmul.f32 %v3150_v56, %v434_v14  ;;  %v507_v18 = vrot.slane %v467_v10, 7  ;;  %v543_v27 = vrot.slane %v467_v10, 1  ;;  %v778_v36 = vsel %vm136_vm2, %v774_v40, 0.0 }
 0x2b1   :  { %v779_v31 = vadd.f32 %v778_v36, %v777_v38 }
 0x2b2   :  { %v436_v19 = vmul.f32 %v435_v15, %v297_v41  ;;  %v3596_v17 = vsel %vm4892_vm9, %v505_v2, %v507_v18  ;;  %v544_v39 = vsel %vm58_vm0, %v541_v7, %v543_v27 }
 0x2b3   :  { %567 = vrot.lane.b32.xlu2 %v466_v52, %s3229_s0 }
 0x2b4   :  { %v438_v23 = vsel %vm437_vm11, %v297_v41, %v436_v19 }
 0x2b5   :  { %v441_v24 = vsel %vm439_vm12, %v440_v20, %v438_v23 }
 0x2b6   :  { %v468_v33 = vmul.f32 %v3430_v9, %v441_v24 }
 0x2b8   :  { %v509_v37 = vrot.slane %v468_v33, 7  ;;  %v545_v41 = vrot.slane %v468_v33, 1 }
 0x2ba   :  { %v3609_v29 = vsel %vm4892_vm9, %v507_v18, %v509_v37  ;;  %v546_v9 = vsel %vm58_vm0, %v543_v27, %v545_v41  ;;  %v548_v42 = vsel %vm58_vm0, %v545_v41, 0.0 }
 0x2bb   :  { %604 = vrot.lane.b32.xlu2 %v544_v39, %s3230_s15 }
 0x2bd   :  { %780 = vadd.xlane.f32.xlu1 %v779_v31 }
 0x2c3   :  { %569 = vrot.lane.b32.xlu2 %v467_v10, %s3229_s0 }
 0x2cb   :  { %606 = vrot.lane.b32.xlu2 %v546_v9, %s3230_s15 }
 0x2d3   :  { %571 = vrot.lane.b32.xlu2 %v468_v33, %s3229_s0 }
 0x2db   :  { %608 = vrot.lane.b32.xlu2 %v548_v42, %s3230_s15  ;;  %s3233_s15 = smov 32  }
 0x2e8   :  { %v599_v26 = vpop.permute.xlu2 %598  ;;  %v715_v57 = vpop.f32.mrf.mxu1 }
 0x2e9   :  { %v642_v48 = vsel %vm635_vm3, %v629_v44, %v599_v26  ;;  %v745_v8 = vmax.f32 %v715_v57, 0.0 }
 0x2ea   :  { %2966 = vmatmul.msk.f32.gmra.mxu1 %vm648_vm4, %v642_v48 }
 0x2eb   :  { %v3637_v15 = vmul.f32 %v3357_v55, %v745_v8 }
 0x2ed   :  { %v843_v21 = vmul.f32 %v3637_v15, %v3637_v15  ;;  %v828_v23 = vsel %vm136_vm2, %v3637_v15, 0.0 }
 0x2ef   :  { %v846_v35 = vsel %vm136_vm2, %v843_v21, 0.0 }
 0x2f0   :  { %v601_v58 = vpop.permute.xlu2 %600 }
 0x2fd   :  { %v564_v49 = vpop.permute.xlu1 %563 }
 0x2fe   :  { %v630_v45 = vsel %vm622_vm15, %v3555_v43, %v564_v49 }
 0x2ff   :  { %v643_v30 = vsel %vm635_vm3, %v630_v45, %v601_v58 }
 0x300   :  { %2967 = vmatmul.msk.f32.gmra.mxu1 %vm648_vm4, %v643_v30 }
 0x305   :  { %v566_v52 = vpop.permute.xlu1 %565  ;;  %v603_v54 = vpop.permute.xlu2 %602 }
 0x306   :  { %v631_v56 = vsel %vm622_vm15, %v3575_v22, %v566_v52 }
 0x307   :  { %v644_v12 = vsel %vm635_vm3, %v631_v56, %v603_v54 }
 0x308   :  { %2968 = vmatmul.msk.f32.gmra.mxu1 %vm648_vm4, %v644_v12  ;;  %v718_v34 = vpop.f32.mrf.mxu1 }
 0x309   :  { %v3634_v14 = vmax.f32 %v718_v34, 0.0 }
 0x30b   :  { %v844_v18 = vmul.f32 %v3634_v14, %v3634_v14  ;;  %v829_v20 = vsel %vm136_vm2, %v3634_v14, 0.0 }
 0x30c   :  { %v763_v7 = vpop.xlane.xlu0 %762  ;;  %v830_v27 = vadd.f32 %v829_v20, %v828_v23 }
 0x30d   :  { %v764_v61 = vrot.slane %v763_v7, 4  ;;  %v568_v2 = vpop.permute.xlu2 %567  ;;  %v847_v24 = vsel %vm136_vm2, %v844_v18, 0.0 }
 0x30e   :  { %v632_v6 = vsel %vm622_vm15, %v3589_v62, %v568_v2  ;;  %v848_v37 = vadd.f32 %v847_v24, %v846_v35 }
 0x30f   :  { %v765_v3 = vadd.f32 %v764_v61, %v763_v7 }
 0x311   :  { %v766_v5 = vrot.slane %v765_v3, 2 }
 0x313   :  { %v767_v43 = vadd.f32 %v766_v5, %v765_v3 }
 0x315   :  { %v605_v13 = vpop.permute.xlu2 %604  ;;  %v768_v25 = vrot.slane %v767_v43, 1 }
 0x316   :  { %v645_v22 = vsel %vm635_vm3, %v632_v6, %v605_v13 }
 0x317   :  { %2969 = vmatmul.msk.f32.vlgmr.msra.gmra.mxu2 %vm648_vm4, %v645_v22  ;;  %v769_v10 = vadd.f32 %v768_v25, %v767_v43 }
 0x319   :  { %3016 = vpush %v769_v10 }
 0x31d   :  { %v721_v16 = vpop.f32.mrf.mxu1  ;;  %v570_v19 = vpop.permute.xlu2 %569 }
 0x31e   :  { %v747_v62 = vmax.f32 %v721_v16, 0.0  ;;  %v633_v39 = vsel %vm622_vm15, %v3596_v17, %v570_v19 }
 0x320   :  { %v3646_v40 = vmul.f32 %v3379_v1, %v747_v62 }
 0x322   :  { %v831_v28 = vsel %vm136_vm2, %v3646_v40, 0.0  ;;  %v845_v33 = vmul.f32 %v3646_v40, %v3646_v40 }
 0x323   :  { %v832_v36 = vadd.f32 %v831_v28, %v830_v27 }
 0x324   :  { %v849_v38 = vsel %vm136_vm2, %v845_v33, 0.0 }
 0x325   :  { %833 = vadd.xlane.f32.xlu0 %v832_v36  ;;  %v607_v31 = vpop.permute.xlu2 %606  ;;  %v850_v41 = vadd.f32 %v849_v38, %v848_v37 }
 0x326   :  { %v646_v9 = vsel %vm635_vm3, %v633_v39, %v607_v31 }
 0x327   :  { %851 = vadd.xlane.f32.xlu1 %v850_v41  ;;  %2970 = vmatmul.msk.f32.gmra.mxu2 %vm648_vm4, %v646_v9 }
 0x32d   :  { %v572_v42 = vpop.permute.xlu2 %571 }
 0x32e   :  { %v634_v48 = vsel %vm622_vm15, %v3609_v29, %v572_v42 }
 0x330   :  { %v781_v63 = vpop.xlane.xlu1 %780 }
 0x331   :  { %v782_v44 = vrot.slane %v781_v63, 4 }
 0x333   :  { %v783_v26 = vadd.f32 %v782_v44, %v781_v63 }
 0x335   :  { %v609_v58 = vpop.permute.xlu2 %608  ;;  %v784_v49 = vrot.slane %v783_v26, 2 }
 0x336   :  { %v647_v45 = vsel %vm635_vm3, %v634_v48, %v609_v58 }
 0x337   :  { %2971 = vmatmul.msk.f32.gmra.mxu2 %vm648_vm4, %v647_v45  ;;  %v785_v17 = vadd.f32 %v784_v49, %v783_v26 }
 0x339   :  { %v786_v30 = vrot.slane %v785_v17, 1 }
 0x33b   :  { %v787_v52 = vadd.f32 %v786_v30, %v785_v17 }
 0x33d   :  { %3018 = vpush %v787_v52 }
 0x34a   :  { %s3017_s25 = spop %3016 }
 0x34b   :  { %s3665_s26 = smul.f32 0.0036764706, %s3017_s25 }
 0x34d   :  { %s790_s27 = smul.f32 %s3665_s26, %s3665_s26  ;;  %v793_v17 = vstv %s3665_s26 }
 0x367   :  { %v724_v29 = vpop.f32.mrf.mxu1 }
 0x368   :  { %v748_v12 = vmax.f32 %v724_v29, 0.0  ;;  %v794_v29 = vsub.f32 %v3562_v11, %v793_v17 }
 0x36a   :  { %v3673_v3 = vmul.f32 %v3357_v55, %v748_v12  ;;  %v3702_v12 = vld [vmem:[%s4890_s2] ss:$0 sm:$0xff] }
 0x36c   :  { %v912_v13 = vmul.f32 %v3673_v3, %v3673_v3  ;;  %v897_v16 = vsel %vm136_vm2, %v3673_v3, 0.0 }
 0x36e   :  { %s3019_s28 = spop %3018  ;;  %v915_v23 = vsel %vm136_vm2, %v912_v13, 0.0 }
 0x36f   :  { %s789_s29 = smul.f32 0.0036764706, %s3019_s28 }
 0x371   :  { %s791_s30 = ssub.f32 %s789_s29, %s790_s27 }
 0x373   :  { %s792_s5 = smax.f32 %s3231_s4, %s791_s30 }
 0x374   :  { %s801_s6 = sadd.f32 1e-08, %s792_s5 }
 0x376   :  { %v802_v54 = vstv %s801_s6 }
 0x377   :  { %3151 = vrsqrt.f32 %v802_v54  ;;  %vm809_vm13 = vweird.f32 %v802_v54 }
 0x37d   :  { %v3152_v56 = vpop.eup %3151  ;;  %v727_v7 = vpop.f32.mrf.mxu1 }
 0x37e   :  { %v804_v57 = vmul.f32 %v3152_v56, %v802_v54  ;;  %v3670_v61 = vmax.f32 %v727_v7, 0.0  ;;  %vm810_vm4 = vweird.f32 %v3152_v56  ;;  %v795_v54 = vsub.f32 %v3557_v4, %v793_v17 }
 0x37f   :  { %vm811_vm14 = vmor %vm809_vm13, %vm810_vm4 }
 0x380   :  { %v805_v2 = vmul.f32 %v3152_v56, %v804_v57  ;;  %v913_v43 = vmul.f32 %v3670_v61, %v3670_v61  ;;  %v898_v22 = vsel %vm136_vm2, %v3670_v61, 0.0  ;;  %v799_v11 = vmul.f32 %v3702_v12, %v795_v54 }
 0x381   :  { %v899_v62 = vadd.f32 %v898_v22, %v897_v16 }
 0x382   :  { %v806_v5 = vmul.f32 0.5, %v805_v2  ;;  %v916_v19 = vsel %vm136_vm2, %v913_v43, 0.0 }
 0x383   :  { %v917_v27 = vadd.f32 %v916_v19, %v915_v23 }
 0x384   :  { %v807_v34 = vsub.f32 1.5, %v806_v5  ;;  %v798_v5 = vmul.f32 %v3702_v12, %v794_v29 }
 0x385   :  { %v730_v6 = vpop.f32.mrf.mxu1 }
 0x386   :  { %v750_v25 = vmax.f32 %v730_v6, 0.0  ;;  %v808_v8 = vmul.f32 %v3152_v56, %v807_v34 }
 0x388   :  { %v3682_v10 = vmul.f32 %v3379_v1, %v750_v25  ;;  %v812_v18 = vsel %vm811_vm14, %v3152_v56, %v808_v8  ;;  %v796_v56 = vsub.f32 %v3569_v50, %v793_v17  ;;  %v3715_v50 = vld [vmem:[%s4890_s2 + $0x1] ss:$0 sm:$0xff] }
 0x389   :  { %3020 = vpush %v812_v18 }
 0x38a   :  { %v900_v20 = vsel %vm136_vm2, %v3682_v10, 0.0  ;;  %v914_v21 = vmul.f32 %v3682_v10, %v3682_v10  ;;  %v800_v4 = vmul.f32 %v3702_v12, %v796_v56 }
 0x38b   :  { %v901_v24 = vadd.f32 %v900_v20, %v899_v62 }
 0x38c   :  { %v918_v28 = vsel %vm136_vm2, %v914_v21, 0.0 }
 0x38d   :  { %902 = vadd.xlane.f32.xlu2 %v901_v24  ;;  %v919_v33 = vadd.f32 %v918_v28, %v917_v27 }
 0x38f   :  { %920 = vadd.xlane.f32.xlu0 %v919_v33 }
 0x398   :  { %v834_v35 = vpop.xlane.xlu0 %833 }
 0x399   :  { %v835_v36 = vrot.slane %v834_v35, 4 }
 0x39a   :  { %v852_v37 = vpop.xlane.xlu1 %851  ;;  %v733_v49 = vpop.f32.mrf.mxu2 }
 0x39b   :  { %v836_v38 = vadd.f32 %v835_v36, %v834_v35  ;;  %v853_v39 = vrot.slane %v852_v37, 4  ;;  %v751_v30 = vmax.f32 %v733_v49, 0.0 }
 0x39d   :  { %v854_v31 = vadd.f32 %v853_v39, %v852_v37  ;;  %v837_v41 = vrot.slane %v836_v38, 2  ;;  %v3705_v7 = vmul.f32 %v3357_v55, %v751_v30 }
 0x39f   :  { %v838_v9 = vadd.f32 %v837_v41, %v836_v38  ;;  %v855_v42 = vrot.slane %v854_v31, 2  ;;  %v981_v13 = vmul.f32 %v3705_v7, %v3705_v7  ;;  %v966_v16 = vsel %vm136_vm2, %v3705_v7, 0.0 }
 0x3a1   :  { %v839_v63 = vrot.slane %v838_v9, 1  ;;  %v856_v44 = vadd.f32 %v855_v42, %v854_v31  ;;  %v984_v28 = vsel %vm136_vm2, %v981_v13, 0.0 }
 0x3a3   :  { %v840_v26 = vadd.f32 %v839_v63, %v838_v9  ;;  %v857_v48 = vrot.slane %v856_v44, 1 }
 0x3a5   :  { %3022 = vpush %v840_v26  ;;  %v858_v58 = vadd.f32 %v857_v48, %v856_v44 }
 0x3a7   :  { %3024 = vpush %v858_v58 }
 0x3aa   :  { %v736_v45 = vpop.f32.mrf.mxu2 }
 0x3ab   :  { %v3694_v52 = vmax.f32 %v736_v45, 0.0 }
 0x3ad   :  { %v982_v57 = vmul.f32 %v3694_v52, %v3694_v52  ;;  %v967_v6 = vsel %vm136_vm2, %v3694_v52, 0.0 }
 0x3ae   :  { %v968_v23 = vadd.f32 %v967_v6, %v966_v16 }
 0x3af   :  { %v985_v19 = vsel %vm136_vm2, %v982_v57, 0.0 }
 0x3b0   :  { %v986_v37 = vadd.f32 %v985_v19, %v984_v28 }
 0x3ba   :  { %v739_v2 = vpop.f32.mrf.mxu2  ;;  %s3021_s9 = spop %3020 }
 0x3bb   :  { %v753_v43 = vmax.f32 %v739_v2, 0.0  ;;  %v814_v34 = vstv %s3021_s9 }
 0x3bc   :  { %v815_v25 = vmul.f32 %v814_v34, %v798_v5  ;;  %v816_v8 = vmul.f32 %v814_v34, %v799_v11  ;;  %v817_v22 = vmul.f32 %v814_v34, %v800_v4 }
 0x3bd   :  { %v3722_v18 = vmul.f32 %v3379_v1, %v753_v43 }
 0x3be   :  { %v819_v62 = vadd.f32 %v3715_v50, %v815_v25  ;;  %v820_v20 = vadd.f32 %v3715_v50, %v816_v8  ;;  %v821_v21 = vadd.f32 %v3715_v50, %v817_v22 }
 0x3bf   :  { %v969_v24 = vsel %vm136_vm2, %v3722_v18, 0.0  ;;  %v983_v27 = vmul.f32 %v3722_v18, %v3722_v18 }
 0x3c0   :  { %v3736_v33 = vmul.f32 %v3357_v55, %v819_v62  ;;  %v970_v35 = vadd.f32 %v969_v24, %v968_v23  ;;  %v3739_v36 = vmul.f32 %v3379_v1, %v821_v21  ;;  %v1053_v31 = vrot.slane %v820_v20, 7 }
 0x3c1   :  { %v987_v38 = vsel %vm136_vm2, %v983_v27, 0.0  ;;  %v1089_v26 = vrot.slane %v820_v20, 1 }
 0x3c2   :  { %971 = vadd.xlane.f32.xlu1 %v970_v35  ;;  %1117 = vrot.lane.b32.xlu2 %v3739_v36, %s3232_s12  ;;  %v988_v39 = vadd.f32 %v987_v38, %v986_v37  ;;  %v1055_v41 = vrot.slane %v3739_v36, 7  ;;  %v1052_v9 = vrot.slane %v3736_v33, 7  ;;  %v1088_v44 = vrot.slane %v3736_v33, 1  ;;  %v1037_v38 = vld [vmem:[%s4889_s1 + $0x58] sm:$0xff] }
 0x3c3   :  { %v1091_v58 = vrot.slane %v3739_v36, 1  ;;  %1258 = vmatpush.msrb.mxu2 %v1037_v38 }
 0x3c4   :  { %989 = vadd.xlane.f32.xlu0 %v988_v39  ;;  %v3749_v42 = vsel %vm4892_vm9, %v1053_v31, %v1055_v41  ;;  %v3754_v63 = vsel %vm4892_vm9, %v1052_v9, %v1053_v31  ;;  %v1090_v48 = vsel %vm58_vm0, %v1088_v44, %v1089_v26 }
 0x3c5   :  { %v1092_v49 = vsel %vm58_vm0, %v1089_v26, %v1091_v58 }
 0x3d6   :  { %s3023_s13 = spop %3022 }
 0x3d7   :  { %s3757_s14 = smul.f32 0.0036764706, %s3023_s13 }
 0x3d8   :  { %1150 = vrot.lane.b32.xlu0 %v1090_v48, %s3233_s15  ;;  %s3025_s16 = spop %3024  ;;  %v1035_v48 = vld [vmem:[%s4889_s1 + $0x48] sm:$0xff] }
 0x3d9   :  { %s861_s17 = smul.f32 %s3757_s14, %s3757_s14  ;;  %v864_v21 = vstv %s3757_s14 }
 0x3da   :  { %s860_s18 = smul.f32 0.0036764706, %s3025_s16  ;;  %v865_v23 = vsub.f32 %v3637_v15, %v864_v21  ;;  %v866_v24 = vsub.f32 %v3634_v14, %v864_v21  ;;  %v867_v27 = vsub.f32 %v3646_v40, %v864_v21  ;;  %v1036_v14 = vld [vmem:[%s4889_s1 + $0x50] sm:$0xff] }
 0x3db   :  { %1113 = vrot.lane.b32.xlu1 %v3736_v33, %s3232_s12  ;;  %1259 = vmatpush.msrb.mxu2 %v1036_v14 }
 0x3dc   :  { %s862_s19 = ssub.f32 %s860_s18, %s861_s17  ;;  %v868_v28 = vmul.f32 %v3702_v12, %v865_v23  ;;  %v869_v35 = vmul.f32 %v3702_v12, %v866_v24  ;;  %v870_v37 = vmul.f32 %v3702_v12, %v867_v27  ;;  %v1087_v23 = vsel %vm4892_vm9, 0.0, %v1052_v9 }
 0x3dd   :  { %1260 = vmatpush.msrb.mxu2 %v1035_v48 }
 0x3de   :  { %s863_s20 = smax.f32 %s3231_s4, %s862_s19 }
 0x3df   :  { %s871_s21 = sadd.f32 1e-08, %s863_s20 }
 0x3e0   :  { %1152 = vrot.lane.b32.xlu0 %v1092_v49, %s3233_s15 }
 0x3e1   :  { %v872_v45 = vstv %s871_s21 }
 0x3e2   :  { %3153 = vrsqrt.f32 %v872_v45  ;;  %vm879_vm6 = vweird.f32 %v872_v45 }
 0x3e3   :  { %1115 = vrot.lane.b32.xlu1 %v820_v20, %s3232_s12 }
 0x3e8   :  { %v3154_v17 = vpop.eup %3153 }
 0x3e9   :  { %v874_v30 = vmul.f32 %v3154_v17, %v872_v45  ;;  %vm880_vm5 = vweird.f32 %v3154_v17 }
 0x3ea   :  { %vm881_vm7 = vmor %vm879_vm6, %vm880_vm5 }
 0x3eb   :  { %v875_v29 = vmul.f32 %v3154_v17, %v874_v30  ;;  %v1034_v30 = vld [vmem:[%s4889_s1 + $0x40] sm:$0xff] }
 0x3ec   :  { %1261 = vmatpush.msrb.mxu2 %v1034_v30 }
 0x3ed   :  { %v876_v54 = vmul.f32 0.5, %v875_v29 }
 0x3ef   :  { %v877_v56 = vsub.f32 1.5, %v876_v54  ;;  %v1033_v54 = vld [vmem:[%s4889_s1 + $0x38] sm:$0xff] }
 0x3f0   :  { %1262 = vmatpush.msrb.mxu2 %v1033_v54 }
 0x3f1   :  { %v878_v57 = vmul.f32 %v3154_v17, %v877_v56 }
 0x3f3   :  { %v882_v2 = vsel %vm881_vm7, %v3154_v17, %v878_v57 }
 0x3f4   :  { %3026 = vpush %v882_v2 }
 0x400   :  { %v903_v5 = vpop.xlane.xlu2 %902 }
 0x401   :  { %v904_v11 = vrot.slane %v903_v5, 4 }
 0x402   :  { %v921_v4 = vpop.xlane.xlu0 %920 }
 0x403   :  { %v905_v43 = vadd.f32 %v904_v11, %v903_v5  ;;  %v922_v34 = vrot.slane %v921_v4, 4  ;;  %v1032_v11 = vld [vmem:[%s4889_s1 + $0x30] sm:$0xff] }
 0x404   :  { %1263 = vmatpush.msrb.mxu2 %v1032_v11 }
 0x405   :  { %v923_v6 = vadd.f32 %v922_v34, %v921_v4  ;;  %v906_v13 = vrot.slane %v905_v43, 2 }
 0x407   :  { %v907_v25 = vadd.f32 %v906_v13, %v905_v43  ;;  %v924_v8 = vrot.slane %v923_v6, 2 }
 0x409   :  { %v908_v22 = vrot.slane %v907_v25, 1  ;;  %v925_v16 = vadd.f32 %v924_v8, %v923_v6 }
 0x40b   :  { %v909_v19 = vadd.f32 %v908_v22, %v907_v25  ;;  %v926_v62 = vrot.slane %v925_v16, 1 }
 0x40d   :  { %3028 = vpush %v909_v19  ;;  %v927_v20 = vadd.f32 %v926_v62, %v925_v16 }
 0x40f   :  { %3030 = vpush %v927_v20 }
 0x425   :  { %s3027_s22 = spop %3026 }
 0x426   :  { %v884_v39 = vstv %s3027_s22 }
 0x427   :  { %v885_v31 = vmul.f32 %v884_v39, %v868_v28  ;;  %v886_v44 = vmul.f32 %v884_v39, %v869_v35  ;;  %v887_v15 = vmul.f32 %v884_v39, %v870_v37 }
 0x429   :  { %v888_v40 = vadd.f32 %v3715_v50, %v885_v31  ;;  %v890_v26 = vadd.f32 %v3715_v50, %v887_v15  ;;  %v889_v49 = vadd.f32 %v3715_v50, %v886_v44 }
 0x42b   :  { %v891_v45 = vmul.f32 %v3357_v55, %v888_v40  ;;  %v3793_v17 = vmul.f32 %v3379_v1, %v890_v26  ;;  %v1059_v2 = vrot.slane %v889_v49, 7 }
 0x42d   :  { %1119 = vrot.lane.b32.xlu0 %v891_v45, %s3232_s12  ;;  %v1093_v29 = vrot.slane %v891_v45, 1  ;;  %v1057_v56 = vrot.slane %v891_v45, 7  ;;  %v1061_v57 = vrot.slane %v3793_v17, 7  ;;  %v1097_v36 = vrot.slane %v3793_v17, 1 }
 0x42f   :  { %v1094_v5 = vsel %vm58_vm0, %v1091_v58, %v1093_v29  ;;  %v3813_v4 = vsel %vm4892_vm9, %v1055_v41, %v1057_v56  ;;  %v3816_v43 = vsel %vm4892_vm9, %v1057_v56, %v1059_v2  ;;  %v3821_v34 = vsel %vm4892_vm9, %v1059_v2, %v1061_v57 }
 0x430   :  { %1154 = vrot.lane.b32.xlu1 %v1094_v5, %s3233_s15  ;;  %v1095_v58 = vrot.slane %v889_v49, 1 }
 0x432   :  { %v1096_v6 = vsel %vm58_vm0, %v1093_v29, %v1095_v58  ;;  %v1098_v41 = vsel %vm58_vm0, %v1095_v58, %v1097_v36 }
 0x435   :  { %1121 = vrot.lane.b32.xlu0 %v889_v49, %s3232_s12  ;;  %v972_v13 = vpop.xlane.xlu1 %971 }
 0x436   :  { %v973_v8 = vrot.slane %v972_v13, 4 }
 0x437   :  { %v990_v25 = vpop.xlane.xlu0 %989 }
 0x438   :  { %1156 = vrot.lane.b32.xlu1 %v1096_v6, %s3233_s15  ;;  %v991_v22 = vrot.slane %v990_v25, 4  ;;  %v974_v19 = vadd.f32 %v973_v8, %v972_v13 }
 0x43a   :  { %v992_v62 = vadd.f32 %v991_v22, %v990_v25  ;;  %v975_v28 = vrot.slane %v974_v19, 2 }
 0x43c   :  { %v993_v37 = vrot.slane %v992_v62, 2  ;;  %v976_v31 = vadd.f32 %v975_v28, %v974_v19 }
 0x43d   :  { %1123 = vrot.lane.b32.xlu0 %v3793_v17, %s3232_s12 }
 0x43e   :  { %s3029_s10 = spop %3028  ;;  %v994_v44 = vadd.f32 %v993_v37, %v992_v62  ;;  %v977_v48 = vrot.slane %v976_v31, 1 }
 0x43f   :  { %s3829_s11 = smul.f32 0.0036764706, %s3029_s10 }
 0x440   :  { %1158 = vrot.lane.b32.xlu1 %v1098_v41, %s3233_s15  ;;  %s3031_s13 = spop %3030  ;;  %v995_v49 = vrot.slane %v994_v44, 1  ;;  %v978_v29 = vadd.f32 %v977_v48, %v976_v31 }
 0x441   :  { %s930_s14 = smul.f32 %s3829_s11, %s3829_s11  ;;  %v933_v56 = vstv %s3829_s11 }
 0x442   :  { %s929_s16 = smul.f32 0.0036764706, %s3031_s13  ;;  %v996_v54 = vadd.f32 %v995_v49, %v994_v44  ;;  %v935_v2 = vsub.f32 %v3670_v61, %v933_v56  ;;  %v936_v5 = vsub.f32 %v3682_v10, %v933_v56  ;;  %v1118_v44 = vpop.permute.xlu2 %1117 }
 0x443   :  { %v1188_v17 = vsel %vm136_vm2, %v3749_v42, %v1118_v44 }
 0x444   :  { %s931_s17 = ssub.f32 %s929_s16, %s930_s14  ;;  %v938_v58 = vmul.f32 %v3702_v12, %v935_v2  ;;  %v939_v6 = vmul.f32 %v3702_v12, %v936_v5 }
 0x446   :  { %s932_s18 = smax.f32 %s3231_s4, %s931_s17 }
 0x447   :  { %s940_s19 = sadd.f32 1e-08, %s932_s18 }
 0x449   :  { %v941_v16 = vstv %s940_s19 }
 0x44a   :  { %3155 = vrsqrt.f32 %v941_v16  ;;  %v1151_v20 = vpop.permute.xlu0 %1150  ;;  %vm948_vm12 = vweird.f32 %v941_v16 }
 0x44d   :  { %v1114_v21 = vpop.permute.xlu1 %1113 }
 0x44e   :  { %v1186_v24 = vsel %vm136_vm2, %v1087_v23, %v1114_v21 }
 0x44f   :  { %v1199_v27 = vsel %vm1198_vm8, %v1186_v24, %v1151_v20 }
 0x450   :  { %v3156_v35 = vpop.eup %3155  ;;  %2972 = vmatmul.msk.f32.vlgmr.msrb.gmra.mxu2 %vm1211_vm10, %v1199_v27 }
 0x451   :  { %v943_v38 = vmul.f32 %v3156_v35, %v941_v16  ;;  %vm949_vm11 = vweird.f32 %v3156_v35 }
 0x452   :  { %v1153_v40 = vpop.permute.xlu0 %1152  ;;  %vm950_vm4 = vmor %vm948_vm12, %vm949_vm11 }
 0x453   :  { %v944_v39 = vmul.f32 %v3156_v35, %v943_v38 }
 0x455   :  { %v1116_v15 = vpop.permute.xlu1 %1115  ;;  %v945_v14 = vmul.f32 0.5, %v944_v39 }
 0x456   :  { %v1187_v33 = vsel %vm136_vm2, %v3754_v63, %v1116_v15  ;;  %v934_v63 = vsub.f32 %v3673_v3, %v933_v56 }
 0x457   :  { %v1200_v9 = vsel %vm1198_vm8, %v1187_v33, %v1153_v40  ;;  %v946_v26 = vsub.f32 1.5, %v945_v14 }
 0x458   :  { %2973 = vmatmul.msk.f32.gmra.mxu2 %vm1211_vm10, %v1200_v9  ;;  %v937_v11 = vmul.f32 %v3702_v12, %v934_v63 }
 0x459   :  { %v947_v45 = vmul.f32 %v3156_v35, %v946_v26 }
 0x45b   :  { %v951_v30 = vsel %vm950_vm4, %v3156_v35, %v947_v45 }
 0x45c   :  { %3032 = vpush %v951_v30 }
 0x45d   :  { %3034 = vpush %v978_v29 }
 0x45e   :  { %3036 = vpush %v996_v54 }
 0x48d   :  { %s3033_s20 = spop %3032 }
 0x48e   :  { %v953_v41 = vstv %s3033_s20  ;;  %s3035_s21 = spop %3034 }
 0x48f   :  { %v954_v13 = vmul.f32 %v953_v41, %v937_v11  ;;  %v955_v25 = vmul.f32 %v953_v41, %v938_v58  ;;  %v956_v8 = vmul.f32 %v953_v41, %v939_v6  ;;  %s3855_s22 = smul.f32 0.0036764706, %s3035_s21  ;;  %s3037_s23 = spop %3036 }
 0x490   :  { %s998_s25 = smul.f32 0.0036764706, %s3037_s23 }
 0x491   :  { %v957_v61 = vadd.f32 %v3715_v50, %v954_v13  ;;  %v958_v3 = vadd.f32 %v3715_v50, %v955_v25  ;;  %v959_v10 = vadd.f32 %v3715_v50, %v956_v8  ;;  %s999_s26 = smul.f32 %s3855_s22, %s3855_s22  ;;  %v1002_v2 = vstv %s3855_s22 }
 0x492   :  { %v1003_v5 = vsub.f32 %v3705_v7, %v1002_v2  ;;  %v1005_v11 = vsub.f32 %v3722_v18, %v1002_v2 }
 0x493   :  { %v3863_v22 = vmul.f32 %v3379_v1, %v959_v10  ;;  %s1000_s27 = ssub.f32 %s998_s25, %s999_s26  ;;  %v960_v16 = vmul.f32 %v3357_v55, %v957_v61  ;;  %v1101_v19 = vrot.slane %v958_v3, 1  ;;  %v1065_v20 = vrot.slane %v958_v3, 7 }
 0x494   :  { %v1006_v58 = vmul.f32 %v3702_v12, %v1003_v5  ;;  %v1008_v41 = vmul.f32 %v3702_v12, %v1005_v11 }
 0x495   :  { %s1001_s28 = smax.f32 %s3231_s4, %s1000_s27  ;;  %1125 = vrot.lane.b32.xlu1 %v960_v16, %s3232_s12  ;;  %v1099_v62 = vrot.slane %v960_v16, 1  ;;  %v1063_v21 = vrot.slane %v960_v16, 7  ;;  %v1067_v23 = vrot.slane %v3863_v22, 7  ;;  %v1103_v37 = vrot.slane %v3863_v22, 1 }
 0x496   :  { %s1009_s29 = sadd.f32 1e-08, %s1001_s28 }
 0x497   :  { %v1102_v24 = vsel %vm58_vm0, %v1099_v62, %v1101_v19  ;;  %v1100_v27 = vsel %vm58_vm0, %v1097_v36, %v1099_v62  ;;  %v3874_v28 = vsel %vm4892_vm9, %v1063_v21, %v1065_v20  ;;  %v3882_v38 = vsel %vm4892_vm9, %v1061_v57, %v1063_v21 }
 0x498   :  { %v1010_v35 = vstv %s1009_s29  ;;  %1162 = vrot.lane.b32.xlu0 %v1102_v24, %s3233_s15  ;;  %1160 = vrot.lane.b32.xlu2 %v1100_v27, %s3233_s15  ;;  %v3887_v39 = vsel %vm4892_vm9, %v1065_v20, %v1067_v23  ;;  %v1104_v36 = vsel %vm58_vm0, %v1101_v19, %v1103_v37 }
 0x499   :  { %3157 = vrsqrt.f32 %v1010_v35  ;;  %vm1017_vm14 = vweird.f32 %v1010_v35 }
 0x49d   :  { %1164 = vrot.lane.b32.xlu1 %v1104_v36, %s3233_s15 }
 0x49f   :  { %v3158_v31 = vpop.eup %3157  ;;  %v1120_v9 = vpop.permute.xlu0 %1119 }
 0x4a0   :  { %v1012_v15 = vmul.f32 %v3158_v31, %v1010_v35  ;;  %1129 = vrot.lane.b32.xlu0 %v3863_v22, %s3232_s12  ;;  %1127 = vrot.lane.b32.xlu2 %v958_v3, %s3232_s12  ;;  %vm1018_vm13 = vweird.f32 %v3158_v31  ;;  %v1189_v49 = vsel %vm136_vm2, %v3813_v4, %v1120_v9  ;;  %v1004_v4 = vsub.f32 %v3694_v52, %v1002_v2 }
 0x4a1   :  { %vm1019_vm5 = vmor %vm1017_vm14, %vm1018_vm13 }
 0x4a2   :  { %v1155_v57 = vpop.permute.xlu1 %1154  ;;  %v1013_v14 = vmul.f32 %v3158_v31, %v1012_v15  ;;  %v1007_v6 = vmul.f32 %v3702_v12, %v1004_v4 }
 0x4a3   :  { %v1201_v40 = vsel %vm1198_vm8, %v1188_v17, %v1155_v57 }
 0x4a4   :  { %2974 = vmatmul.msk.f32.gmra.mxu2 %vm1211_vm10, %v1201_v40  ;;  %v1014_v33 = vmul.f32 0.5, %v1013_v14 }
 0x4a6   :  { %v1015_v26 = vsub.f32 1.5, %v1014_v33 }
 0x4a7   :  { %v1122_v29 = vpop.permute.xlu0 %1121 }
 0x4a8   :  { %v1016_v48 = vmul.f32 %v3158_v31, %v1015_v26  ;;  %v1190_v54 = vsel %vm136_vm2, %v3816_v43, %v1122_v29 }
 0x4aa   :  { %v1157_v45 = vpop.permute.xlu1 %1156  ;;  %v1020_v30 = vsel %vm1019_vm5, %v3158_v31, %v1016_v48 }
 0x4ab   :  { %3038 = vpush %v1020_v30  ;;  %v1202_v42 = vsel %vm1198_vm8, %v1189_v49, %v1157_v45 }
 0x4ac   :  { %2975 = vmatmul.msk.f32.gmra.mxu2 %vm1211_vm10, %v1202_v42 }
 0x4af   :  { %v1124_v24 = vpop.permute.xlu0 %1123 }
 0x4b0   :  { %v1191_v27 = vsel %vm136_vm2, %v3821_v34, %v1124_v24 }
 0x4b2   :  { %v1159_v56 = vpop.permute.xlu1 %1158 }
 0x4b3   :  { %v1203_v63 = vsel %vm1198_vm8, %v1190_v54, %v1159_v56 }
 0x4b4   :  { %2976 = vmatmul.msk.f32.gmra.mxu2 %vm1211_vm10, %v1203_v63 }
 0x4d3   :  { %v1265_v9 = vpop.f32.mrf.mxu2 }
 0x4db   :  { %v1268_v26 = vpop.f32.mrf.mxu2 }
 0x4dc   :  { %s3039_s30 = spop %3038  ;;  %v3953_v48 = vmax.f32 %v1268_v26, 0.0 }
 0x4dd   :  { %v1022_v43 = vstv %s3039_s30 }
 0x4de   :  { %v1023_v13 = vmul.f32 %v1022_v43, %v1006_v58  ;;  %v1024_v25 = vmul.f32 %v1022_v43, %v1007_v6  ;;  %v1025_v8 = vmul.f32 %v1022_v43, %v1008_v41  ;;  %v1332_v45 = vmul.f32 %v3953_v48, %v3953_v48 }
 0x4e0   :  { %v1026_v61 = vadd.f32 %v3715_v50, %v1023_v13  ;;  %v1028_v3 = vadd.f32 %v3715_v50, %v1025_v8  ;;  %v1027_v7 = vadd.f32 %v3715_v50, %v1024_v25  ;;  %v1335_v63 = vsel %vm136_vm2, %v1332_v45, 0.0 }
 0x4e2   :  { %v1029_v52 = vmul.f32 %v3357_v55, %v1026_v61  ;;  %v3918_v18 = vmul.f32 %v3379_v1, %v1028_v3  ;;  %v1071_v19 = vrot.slane %v1027_v7, 7  ;;  %v1107_v22 = vrot.slane %v1027_v7, 1 }
 0x4e4   :  { %v1105_v10 = vrot.slane %v1029_v52, 1  ;;  %v1069_v16 = vrot.slane %v1029_v52, 7  ;;  %v1073_v12 = vrot.slane %v3918_v18, 7  ;;  %v1109_v36 = vrot.slane %v3918_v18, 1 }
 0x4e6   :  { %v1106_v62 = vsel %vm58_vm0, %v1103_v37, %v1105_v10  ;;  %v1070_v20 = vsel %vm4892_vm9, %v1067_v23, %v1069_v16  ;;  %v3927_v50 = vsel %vm4892_vm9, %v1069_v16, %v1071_v19  ;;  %v3930_v21 = vsel %vm4892_vm9, %v1071_v19, %v1073_v12 }
 0x4e7   :  { %1166 = vrot.lane.b32.xlu2 %v1106_v62, %s3233_s15  ;;  %v1108_v23 = vsel %vm58_vm0, %v1105_v10, %v1107_v22  ;;  %v1110_v31 = vsel %vm58_vm0, %v1107_v22, %v1109_v36  ;;  %v1112_v3 = vsel %vm58_vm0, %v1109_v36, 0.0 }
 0x4ef   :  { %1131 = vrot.lane.b32.xlu2 %v1029_v52, %s3232_s12 }
 0x4f2   :  { %v1161_v35 = vpop.permute.xlu2 %1160 }
 0x4f3   :  { %v1204_v37 = vsel %vm1198_vm8, %v1191_v27, %v1161_v35 }
 0x4f4   :  { %2977 = vmatmul.msk.f32.gmra.mxu2 %vm1211_vm10, %v1204_v37 }
 0x4f7   :  { %1168 = vrot.lane.b32.xlu2 %v1108_v23, %s3233_s15 }
 0x4fa   :  { %v1128_v57 = vpop.permute.xlu2 %1127 }
 0x4fb   :  { %v1193_v40 = vsel %vm136_vm2, %v3874_v28, %v1128_v57  ;;  %v1317_v28 = vsel %vm136_vm2, %v3953_v48, 0.0 }
 0x4ff   :  { %1133 = vrot.lane.b32.xlu2 %v1027_v7, %s3232_s12 }
 0x507   :  { %1170 = vrot.lane.b32.xlu2 %v1110_v31, %s3233_s15  ;;  %v1126_v44 = vpop.permute.xlu1 %1125 }
 0x508   :  { %v1192_v34 = vsel %vm136_vm2, %v3882_v38, %v1126_v44  ;;  %v1301_v38 = vmax.f32 %v1265_v9, 0.0 }
 0x50a   :  { %v1163_v15 = vpop.permute.xlu0 %1162  ;;  %v3956_v49 = vmul.f32 %v3357_v55, %v1301_v38 }
 0x50b   :  { %v1205_v17 = vsel %vm1198_vm8, %v1192_v34, %v1163_v15 }
 0x50c   :  { %2978 = vmatmul.msk.f32.gmra.mxu2 %vm1211_vm10, %v1205_v17  ;;  %v1331_v29 = vmul.f32 %v3956_v49, %v3956_v49  ;;  %v1316_v56 = vsel %vm136_vm2, %v3956_v49, 0.0 }
 0x50d   :  { %v1318_v2 = vadd.f32 %v1317_v28, %v1316_v56 }
 0x50e   :  { %v1334_v11 = vsel %vm136_vm2, %v1331_v29, 0.0 }
 0x50f   :  { %1135 = vrot.lane.b32.xlu2 %v3918_v18, %s3232_s12  ;;  %v1165_v14 = vpop.permute.xlu1 %1164  ;;  %v1336_v6 = vadd.f32 %v1335_v63, %v1334_v11 }
 0x510   :  { %v1206_v33 = vsel %vm1198_vm8, %v1193_v40, %v1165_v14 }
 0x512   :  { %v1130_v13 = vpop.permute.xlu0 %1129 }
 0x513   :  { %v1194_v25 = vsel %vm136_vm2, %v3887_v39, %v1130_v13 }
 0x514   :  { %2979 = vmatmul.msk.f32.gmra.mxu2 %vm1211_vm10, %v1206_v33 }
 0x527   :  { %v1271_v30 = vpop.f32.mrf.mxu2 }
 0x528   :  { %v1303_v42 = vmax.f32 %v1271_v30, 0.0 }
 0x52a   :  { %v3965_v54 = vmul.f32 %v3379_v1, %v1303_v42 }
 0x52c   :  { %v1319_v5 = vsel %vm136_vm2, %v3965_v54, 0.0  ;;  %v1333_v4 = vmul.f32 %v3965_v54, %v3965_v54 }
 0x52d   :  { %v1320_v58 = vadd.f32 %v1319_v5, %v1318_v2 }
 0x52e   :  { %v1337_v41 = vsel %vm136_vm2, %v1333_v4, 0.0 }
 0x52f   :  { %1321 = vadd.xlane.f32.xlu1 %v1320_v58  ;;  %v1338_v43 = vadd.f32 %v1337_v41, %v1336_v6  ;;  %v1274_v62 = vpop.f32.mrf.mxu2 }
 0x530   :  { %v1304_v27 = vmax.f32 %v1274_v62, 0.0 }
 0x531   :  { %1339 = vadd.xlane.f32.xlu0 %v1338_v43 }
 0x537   :  { %v1277_v24 = vpop.f32.mrf.mxu2 }
 0x538   :  { %v3989_v35 = vmax.f32 %v1277_v24, 0.0 }
 0x53a   :  { %v1403_v37 = vmul.f32 %v3989_v35, %v3989_v35 }
 0x53c   :  { %v1406_v34 = vsel %vm136_vm2, %v1403_v37, 0.0 }
 0x541   :  { %v1167_v8 = vpop.permute.xlu2 %1166 }
 0x542   :  { %v1207_v61 = vsel %vm1198_vm8, %v1194_v25, %v1167_v8 }
 0x543   :  { %2980 = vmatmul.msk.f32.gmra.mxu2 %vm1211_vm10, %v1207_v61 }
 0x548   :  { %1172 = vrot.lane.b32.xlu1 %v1112_v3, %s3233_s15 }
 0x549   :  { %v1132_v7 = vpop.permute.xlu2 %1131 }
 0x54a   :  { %v1195_v52 = vsel %vm136_vm2, %v1070_v20, %v1132_v7  ;;  %v3992_v20 = vmul.f32 %v3357_v55, %v1304_v27 }
 0x54c   :  { %v1402_v36 = vmul.f32 %v3992_v20, %v3992_v20  ;;  %v1387_v44 = vsel %vm136_vm2, %v3992_v20, 0.0 }
 0x54e   :  { %v1405_v14 = vsel %vm136_vm2, %v1402_v36, 0.0 }
 0x54f   :  { %v1407_v33 = vadd.f32 %v1406_v34, %v1405_v14 }
 0x551   :  { %v1169_v18 = vpop.permute.xlu2 %1168 }
 0x552   :  { %v1208_v10 = vsel %vm1198_vm8, %v1195_v52, %v1169_v18 }
 0x553   :  { %2981 = vmatmul.msk.f32.gmra.mxu2 %vm1211_vm10, %v1208_v10 }
 0x559   :  { %v1134_v16 = vpop.permute.xlu2 %1133 }
 0x55a   :  { %v1196_v39 = vsel %vm136_vm2, %v3927_v50, %v1134_v16  ;;  %v1388_v50 = vsel %vm136_vm2, %v3989_v35, 0.0 }
 0x55b   :  { %v1389_v15 = vadd.f32 %v1388_v50, %v1387_v44 }
 0x561   :  { %v1171_v12 = vpop.permute.xlu2 %1170 }
 0x562   :  { %v1209_v19 = vsel %vm1198_vm8, %v1196_v39, %v1171_v12 }
 0x563   :  { %2982 = vmatmul.msk.f32.gmra.mxu2 %vm1211_vm10, %v1209_v19 }
 0x569   :  { %v1136_v43 = vpop.permute.xlu2 %1135 }
 0x56a   :  { %v1197_v13 = vsel %vm136_vm2, %v3930_v21, %v1136_v43 }
 0x577   :  { %v1280_v22 = vpop.f32.mrf.mxu2 }
 0x578   :  { %v1306_v23 = vmax.f32 %v1280_v22, 0.0 }
 0x57a   :  { %v4001_v31 = vmul.f32 %v3379_v1, %v1306_v23 }
 0x57c   :  { %v1390_v17 = vsel %vm136_vm2, %v4001_v31, 0.0  ;;  %v1404_v57 = vmul.f32 %v4001_v31, %v4001_v31 }
 0x57d   :  { %v1391_v40 = vadd.f32 %v1390_v17, %v1389_v15 }
 0x57e   :  { %v1408_v9 = vsel %vm136_vm2, %v1404_v57, 0.0 }
 0x57f   :  { %1392 = vadd.xlane.f32.xlu0 %v1391_v40  ;;  %v1409_v26 = vadd.f32 %v1408_v9, %v1407_v33 }
 0x581   :  { %1410 = vadd.xlane.f32.xlu2 %v1409_v26 }
 0x58f   :  { %v1283_v41 = vpop.f32.mrf.mxu2 }
 0x590   :  { %v1307_v3 = vmax.f32 %v1283_v41, 0.0 }
 0x592   :  { %v4019_v52 = vmul.f32 %v3357_v55, %v1307_v3 }
 0x594   :  { %v1456_v21 = vsel %vm136_vm2, %v4019_v52, 0.0  ;;  %v1471_v27 = vmul.f32 %v4019_v52, %v4019_v52 }
 0x596   :  { %v1474_v23 = vsel %vm136_vm2, %v1471_v27, 0.0 }
 0x597   :  { %v1286_v61 = vpop.f32.mrf.mxu2 }
 0x598   :  { %v4016_v7 = vmax.f32 %v1286_v61, 0.0 }
 0x59a   :  { %v1457_v16 = vsel %vm136_vm2, %v4016_v7, 0.0  ;;  %v1472_v19 = vmul.f32 %v4016_v7, %v4016_v7 }
 0x59b   :  { %v1458_v12 = vadd.f32 %v1457_v16, %v1456_v21 }
 0x59c   :  { %v1475_v22 = vsel %vm136_vm2, %v1472_v19, 0.0 }
 0x59d   :  { %v1476_v36 = vadd.f32 %v1475_v22, %v1474_v23 }
 0x5a2   :  { %v1322_v38 = vpop.xlane.xlu1 %1321 }
 0x5a3   :  { %v1323_v45 = vrot.slane %v1322_v38, 4 }
 0x5a4   :  { %v1340_v30 = vpop.xlane.xlu0 %1339 }
 0x5a5   :  { %v1324_v42 = vadd.f32 %v1323_v45, %v1322_v38  ;;  %v1341_v28 = vrot.slane %v1340_v30, 4 }
 0x5a7   :  { %v1325_v29 = vrot.slane %v1324_v42, 2  ;;  %v1342_v56 = vadd.f32 %v1341_v28, %v1340_v30 }
 0x5a9   :  { %v1326_v63 = vadd.f32 %v1325_v29, %v1324_v42  ;;  %v1343_v2 = vrot.slane %v1342_v56, 2 }
 0x5ab   :  { %v1327_v5 = vrot.slane %v1326_v63, 1  ;;  %v1344_v4 = vadd.f32 %v1343_v2, %v1342_v56 }
 0x5ad   :  { %v1328_v11 = vadd.f32 %v1327_v5, %v1326_v63  ;;  %v1345_v58 = vrot.slane %v1344_v4, 1 }
 0x5af   :  { %3040 = vpush %v1328_v11  ;;  %v1346_v6 = vadd.f32 %v1345_v58, %v1344_v4 }
 0x5b1   :  { %3042 = vpush %v1346_v6 }
 0x5ba   :  { %v1173_v25 = vpop.permute.xlu1 %1172 }
 0x5bb   :  { %v1210_v8 = vsel %vm1198_vm8, %v1197_v13, %v1173_v25  ;;  %v4051_v25 = vld [vmem:[%s4890_s2 + $0x2] ss:$0 sm:$0xff] }
 0x5bc   :  { %2983 = vmatmul.msk.f32.gmra.mxu2 %vm1211_vm10, %v1210_v8 }
 0x5c6   :  { %v1289_v18 = vpop.f32.mrf.mxu2 }
 0x5c7   :  { %v1309_v10 = vmax.f32 %v1289_v18, 0.0 }
 0x5c9   :  { %v4024_v39 = vmul.f32 %v3379_v1, %v1309_v10 }
 0x5cb   :  { %v1459_v62 = vsel %vm136_vm2, %v4024_v39, 0.0  ;;  %v1473_v37 = vmul.f32 %v4024_v39, %v4024_v39 }
 0x5cc   :  { %v1460_v24 = vadd.f32 %v1459_v62, %v1458_v12 }
 0x5cd   :  { %v1477_v50 = vsel %vm136_vm2, %v1473_v37, 0.0 }
 0x5ce   :  { %1461 = vadd.xlane.f32.xlu0 %v1460_v24  ;;  %v1478_v44 = vadd.f32 %v1477_v50, %v1476_v36 }
 0x5d6   :  { %1479 = vadd.xlane.f32.xlu0 %v1478_v44  ;;  %v1292_v8 = vpop.f32.mrf.mxu2 }
 0x5d7   :  { %v1310_v21 = vmax.f32 %v1292_v8, 0.0 }
 0x5d9   :  { %v4070_v62 = vmul.f32 %v3357_v55, %v1310_v21 }
 0x5db   :  { %v1540_v23 = vmul.f32 %v4070_v62, %v4070_v62 }
 0x5e0   :  { %s3041_s5 = spop %3040 }
 0x5e1   :  { %s4039_s6 = smul.f32 0.0036764706, %s3041_s5 }
 0x5e2   :  { %s3043_s7 = spop %3042 }
 0x5e3   :  { %s1349_s8 = smul.f32 %s4039_s6, %s4039_s6  ;;  %v1352_v6 = vstv %s4039_s6 }
 0x5e4   :  { %s1348_s9 = smul.f32 0.0036764706, %s3043_s7  ;;  %v1353_v41 = vsub.f32 %v3956_v49, %v1352_v6  ;;  %v1354_v43 = vsub.f32 %v3953_v48, %v1352_v6  ;;  %v1355_v13 = vsub.f32 %v3965_v54, %v1352_v6 }
 0x5e6   :  { %s1350_s10 = ssub.f32 %s1348_s9, %s1349_s8  ;;  %v1357_v61 = vmul.f32 %v4051_v25, %v1353_v41  ;;  %v1358_v3 = vmul.f32 %v4051_v25, %v1354_v43  ;;  %v1359_v18 = vmul.f32 %v4051_v25, %v1355_v13  ;;  %v1295_v16 = vpop.f32.mrf.mxu2 }
 0x5e7   :  { %v4067_v12 = vmax.f32 %v1295_v16, 0.0 }
 0x5e8   :  { %s1351_s11 = smax.f32 %s3231_s4, %s1350_s10 }
 0x5e9   :  { %s1360_s13 = sadd.f32 1e-08, %s1351_s11  ;;  %v1541_v24 = vmul.f32 %v4067_v12, %v4067_v12  ;;  %v1526_v22 = vsel %vm136_vm2, %v4067_v12, 0.0 }
 0x5eb   :  { %v1361_v34 = vstv %s1360_s13 }
 0x5ec   :  { %3159 = vrsqrt.f32 %v1361_v34  ;;  %vm1368_vm7 = vweird.f32 %v1361_v34 }
 0x5f2   :  { %v3160_v15 = vpop.eup %3159  ;;  %v1393_v17 = vpop.xlane.xlu0 %1392 }
 0x5f3   :  { %v1363_v57 = vmul.f32 %v3160_v15, %v1361_v34  ;;  %v1394_v14 = vrot.slane %v1393_v17, 4  ;;  %vm1369_vm6 = vweird.f32 %v3160_v15 }
 0x5f4   :  { %v1411_v40 = vpop.xlane.xlu2 %1410  ;;  %vm1370_vm11 = vmor %vm1368_vm7, %vm1369_vm6 }
 0x5f5   :  { %v1395_v33 = vadd.f32 %v1394_v14, %v1393_v17  ;;  %v1412_v9 = vrot.slane %v1411_v40, 4  ;;  %v1364_v26 = vmul.f32 %v3160_v15, %v1363_v57  ;;  %v1544_v17 = vsel %vm136_vm2, %v1541_v24, 0.0 }
 0x5f7   :  { %v1413_v38 = vadd.f32 %v1412_v9, %v1411_v40  ;;  %v1365_v45 = vmul.f32 0.5, %v1364_v26  ;;  %v1396_v30 = vrot.slane %v1395_v33, 2  ;;  %v1543_v26 = vsel %vm136_vm2, %v1540_v23, 0.0 }
 0x5f9   :  { %v1414_v42 = vrot.slane %v1413_v38, 2  ;;  %v1366_v28 = vsub.f32 1.5, %v1365_v45  ;;  %v1397_v29 = vadd.f32 %v1396_v30, %v1395_v33  ;;  %v1545_v45 = vadd.f32 %v1544_v17, %v1543_v26 }
 0x5fb   :  { %v1367_v56 = vmul.f32 %v3160_v15, %v1366_v28  ;;  %v1398_v63 = vrot.slane %v1397_v29, 1  ;;  %v1415_v2 = vadd.f32 %v1414_v42, %v1413_v38 }
 0x5fd   :  { %v1371_v5 = vsel %vm1370_vm11, %v3160_v15, %v1367_v56  ;;  %v1399_v4 = vadd.f32 %v1398_v63, %v1397_v29  ;;  %v1416_v11 = vrot.slane %v1415_v2, 1  ;;  %v1525_v15 = vsel %vm136_vm2, %v4070_v62, 0.0 }
 0x5fe   :  { %3044 = vpush %v1371_v5  ;;  %v1527_v14 = vadd.f32 %v1526_v22, %v1525_v15 }
 0x5ff   :  { %3046 = vpush %v1399_v4  ;;  %v1417_v58 = vadd.f32 %v1416_v11, %v1415_v2 }
 0x601   :  { %3048 = vpush %v1417_v58 }
 0x62f   :  { %s3045_s17 = spop %3044 }
 0x630   :  { %v1373_v10 = vstv %s3045_s17  ;;  %s3047_s18 = spop %3046 }
 0x631   :  { %v4056_v49 = vmul.f32 %v1373_v10, %v1357_v61  ;;  %v4058_v48 = vmul.f32 %v1373_v10, %v1358_v3  ;;  %v4060_v54 = vmul.f32 %v1373_v10, %v1359_v18  ;;  %s4062_s19 = smul.f32 0.0036764706, %s3047_s18 }
 0x632   :  { %s3049_s20 = spop %3048 }
 0x633   :  { %s1420_s21 = smul.f32 %s4062_s19, %s4062_s19  ;;  %v1423_v18 = vstv %s4062_s19 }
 0x634   :  { %s1419_s22 = smul.f32 0.0036764706, %s3049_s20  ;;  %v1424_v10 = vsub.f32 %v3992_v20, %v1423_v18  ;;  %v1425_v16 = vsub.f32 %v3989_v35, %v1423_v18  ;;  %v1426_v21 = vsub.f32 %v4001_v31, %v1423_v18 }
 0x636   :  { %s1421_s23 = ssub.f32 %s1419_s22, %s1420_s21  ;;  %v1428_v24 = vmul.f32 %v4051_v25, %v1425_v16 }
 0x638   :  { %s1422_s25 = smax.f32 %s3231_s4, %s1421_s23 }
 0x639   :  { %s1430_s26 = sadd.f32 1e-08, %s1422_s25 }
 0x63b   :  { %v1431_v19 = vstv %s1430_s26 }
 0x63c   :  { %3161 = vrsqrt.f32 %v1431_v19  ;;  %vm1438_vm4 = vweird.f32 %v1431_v19 }
 0x63f   :  { %v1298_v27 = vpop.f32.mrf.mxu2 }
 0x640   :  { %v1312_v37 = vmax.f32 %v1298_v27, 0.0  ;;  %v1429_v27 = vmul.f32 %v4051_v25, %v1426_v21 }
 0x641   :  { %v1462_v50 = vpop.xlane.xlu0 %1461 }
 0x642   :  { %v3162_v36 = vpop.eup %3161  ;;  %v4079_v44 = vmul.f32 %v3379_v1, %v1312_v37  ;;  %v1463_v34 = vrot.slane %v1462_v50, 4 }
 0x643   :  { %v1433_v57 = vmul.f32 %v3162_v36, %v1431_v19  ;;  %vm1439_vm12 = vweird.f32 %v3162_v36  ;;  %v1427_v19 = vmul.f32 %v4051_v25, %v1424_v10 }
 0x644   :  { %v1464_v40 = vadd.f32 %v1463_v34, %v1462_v50  ;;  %v1528_v33 = vsel %vm136_vm2, %v4079_v44, 0.0  ;;  %v1542_v9 = vmul.f32 %v4079_v44, %v4079_v44  ;;  %vm1440_vm13 = vmor %vm1438_vm4, %vm1439_vm12 }
 0x645   :  { %v1529_v38 = vadd.f32 %v1528_v33, %v1527_v14  ;;  %v1434_v30 = vmul.f32 %v3162_v36, %v1433_v57 }
 0x646   :  { %v1546_v42 = vsel %vm136_vm2, %v1542_v9, 0.0  ;;  %v1465_v28 = vrot.slane %v1464_v40, 2 }
 0x647   :  { %1530 = vadd.xlane.f32.xlu1 %v1529_v38  ;;  %v1547_v29 = vadd.f32 %v1546_v42, %v1545_v45  ;;  %v1435_v56 = vmul.f32 0.5, %v1434_v30 }
 0x648   :  { %v1466_v63 = vadd.f32 %v1465_v28, %v1464_v40 }
 0x649   :  { %v1480_v2 = vpop.xlane.xlu0 %1479  ;;  %1548 = vadd.xlane.f32.xlu0 %v1547_v29  ;;  %v1436_v5 = vsub.f32 1.5, %v1435_v56 }
 0x64a   :  { %v1481_v4 = vrot.slane %v1480_v2, 4  ;;  %v1467_v11 = vrot.slane %v1466_v63, 1 }
 0x64b   :  { %v1437_v58 = vmul.f32 %v3162_v36, %v1436_v5 }
 0x64c   :  { %v1482_v6 = vadd.f32 %v1481_v4, %v1480_v2  ;;  %v1468_v41 = vadd.f32 %v1467_v11, %v1466_v63 }
 0x64d   :  { %v1441_v43 = vsel %vm1440_vm13, %v3162_v36, %v1437_v58 }
 0x64e   :  { %v1483_v13 = vrot.slane %v1482_v6, 2  ;;  %3050 = vpush %v1441_v43 }
 0x64f   :  { %3052 = vpush %v1468_v41 }
 0x650   :  { %v1484_v8 = vadd.f32 %v1483_v13, %v1482_v6  ;;  %v4115_v6 = vld [vmem:[%s4890_s2 + $0x3] ss:$0 sm:$0xff] }
 0x651   :  { %v1379_v18 = vadd.f32 %v4115_v6, %v4058_v48 }
 0x652   :  { %v1485_v61 = vrot.slane %v1484_v8, 1 }
 0x654   :  { %v1486_v3 = vadd.f32 %v1485_v61, %v1484_v8  ;;  %v1380_v8 = vadd.f32 %v4115_v6, %v4060_v54 }
 0x656   :  { %3054 = vpush %v1486_v3 }
 0x67f   :  { %s3051_s27 = spop %3050 }
 0x680   :  { %v1443_v37 = vstv %s3051_s27  ;;  %s3053_s28 = spop %3052 }
 0x681   :  { %v4097_v22 = vmul.f32 %v1443_v37, %v1427_v19  ;;  %v4099_v23 = vmul.f32 %v1443_v37, %v1428_v24  ;;  %v4101_v50 = vmul.f32 %v1443_v37, %v1429_v27  ;;  %s4103_s29 = smul.f32 0.0036764706, %s3053_s28  ;;  %v1383_v19 = vmul.f32 %v3379_v1, %v1380_v8 }
 0x683   :  { %s1489_s30 = smul.f32 %s4103_s29, %s4103_s29  ;;  %v1492_v5 = vstv %s4103_s29 }
 0x684   :  { %v1493_v4 = vsub.f32 %v4019_v52, %v1492_v5  ;;  %v1494_v11 = vsub.f32 %v4016_v7, %v1492_v5  ;;  %v1495_v58 = vsub.f32 %v4024_v39, %v1492_v5  ;;  %v1378_v7 = vadd.f32 %v4115_v6, %v4056_v49  ;;  %v1607_v5 = vld [vmem:[%s4889_s1 + $0x80] sm:$0xff] }
 0x686   :  { %v1496_v41 = vmul.f32 %v4051_v25, %v1493_v4  ;;  %v1497_v43 = vmul.f32 %v4051_v25, %v1494_v11  ;;  %v1498_v13 = vmul.f32 %v4051_v25, %v1495_v58  ;;  %v1381_v27 = vmul.f32 %v3357_v55, %v1378_v7  ;;  %v1606_v4 = vld [vmem:[%s4889_s1 + $0x78] sm:$0xff]  ;;  %v1605_v11 = vld [vmem:[%s4889_s1 + $0x70] sm:$0xff]  ;;  %v1604_v58 = vld [vmem:[%s4889_s1 + $0x68] sm:$0xff] }
 0x687   :  { %s3055_s5 = spop %3054 }
 0x688   :  { %s1488_s6 = smul.f32 0.0036764706, %s3055_s5 }
 0x68a   :  { %s1490_s7 = ssub.f32 %s1488_s6, %s1489_s30 }
 0x68c   :  { %s1491_s8 = smax.f32 %s3231_s4, %s1490_s7 }
 0x68d   :  { %s1499_s9 = sadd.f32 1e-08, %s1491_s8 }
 0x68f   :  { %v1500_v35 = vstv %s1499_s9 }
 0x690   :  { %3163 = vrsqrt.f32 %v1500_v35  ;;  %vm1507_vm5 = vweird.f32 %v1500_v35 }
 0x696   :  { %v3164_v20 = vpop.eup %3163 }
 0x697   :  { %v1502_v31 = vmul.f32 %v3164_v20, %v1500_v35  ;;  %vm1508_vm14 = vweird.f32 %v3164_v20 }
 0x698   :  { %vm1509_vm6 = vmor %vm1507_vm5, %vm1508_vm14 }
 0x699   :  { %v1503_v36 = vmul.f32 %v3164_v20, %v1502_v31 }
 0x69b   :  { %v1504_v34 = vmul.f32 0.5, %v1503_v36 }
 0x69d   :  { %v1505_v15 = vsub.f32 1.5, %v1504_v34 }
 0x69f   :  { %v1506_v17 = vmul.f32 %v3164_v20, %v1505_v15 }
 0x6a1   :  { %v1510_v57 = vsel %vm1509_vm6, %v3164_v20, %v1506_v17 }
 0x6a2   :  { %3056 = vpush %v1510_v57 }
 0x6ba   :  { %v1531_v14 = vpop.xlane.xlu1 %1530 }
 0x6bb   :  { %v1532_v40 = vrot.slane %v1531_v14, 4 }
 0x6bc   :  { %v1549_v33 = vpop.xlane.xlu0 %1548 }
 0x6bd   :  { %v1533_v9 = vadd.f32 %v1532_v40, %v1531_v14  ;;  %v1550_v26 = vrot.slane %v1549_v33, 4 }
 0x6bf   :  { %v1534_v38 = vrot.slane %v1533_v9, 2  ;;  %v1551_v45 = vadd.f32 %v1550_v26, %v1549_v33 }
 0x6c1   :  { %v1552_v30 = vrot.slane %v1551_v45, 2  ;;  %v1535_v42 = vadd.f32 %v1534_v38, %v1533_v9 }
 0x6c3   :  { %v1536_v28 = vrot.slane %v1535_v42, 1  ;;  %v1553_v29 = vadd.f32 %v1552_v30, %v1551_v45 }
 0x6c5   :  { %v1537_v56 = vadd.f32 %v1536_v28, %v1535_v42  ;;  %v1554_v63 = vrot.slane %v1553_v29, 1 }
 0x6c7   :  { %3058 = vpush %v1537_v56  ;;  %v1555_v2 = vadd.f32 %v1554_v63, %v1553_v29 }
 0x6c9   :  { %3060 = vpush %v1555_v2  ;;  %v1608_v2 = vld [vmem:[%s4889_s1 + $0x88] sm:$0xff] }
 0x6ca   :  { %1725 = vmatpush.msrb.mxu3 %v1608_v2 }
 0x6cc   :  { %1726 = vmatpush.msrb.mxu3 %v1607_v5 }
 0x6ce   :  { %1727 = vmatpush.msrb.mxu3 %v1606_v4 }
 0x6d0   :  { %1728 = vmatpush.msrb.mxu3 %v1605_v11 }
 0x6d2   :  { %1729 = vmatpush.msrb.mxu3 %v1604_v58 }
 0x6d3   :  { %s3057_s13 = spop %3056 }
 0x6d4   :  { %v1512_v52 = vstv %s3057_s13 }
 0x6d5   :  { %v1513_v39 = vmul.f32 %v1512_v52, %v1496_v41  ;;  %v1514_v61 = vmul.f32 %v1512_v52, %v1497_v43  ;;  %v1515_v3 = vmul.f32 %v1512_v52, %v1498_v13  ;;  %v1603_v41 = vld [vmem:[%s4889_s1 + $0x60] sm:$0xff] }
 0x6d6   :  { %1730 = vmatpush.msrb.mxu3 %v1603_v41 }
 0x6d7   :  { %v1516_v10 = vadd.f32 %v4115_v6, %v1513_v39  ;;  %v1517_v16 = vadd.f32 %v4115_v6, %v1514_v61  ;;  %v1518_v21 = vadd.f32 %v4115_v6, %v1515_v3  ;;  %v1449_v3 = vadd.f32 %v4115_v6, %v4101_v50 }
 0x6d9   :  { %v1592_v24 = vadd.f32 %v1517_v16, %v1379_v18  ;;  %v1521_v54 = vmul.f32 %v3379_v1, %v1518_v21  ;;  %v1519_v49 = vmul.f32 %v3357_v55, %v1516_v10  ;;  %v1447_v10 = vadd.f32 %v4115_v6, %v4097_v22 }
 0x6db   :  { %v1598_v37 = vmul.f32 0.5, %v1592_v24  ;;  %v1593_v35 = vadd.f32 %v1521_v54, %v1383_v19  ;;  %v1591_v20 = vadd.f32 %v1519_v49, %v1381_v27  ;;  %v1452_v24 = vmul.f32 %v3379_v1, %v1449_v3 }
 0x6dc   :  { %v1450_v54 = vmul.f32 %v3357_v55, %v1447_v10 }
 0x6dd   :  { %v4133_v31 = vmul.f32 0.5, %v1593_v35  ;;  %v4135_v48 = vmul.f32 0.5, %v1591_v20  ;;  %v1636_v36 = vrot.slane %v1598_v37, 1  ;;  %v1618_v15 = vrot.slane %v1598_v37, 7 }
 0x6df   :  { %1652 = vrot.lane.b32.xlu1 %v4133_v31, %s3232_s12  ;;  %1648 = vrot.lane.b32.xlu0 %v4135_v48, %s3232_s12  ;;  %v1635_v34 = vrot.slane %v4135_v48, 1  ;;  %v1620_v17 = vrot.slane %v4133_v31, 7  ;;  %v1617_v57 = vrot.slane %v4135_v48, 7  ;;  %v1638_v9 = vrot.slane %v4133_v31, 1 }
 0x6e1   :  { %v1637_v14 = vsel %vm58_vm0, %v1635_v34, %v1636_v36  ;;  %v4148_v40 = vsel %vm4892_vm9, %v1618_v15, %v1620_v17  ;;  %v4154_v33 = vsel %vm4892_vm9, %v1617_v57, %v1618_v15  ;;  %v1639_v26 = vsel %vm58_vm0, %v1636_v36, %v1638_v9 }
 0x6e2   :  { %1667 = vrot.lane.b32.xlu2 %v1637_v14, %s3233_s15 }
 0x6e7   :  { %1650 = vrot.lane.b32.xlu0 %v1598_v37, %s3232_s12 }
 0x6ef   :  { %1669 = vrot.lane.b32.xlu0 %v1639_v26, %s3233_s15 }
 0x6f8   :  { %s3059_s14 = spop %3058 }
 0x6f9   :  { %s4162_s16 = smul.f32 0.0036764706, %s3059_s14 }
 0x6fa   :  { %s3061_s17 = spop %3060 }
 0x6fb   :  { %s1558_s18 = smul.f32 %s4162_s16, %s4162_s16  ;;  %v1561_v43 = vstv %s4162_s16 }
 0x6fc   :  { %s1557_s19 = smul.f32 0.0036764706, %s3061_s17  ;;  %v1562_v13 = vsub.f32 %v4070_v62, %v1561_v43  ;;  %v1563_v8 = vsub.f32 %v4067_v12, %v1561_v43  ;;  %v1564_v52 = vsub.f32 %v4079_v44, %v1561_v43  ;;  %v1448_v12 = vadd.f32 %v4115_v6, %v4099_v23 }
 0x6fd   :  { %v1634_v23 = vsel %vm4892_vm9, 0.0, %v1617_v57 }
 0x6fe   :  { %s1559_s20 = ssub.f32 %s1557_s19, %s1558_s18  ;;  %v1565_v7 = vmul.f32 %v4051_v25, %v1562_v13  ;;  %v1566_v39 = vmul.f32 %v4051_v25, %v1563_v8  ;;  %v1567_v61 = vmul.f32 %v4051_v25, %v1564_v52 }
 0x700   :  { %s1560_s21 = smax.f32 %s3231_s4, %s1559_s20 }
 0x701   :  { %s1568_s22 = sadd.f32 1e-08, %s1560_s21 }
 0x703   :  { %v1569_v38 = vstv %s1568_s22 }
 0x704   :  { %3165 = vrsqrt.f32 %v1569_v38  ;;  %vm1576_vm11 = vweird.f32 %v1569_v38 }
 0x70a   :  { %v3166_v45 = vpop.eup %3165 }
 0x70b   :  { %v1571_v30 = vmul.f32 %v3166_v45, %v1569_v38  ;;  %vm1577_vm7 = vweird.f32 %v3166_v45 }
 0x70c   :  { %vm1578_vm12 = vmor %vm1576_vm11, %vm1577_vm7 }
 0x70d   :  { %v1572_v42 = vmul.f32 %v3166_v45, %v1571_v30 }
 0x70f   :  { %v1573_v28 = vmul.f32 0.5, %v1572_v42 }
 0x711   :  { %v1574_v29 = vsub.f32 1.5, %v1573_v28 }
 0x713   :  { %v1575_v56 = vmul.f32 %v3166_v45, %v1574_v29 }
 0x715   :  { %v1579_v63 = vsel %vm1578_vm12, %v3166_v45, %v1575_v56 }
 0x716   :  { %3062 = vpush %v1579_v63 }
 0x747   :  { %s3063_s10 = spop %3062 }
 0x748   :  { %v1581_v18 = vstv %s3063_s10 }
 0x749   :  { %v1582_v16 = vmul.f32 %v1581_v18, %v1565_v7  ;;  %v1583_v62 = vmul.f32 %v1581_v18, %v1566_v39  ;;  %v1584_v21 = vmul.f32 %v1581_v18, %v1567_v61 }
 0x74b   :  { %v1585_v44 = vadd.f32 %v4115_v6, %v1582_v16  ;;  %v1586_v19 = vadd.f32 %v4115_v6, %v1583_v62  ;;  %v1587_v25 = vadd.f32 %v4115_v6, %v1584_v21  ;;  %v1668_v6 = vpop.permute.xlu2 %1667 }
 0x74d   :  { %v1590_v50 = vmul.f32 %v3379_v1, %v1587_v25  ;;  %v1588_v22 = vmul.f32 %v3357_v55, %v1585_v44  ;;  %v1595_v27 = vadd.f32 %v1586_v19, %v1448_v12 }
 0x74f   :  { %v1594_v49 = vadd.f32 %v1588_v22, %v1450_v54  ;;  %v1596_v37 = vadd.f32 %v1590_v50, %v1452_v24  ;;  %v1601_v35 = vmul.f32 0.5, %v1595_v27 }
 0x751   :  { %v1649_v20 = vpop.permute.xlu0 %1648  ;;  %v1600_v36 = vmul.f32 0.5, %v1594_v49  ;;  %v1602_v34 = vmul.f32 0.5, %v1596_v37  ;;  %v1642_v14 = vrot.slane %v1601_v35, 1  ;;  %v1624_v42 = vrot.slane %v1601_v35, 7  ;;  %v1653_v31 = vpop.permute.xlu1 %1652 }
 0x752   :  { %v1685_v15 = vsel %vm136_vm2, %v1634_v23, %v1649_v20 }
 0x753   :  { %1654 = vrot.lane.b32.xlu0 %v1600_v36, %s3232_s12  ;;  %v1691_v26 = vsel %vm1198_vm8, %v1685_v15, %v1668_v6  ;;  %v1644_v38 = vrot.slane %v1602_v34, 1  ;;  %v1640_v45 = vrot.slane %v1600_v36, 1  ;;  %v1622_v30 = vrot.slane %v1600_v36, 7 }
 0x754   :  { %2984 = vmatmul.msk.f32.vlgmr.msrb.gmra.mxu3 %vm1211_vm10, %v1691_v26  ;;  %v1626_v48 = vrot.slane %v1602_v34, 7 }
 0x755   :  { %v1647_v57 = vsel %vm58_vm0, %v1644_v38, 0.0  ;;  %v1641_v28 = vsel %vm58_vm0, %v1638_v9, %v1640_v45  ;;  %v1643_v29 = vsel %vm58_vm0, %v1640_v45, %v1642_v14  ;;  %v1645_v56 = vsel %vm58_vm0, %v1642_v14, %v1644_v38 }
 0x756   :  { %1677 = vrot.lane.b32.xlu1 %v1647_v57, %s3233_s15  ;;  %1671 = vrot.lane.b32.xlu2 %v1641_v28, %s3233_s15  ;;  %v1623_v63 = vsel %vm4892_vm9, %v1620_v17, %v1622_v30  ;;  %v1625_v2 = vsel %vm4892_vm9, %v1622_v30, %v1624_v42  ;;  %v1627_v5 = vsel %vm4892_vm9, %v1624_v42, %v1626_v48 }
 0x757   :  { %v1687_v17 = vsel %vm136_vm2, %v4148_v40, %v1653_v31 }
 0x759   :  { %v1651_v4 = vpop.permute.xlu0 %1650 }
 0x75a   :  { %v1686_v9 = vsel %vm136_vm2, %v4154_v33, %v1651_v4 }
 0x75b   :  { %1656 = vrot.lane.b32.xlu0 %v1601_v35, %s3232_s12 }
 0x75e   :  { %1673 = vrot.lane.b32.xlu2 %v1643_v29, %s3233_s15 }
 0x761   :  { %v1670_v11 = vpop.permute.xlu0 %1669 }
 0x762   :  { %v1692_v58 = vsel %vm1198_vm8, %v1686_v9, %v1670_v11 }
 0x763   :  { %1658 = vrot.lane.b32.xlu0 %v1602_v34, %s3232_s12  ;;  %2985 = vmatmul.msk.f32.gmra.mxu3 %vm1211_vm10, %v1692_v58 }
 0x766   :  { %1675 = vrot.lane.b32.xlu2 %v1645_v56, %s3233_s15 }
 0x7b0   :  { %v1672_v41 = vpop.permute.xlu2 %1671 }
 0x7b1   :  { %v1693_v43 = vsel %vm1198_vm8, %v1687_v17, %v1672_v41 }
 0x7b2   :  { %2986 = vmatmul.msk.f32.gmra.mxu3 %vm1211_vm10, %v1693_v43 }
 0x7b8   :  { %v1674_v13 = vpop.permute.xlu2 %1673 }
 0x7c0   :  { %v1676_v39 = vpop.permute.xlu2 %1675 }
 0x7c5   :  { %v1655_v33 = vpop.permute.xlu0 %1654 }
 0x7c6   :  { %v1688_v8 = vsel %vm136_vm2, %v1623_v63, %v1655_v33 }
 0x7c7   :  { %v1694_v52 = vsel %vm1198_vm8, %v1688_v8, %v1674_v13 }
 0x7c8   :  { %2987 = vmatmul.msk.f32.gmra.mxu3 %vm1211_vm10, %v1694_v52  ;;  %v1678_v18 = vpop.permute.xlu1 %1677 }
 0x7cd   :  { %v1657_v7 = vpop.permute.xlu0 %1656 }
 0x7ce   :  { %v1689_v61 = vsel %vm136_vm2, %v1625_v2, %v1657_v7 }
 0x7cf   :  { %v1695_v3 = vsel %vm1198_vm8, %v1689_v61, %v1676_v39 }
 0x7d0   :  { %2988 = vmatmul.msk.f32.gmra.mxu3 %vm1211_vm10, %v1695_v3 }
 0x7d5   :  { %v1659_v40 = vpop.permute.xlu0 %1658 }
 0x7d6   :  { %v1690_v10 = vsel %vm136_vm2, %v1627_v5, %v1659_v40 }
 0x7d7   :  { %v1696_v16 = vsel %vm1198_vm8, %v1690_v10, %v1678_v18  ;;  %v1732_v62 = vpop.f32.mrf.mxu3 }
 0x7d8   :  { %2989 = vmatmul.msk.f32.gmra.mxu3 %vm1211_vm10, %v1696_v16  ;;  %v1750_v12 = vmax.f32 %v1732_v62, 0.0 }
 0x7da   :  { %v4249_v19 = vmul.f32 %v3357_v55, %v1750_v12 }
 0x7dc   :  { %v1774_v22 = vmul.f32 %v4249_v19, %v4249_v19  ;;  %v1759_v49 = vsel %vm136_vm2, %v4249_v19, 0.0 }
 0x7de   :  { %v1777_v36 = vsel %vm136_vm2, %v1774_v22, 0.0 }
 0x7e6   :  { %v1735_v21 = vpop.f32.mrf.mxu3 }
 0x7e7   :  { %v4246_v44 = vmax.f32 %v1735_v21, 0.0 }
 0x7e9   :  { %v1775_v25 = vmul.f32 %v4246_v44, %v4246_v44  ;;  %v1760_v54 = vsel %vm136_vm2, %v4246_v44, 0.0 }
 0x7ea   :  { %v1761_v35 = vadd.f32 %v1760_v54, %v1759_v49 }
 0x7eb   :  { %v1778_v37 = vsel %vm136_vm2, %v1775_v25, 0.0 }
 0x7ec   :  { %v1779_v6 = vadd.f32 %v1778_v37, %v1777_v36 }
 0x835   :  { %v1738_v24 = vpop.f32.mrf.mxu3 }
 0x836   :  { %v1752_v50 = vmax.f32 %v1738_v24, 0.0 }
 0x838   :  { %v4258_v27 = vmul.f32 %v3379_v1, %v1752_v50 }
 0x83a   :  { %v1762_v23 = vsel %vm136_vm2, %v4258_v27, 0.0  ;;  %v1776_v20 = vmul.f32 %v4258_v27, %v4258_v27 }
 0x83b   :  { %v1763_v34 = vadd.f32 %v1762_v23, %v1761_v35 }
 0x83c   :  { %v1780_v15 = vsel %vm136_vm2, %v1776_v20, 0.0 }
 0x83d   :  { %1764 = vadd.xlane.f32.xlu2 %v1763_v34  ;;  %v1781_v14 = vadd.f32 %v1780_v15, %v1779_v6 }
 0x83f   :  { %1782 = vadd.xlane.f32.xlu0 %v1781_v14 }
 0x84b   :  { %v1741_v26 = vpop.f32.mrf.mxu3 }
 0x84c   :  { %v1753_v45 = vmax.f32 %v1741_v26, 0.0 }
 0x84e   :  { %v4272_v42 = vmul.f32 %v3357_v55, %v1753_v45 }
 0x850   :  { %v1845_v56 = vmul.f32 %v4272_v42, %v4272_v42  ;;  %v1830_v2 = vsel %vm136_vm2, %v4272_v42, 0.0 }
 0x852   :  { %v1848_v58 = vsel %vm136_vm2, %v1845_v56, 0.0 }
 0x853   :  { %v1744_v38 = vpop.f32.mrf.mxu3 }
 0x854   :  { %v4269_v30 = vmax.f32 %v1744_v38, 0.0 }
 0x856   :  { %v1846_v48 = vmul.f32 %v4269_v30, %v4269_v30  ;;  %v1831_v29 = vsel %vm136_vm2, %v4269_v30, 0.0 }
 0x857   :  { %v1832_v4 = vadd.f32 %v1831_v29, %v1830_v2 }
 0x858   :  { %v1849_v5 = vsel %vm136_vm2, %v1846_v48, 0.0 }
 0x859   :  { %v1850_v17 = vadd.f32 %v1849_v5, %v1848_v58 }
 0x85b   :  { %v1747_v57 = vpop.f32.mrf.mxu3 }
 0x85c   :  { %v1755_v28 = vmax.f32 %v1747_v57, 0.0 }
 0x85e   :  { %v4281_v63 = vmul.f32 %v3379_v1, %v1755_v28 }
 0x860   :  { %v1833_v9 = vsel %vm136_vm2, %v4281_v63, 0.0  ;;  %v1847_v11 = vmul.f32 %v4281_v63, %v4281_v63 }
 0x861   :  { %v1834_v31 = vadd.f32 %v1833_v9, %v1832_v4  ;;  %v4304_v4 = vld [vmem:[%s4890_s2 + $0x4] ss:$0 sm:$0xff] }
 0x862   :  { %v1851_v41 = vsel %vm136_vm2, %v1847_v11, 0.0 }
 0x863   :  { %1835 = vadd.xlane.f32.xlu1 %v1834_v31  ;;  %v1852_v43 = vadd.f32 %v1851_v41, %v1850_v17 }
 0x865   :  { %1853 = vadd.xlane.f32.xlu2 %v1852_v43 }
 0x8b0   :  { %v1765_v13 = vpop.xlane.xlu2 %1764 }
 0x8b1   :  { %v1766_v33 = vrot.slane %v1765_v13, 4 }
 0x8b2   :  { %v1783_v8 = vpop.xlane.xlu0 %1782 }
 0x8b3   :  { %v1767_v52 = vadd.f32 %v1766_v33, %v1765_v13  ;;  %v1784_v7 = vrot.slane %v1783_v8, 4 }
 0x8b5   :  { %v1768_v39 = vrot.slane %v1767_v52, 2  ;;  %v1785_v61 = vadd.f32 %v1784_v7, %v1783_v8 }
 0x8b7   :  { %v1786_v3 = vrot.slane %v1785_v61, 2  ;;  %v1769_v40 = vadd.f32 %v1768_v39, %v1767_v52 }
 0x8b9   :  { %v1770_v18 = vrot.slane %v1769_v40, 1  ;;  %v1787_v10 = vadd.f32 %v1786_v3, %v1785_v61 }
 0x8bb   :  { %v1771_v16 = vadd.f32 %v1770_v18, %v1769_v40  ;;  %v1788_v62 = vrot.slane %v1787_v10, 1 }
 0x8bd   :  { %3064 = vpush %v1771_v16  ;;  %v1789_v21 = vadd.f32 %v1788_v62, %v1787_v10 }
 0x8bf   :  { %3066 = vpush %v1789_v21 }
 0x8d6   :  { %v1836_v12 = vpop.xlane.xlu1 %1835 }
 0x8d7   :  { %v1837_v24 = vrot.slane %v1836_v12, 4 }
 0x8d8   :  { %v1854_v25 = vpop.xlane.xlu2 %1853 }
 0x8d9   :  { %v1855_v50 = vrot.slane %v1854_v25, 4  ;;  %v1838_v22 = vadd.f32 %v1837_v24, %v1836_v12 }
 0x8db   :  { %v1856_v49 = vadd.f32 %v1855_v50, %v1854_v25  ;;  %v1839_v37 = vrot.slane %v1838_v22, 2 }
 0x8dd   :  { %v1857_v23 = vrot.slane %v1856_v49, 2  ;;  %v1840_v34 = vadd.f32 %v1839_v37, %v1838_v22 }
 0x8df   :  { %v1858_v6 = vadd.f32 %v1857_v23, %v1856_v49  ;;  %v1841_v26 = vrot.slane %v1840_v34, 1  ;;  %v1900_v23 = vld [vmem:[%s4889_s1 + $0xb0] sm:$0xff] }
 0x8e1   :  { %v1859_v38 = vrot.slane %v1858_v6, 1  ;;  %v1842_v57 = vadd.f32 %v1841_v26, %v1840_v34 }
 0x8e3   :  { %v1860_v28 = vadd.f32 %v1859_v38, %v1858_v6  ;;  %v1899_v6 = vld [vmem:[%s4889_s1 + $0xa8] sm:$0xff] }
 0x8ee   :  { %s3065_s11 = spop %3064 }
 0x8ef   :  { %s4292_s13 = smul.f32 0.0036764706, %s3065_s11  ;;  %s3239_s11 = smov 64  }
 0x8f0   :  { %s3067_s14 = spop %3066 }
 0x8f1   :  { %s1792_s16 = smul.f32 %s4292_s13, %s4292_s13  ;;  %v1795_v29 = vstv %s4292_s13  ;;  %s3240_s13 = smov 72  }
 0x8f2   :  { %s1791_s17 = smul.f32 0.0036764706, %s3067_s14  ;;  %v1796_v56 = vsub.f32 %v4249_v19, %v1795_v29  ;;  %v1797_v2 = vsub.f32 %v4246_v44, %v1795_v29  ;;  %v1798_v5 = vsub.f32 %v4258_v27, %v1795_v29  ;;  %v4312_v19 = vld [vmem:[%s4890_s2 + $0x5] ss:$0 sm:$0xff] }
 0x8f4   :  { %s1793_s18 = ssub.f32 %s1791_s17, %s1792_s16  ;;  %v1800_v9 = vmul.f32 %v4304_v4, %v1796_v56  ;;  %v1801_v11 = vmul.f32 %v4304_v4, %v1797_v2  ;;  %v1802_v58 = vmul.f32 %v4304_v4, %v1798_v5  ;;  %s3242_s16 = smov 88  }
 0x8f5   :  { %s3243_s17 = smov 96  }
 0x8f6   :  { %s1794_s19 = smax.f32 %s3231_s4, %s1793_s18 }
 0x8f7   :  { %s1803_s20 = sadd.f32 1e-08, %s1794_s19 }
 0x8f9   :  { %v1804_v54 = vstv %s1803_s20 }
 0x8fa   :  { %3167 = vrsqrt.f32 %v1804_v54  ;;  %vm1811_vm13 = vweird.f32 %v1804_v54 }
 0x900   :  { %v3168_v35 = vpop.eup %3167 }
 0x901   :  { %v1806_v20 = vmul.f32 %v3168_v35, %v1804_v54  ;;  %vm1812_vm4 = vweird.f32 %v3168_v35 }
 0x902   :  { %vm1813_vm14 = vmor %vm1811_vm13, %vm1812_vm4 }
 0x903   :  { %v1807_v36 = vmul.f32 %v3168_v35, %v1806_v20 }
 0x905   :  { %v1808_v15 = vmul.f32 0.5, %v1807_v36 }
 0x907   :  { %v1809_v14 = vsub.f32 1.5, %v1808_v15  ;;  %v1898_v15 = vld [vmem:[%s4889_s1 + $0xa0] sm:$0xff] }
 0x909   :  { %v1810_v45 = vmul.f32 %v3168_v35, %v1809_v14 }
 0x90b   :  { %v1814_v48 = vsel %vm1813_vm14, %v3168_v35, %v1810_v45  ;;  %v1901_v35 = vld [vmem:[%s4889_s1 + $0xb8] sm:$0xff] }
 0x90c   :  { %3068 = vpush %v1814_v48  ;;  %2018 = vmatpush.msra.mxu3 %v1901_v35 }
 0x90d   :  { %3070 = vpush %v1842_v57 }
 0x90e   :  { %3072 = vpush %v1860_v28  ;;  %2019 = vmatpush.msra.mxu3 %v1900_v23 }
 0x910   :  { %2020 = vmatpush.msra.mxu3 %v1899_v6 }
 0x912   :  { %2021 = vmatpush.msra.mxu3 %v1898_v15 }
 0x93d   :  { %s3069_s23 = spop %3068 }
 0x93e   :  { %v1816_v44 = vstv %s3069_s23  ;;  %s3071_s27 = spop %3070 }
 0x93f   :  { %v1817_v27 = vmul.f32 %v1816_v44, %v1800_v9  ;;  %v1818_v31 = vmul.f32 %v1816_v44, %v1801_v11  ;;  %v1819_v17 = vmul.f32 %v1816_v44, %v1802_v58  ;;  %s4314_s28 = smul.f32 0.0036764706, %s3071_s27  ;;  %s3073_s29 = spop %3072 }
 0x940   :  { %s1862_s30 = smul.f32 0.0036764706, %s3073_s29 }
 0x941   :  { %v1821_v41 = vadd.f32 %v4312_v19, %v1817_v27  ;;  %v1823_v43 = vadd.f32 %v4312_v19, %v1819_v17  ;;  %s1863_s5 = smul.f32 %s4314_s28, %s4314_s28  ;;  %v1822_v13 = vadd.f32 %v4312_v19, %v1818_v31  ;;  %v1866_v37 = vstv %s4314_s28 }
 0x942   :  { %v1867_v20 = vsub.f32 %v4272_v42, %v1866_v37  ;;  %v1868_v36 = vsub.f32 %v4269_v30, %v1866_v37  ;;  %v1869_v34 = vsub.f32 %v4281_v63, %v1866_v37 }
 0x943   :  { %v4322_v33 = vmul.f32 %v3379_v1, %v1823_v43  ;;  %s1864_s6 = ssub.f32 %s1862_s30, %s1863_s5  ;;  %1943 = vrot.lane.b32.xlu2 %v1822_v13, %s3232_s12  ;;  %v4326_v8 = vmul.f32 %v3357_v55, %v1821_v41  ;;  %v1929_v52 = vrot.slane %v1822_v13, 1  ;;  %v1911_v61 = vrot.slane %v1822_v13, 7  ;;  %v1897_v41 = vld [vmem:[%s4889_s1 + $0x98] sm:$0xff]  ;;  %v1896_v13 = vld [vmem:[%s4889_s1 + $0x90] sm:$0xff] }
 0x944   :  { %v1870_v14 = vmul.f32 %v4304_v4, %v1867_v20  ;;  %v1871_v26 = vmul.f32 %v4304_v4, %v1868_v36  ;;  %v1872_v42 = vmul.f32 %v4304_v4, %v1869_v34  ;;  %2022 = vmatpush.msra.mxu3 %v1897_v41 }
 0x945   :  { %s1865_s7 = smax.f32 %s3231_s4, %s1864_s6  ;;  %1941 = vrot.lane.b32.xlu0 %v4326_v8, %s3232_s12  ;;  %v1928_v7 = vrot.slane %v4326_v8, 1  ;;  %v1910_v39 = vrot.slane %v4326_v8, 7  ;;  %v1913_v3 = vrot.slane %v4322_v33, 7  ;;  %v1931_v16 = vrot.slane %v4322_v33, 1 }
 0x946   :  { %s1873_s8 = sadd.f32 1e-08, %s1865_s7  ;;  %2023 = vmatpush.msra.mxu3 %v1896_v13 }
 0x947   :  { %v1930_v40 = vsel %vm58_vm0, %v1928_v7, %v1929_v52  ;;  %v4338_v18 = vsel %vm4892_vm9, %v1910_v39, %v1911_v61  ;;  %v4343_v62 = vsel %vm4892_vm9, %v1911_v61, %v1913_v3  ;;  %v1932_v21 = vsel %vm58_vm0, %v1929_v52, %v1931_v16 }
 0x948   :  { %v1874_v10 = vstv %s1873_s8  ;;  %1960 = vrot.lane.b32.xlu1 %v1930_v40, %s3233_s15  ;;  %v1927_v7 = vsel %vm4892_vm9, 0.0, %v1910_v39 }
 0x949   :  { %3169 = vrsqrt.f32 %v1874_v10  ;;  %vm1881_vm6 = vweird.f32 %v1874_v10 }
 0x94d   :  { %1962 = vrot.lane.b32.xlu0 %v1932_v21, %s3233_s15 }
 0x94f   :  { %v3170_v12 = vpop.eup %3169 }
 0x950   :  { %v1876_v25 = vmul.f32 %v3170_v12, %v1874_v10  ;;  %vm1882_vm5 = vweird.f32 %v3170_v12 }
 0x951   :  { %vm1883_vm7 = vmor %vm1881_vm6, %vm1882_vm5 }
 0x952   :  { %v1877_v24 = vmul.f32 %v3170_v12, %v1876_v25 }
 0x954   :  { %v1878_v50 = vmul.f32 0.5, %v1877_v24 }
 0x955   :  { %1945 = vrot.lane.b32.xlu0 %v4322_v33, %s3232_s12 }
 0x956   :  { %v1879_v54 = vsub.f32 1.5, %v1878_v50 }
 0x958   :  { %v1880_v22 = vmul.f32 %v3170_v12, %v1879_v54 }
 0x95a   :  { %v1884_v49 = vsel %vm1883_vm7, %v3170_v12, %v1880_v22 }
 0x95b   :  { %3074 = vpush %v1884_v49 }
 0x98c   :  { %s3075_s19 = spop %3074 }
 0x98d   :  { %v1886_v30 = vstv %s3075_s19 }
 0x98e   :  { %v1887_v63 = vmul.f32 %v1886_v30, %v1870_v14  ;;  %v1888_v38 = vmul.f32 %v1886_v30, %v1871_v26  ;;  %v1889_v45 = vmul.f32 %v1886_v30, %v1872_v42 }
 0x990   :  { %v1890_v48 = vadd.f32 %v4312_v19, %v1887_v63  ;;  %v1891_v57 = vadd.f32 %v4312_v19, %v1888_v38  ;;  %v1892_v28 = vadd.f32 %v4312_v19, %v1889_v45 }
 0x992   :  { %v1895_v29 = vmul.f32 %v3379_v1, %v1892_v28  ;;  %v1893_v56 = vmul.f32 %v3357_v55, %v1890_v48  ;;  %v1935_v5 = vrot.slane %v1891_v57, 1  ;;  %v1917_v11 = vrot.slane %v1891_v57, 7 }
 0x994   :  { %1947 = vrot.lane.b32.xlu1 %v1893_v56, %s3232_s12  ;;  %v1933_v2 = vrot.slane %v1893_v56, 1  ;;  %v1915_v4 = vrot.slane %v1893_v56, 7  ;;  %v1919_v9 = vrot.slane %v1895_v29, 7  ;;  %v1937_v19 = vrot.slane %v1895_v29, 1 }
 0x996   :  { %v1934_v58 = vsel %vm58_vm0, %v1931_v16, %v1933_v2  ;;  %v1936_v44 = vsel %vm58_vm0, %v1933_v2, %v1935_v5  ;;  %v1918_v27 = vsel %vm4892_vm9, %v1915_v4, %v1917_v11  ;;  %v1916_v31 = vsel %vm4892_vm9, %v1913_v3, %v1915_v4 }
 0x997   :  { %1964 = vrot.lane.b32.xlu2 %v1934_v58, %s3233_s15  ;;  %1966 = vrot.lane.b32.xlu0 %v1936_v44, %s3233_s15  ;;  %v1920_v17 = vsel %vm4892_vm9, %v1917_v11, %v1919_v9  ;;  %v1938_v43 = vsel %vm58_vm0, %v1935_v5, %v1937_v19  ;;  %v1940_v33 = vsel %vm58_vm0, %v1937_v19, 0.0 }
 0x99c   :  { %1968 = vrot.lane.b32.xlu1 %v1938_v43, %s3233_s15 }
 0x99d   :  { %v1944_v10 = vpop.permute.xlu2 %1943 }
 0x99e   :  { %v1979_v21 = vsel %vm136_vm2, %v4338_v18, %v1944_v10 }
 0x99f   :  { %1949 = vrot.lane.b32.xlu2 %v1891_v57, %s3232_s12  ;;  %1951 = vrot.lane.b32.xlu0 %v1895_v29, %s3232_s12 }
 0x9a7   :  { %1970 = vrot.lane.b32.xlu2 %v1940_v33, %s3233_s15 }
 0x9b7   :  { %v1942_v52 = vpop.permute.xlu0 %1941 }
 0x9b8   :  { %v1978_v61 = vsel %vm136_vm2, %v1927_v7, %v1942_v52 }
 0x9ba   :  { %v1961_v3 = vpop.permute.xlu1 %1960 }
 0x9bb   :  { %v1984_v40 = vsel %vm1198_vm8, %v1978_v61, %v1961_v3 }
 0x9bc   :  { %2990 = vmatmul.msk.f32.vlgmr.msra.gmra.mxu3 %vm1211_vm10, %v1984_v40 }
 0x9bf   :  { %v1963_v16 = vpop.permute.xlu0 %1962 }
 0x9c0   :  { %v1985_v12 = vsel %vm1198_vm8, %v1979_v21, %v1963_v16 }
 0x9c4   :  { %2991 = vmatmul.msk.f32.gmra.mxu3 %vm1211_vm10, %v1985_v12 }
 0x9c7   :  { %v1946_v25 = vpop.permute.xlu0 %1945 }
 0x9c8   :  { %v1980_v8 = vsel %vm136_vm2, %v4343_v62, %v1946_v25 }
 0x9f1   :  { %v1965_v39 = vpop.permute.xlu2 %1964 }
 0x9f2   :  { %v1986_v24 = vsel %vm1198_vm8, %v1980_v8, %v1965_v39 }
 0x9f3   :  { %2992 = vmatmul.msk.f32.gmra.mxu3 %vm1211_vm10, %v1986_v24 }
 0x9f9   :  { %v1950_v18 = vpop.permute.xlu2 %1949 }
 0x9fa   :  { %v1982_v35 = vsel %vm136_vm2, %v1918_v27, %v1950_v18 }
 0xa01   :  { %v1971_v36 = vpop.permute.xlu2 %1970 }
 0xa06   :  { %v1948_v50 = vpop.permute.xlu1 %1947 }
 0xa07   :  { %v1981_v54 = vsel %vm136_vm2, %v1916_v31, %v1948_v50 }
 0xa09   :  { %v1967_v22 = vpop.permute.xlu0 %1966 }
 0xa0a   :  { %v1987_v49 = vsel %vm1198_vm8, %v1981_v54, %v1967_v22 }
 0xa0b   :  { %2993 = vmatmul.msk.f32.gmra.mxu3 %vm1211_vm10, %v1987_v49 }
 0xa0e   :  { %v1969_v37 = vpop.permute.xlu1 %1968 }
 0xa0f   :  { %v1988_v23 = vsel %vm1198_vm8, %v1982_v35, %v1969_v37 }
 0xa11   :  { %v1952_v62 = vpop.permute.xlu0 %1951 }
 0xa12   :  { %v1983_v20 = vsel %vm136_vm2, %v1920_v17, %v1952_v62 }
 0xa13   :  { %2994 = vmatmul.msk.f32.gmra.mxu3 %vm1211_vm10, %v1988_v23  ;;  %v1989_v34 = vsel %vm1198_vm8, %v1983_v20, %v1971_v36 }
 0xa1b   :  { %2995 = vmatmul.msk.f32.gmra.mxu3 %vm1211_vm10, %v1989_v34 }
 0xa3f   :  { %v2025_v6 = vpop.f32.mrf.mxu3 }
 0xa40   :  { %v2043_v14 = vmax.f32 %v2025_v6, 0.0 }
 0xa42   :  { %v4419_v42 = vmul.f32 %v3357_v55, %v2043_v14  ;;  %v2190_v14 = vld [vmem:[%s4889_s1 + $0xc8] sm:$0x1] }
 0xa43   :  { %2996 = vmatpush.msk.msrb.mxu0 %vm4892_vm9, %v2190_v14 }
 0xa44   :  { %v2067_v48 = vmul.f32 %v4419_v42, %v4419_v42  ;;  %v2052_v28 = vsel %vm622_vm15, %v4419_v42, 0.0 }
 0xa46   :  { %v2070_v4 = vsel %vm622_vm15, %v2067_v48, 0.0 }
 0xa47   :  { %v2028_v15 = vpop.f32.mrf.mxu3 }
 0xa48   :  { %v4416_v26 = vmax.f32 %v2028_v15, 0.0 }
 0xa4a   :  { %v2068_v30 = vmul.f32 %v4416_v26, %v4416_v26  ;;  %v2053_v45 = vsel %vm622_vm15, %v4416_v26, 0.0 }
 0xa4b   :  { %v2054_v56 = vadd.f32 %v2053_v45, %v2052_v28 }
 0xa4c   :  { %v2071_v29 = vsel %vm622_vm15, %v2068_v30, 0.0  ;;  %v2189_v30 = vld [vmem:[%s4889_s1 + $0xc0] sm:$0xff] }
 0xa4d   :  { %v2072_v11 = vadd.f32 %v2071_v29, %v2070_v4  ;;  %2229 = vmatpush.msrb.mxu0 %v2189_v30 }
 0xa76   :  { %v2031_v63 = vpop.f32.mrf.mxu3 }
 0xa77   :  { %v2045_v38 = vmax.f32 %v2031_v63, 0.0 }
 0xa79   :  { %v4428_v57 = vmul.f32 %v3379_v1, %v2045_v38 }
 0xa7b   :  { %v2055_v2 = vsel %vm622_vm15, %v4428_v57, 0.0  ;;  %v2069_v5 = vmul.f32 %v4428_v57, %v4428_v57 }
 0xa7c   :  { %v2056_v9 = vadd.f32 %v2055_v2, %v2054_v56 }
 0xa7d   :  { %v2073_v58 = vsel %vm622_vm15, %v2069_v5, 0.0 }
 0xa7e   :  { %2057 = vadd.xlane.f32.xlu1 %v2056_v9  ;;  %v2074_v44 = vadd.f32 %v2073_v58, %v2072_v11 }
 0xa80   :  { %2075 = vadd.xlane.f32.xlu0 %v2074_v44 }
 0xa8e   :  { %v2034_v19 = vpop.f32.mrf.mxu3 }
 0xa8f   :  { %v2046_v31 = vmax.f32 %v2034_v19, 0.0 }
 0xa91   :  { %v4442_v41 = vmul.f32 %v3357_v55, %v2046_v31 }
 0xa93   :  { %v2138_v7 = vmul.f32 %v4442_v41, %v4442_v41  ;;  %v2123_v3 = vsel %vm622_vm15, %v4442_v41, 0.0 }
 0xa95   :  { %v2141_v12 = vsel %vm622_vm15, %v2138_v7, 0.0 }
 0xa96   :  { %v2037_v27 = vpop.f32.mrf.mxu3 }
 0xa97   :  { %v4439_v17 = vmax.f32 %v2037_v27, 0.0 }
 0xa99   :  { %v2139_v43 = vmul.f32 %v4439_v17, %v4439_v17  ;;  %v2124_v52 = vsel %vm622_vm15, %v4439_v17, 0.0 }
 0xa9a   :  { %v2125_v10 = vadd.f32 %v2124_v52, %v2123_v3 }
 0xa9b   :  { %v2142_v40 = vsel %vm622_vm15, %v2139_v43, 0.0 }
 0xa9c   :  { %v2143_v8 = vadd.f32 %v2142_v40, %v2141_v12 }
 0xa9e   :  { %v2040_v13 = vpop.f32.mrf.mxu3 }
 0xa9f   :  { %v2048_v33 = vmax.f32 %v2040_v13, 0.0 }
 0xaa1   :  { %v4451_v61 = vmul.f32 %v3379_v1, %v2048_v33 }
 0xaa3   :  { %v2126_v16 = vsel %vm622_vm15, %v4451_v61, 0.0  ;;  %v2140_v21 = vmul.f32 %v4451_v61, %v4451_v61 }
 0xaa4   :  { %v2127_v25 = vadd.f32 %v2126_v16, %v2125_v10  ;;  %v3124_v10 = vld [vmem:[%s4890_s2 + $0x6] ss:$0 sm:$0xff] }
 0xaa5   :  { %v2144_v39 = vsel %vm622_vm15, %v2140_v21, 0.0  ;;  %v3125_v21 = vld [vmem:[%s4890_s2 + $0x7] ss:$0 sm:$0xff] }
 0xaa6   :  { %2128 = vadd.xlane.f32.xlu2 %v2127_v25  ;;  %v2145_v24 = vadd.f32 %v2144_v39, %v2143_v8 }
 0xaa8   :  { %2146 = vadd.xlane.f32.xlu1 %v2145_v24 }
 0xaf1   :  { %v2058_v50 = vpop.xlane.xlu1 %2057 }
 0xaf2   :  { %v2059_v54 = vrot.slane %v2058_v50, 4 }
 0xaf3   :  { %v2076_v22 = vpop.xlane.xlu0 %2075 }
 0xaf4   :  { %v2060_v49 = vadd.f32 %v2059_v54, %v2058_v50  ;;  %v2077_v18 = vrot.slane %v2076_v22, 4 }
 0xaf6   :  { %v2061_v37 = vrot.slane %v2060_v49, 2  ;;  %v2078_v35 = vadd.f32 %v2077_v18, %v2076_v22 }
 0xaf8   :  { %v2079_v23 = vrot.slane %v2078_v35, 2  ;;  %v2062_v62 = vadd.f32 %v2061_v37, %v2060_v49 }
 0xafa   :  { %v2063_v20 = vrot.slane %v2062_v62, 1  ;;  %v2080_v36 = vadd.f32 %v2079_v23, %v2078_v35 }
 0xafc   :  { %v2064_v34 = vadd.f32 %v2063_v20, %v2062_v62  ;;  %v2081_v6 = vrot.slane %v2080_v36, 1 }
 0xafe   :  { %3076 = vpush %v2064_v34  ;;  %v2082_v15 = vadd.f32 %v2081_v6, %v2080_v36 }
 0xb00   :  { %3078 = vpush %v2082_v15 }
 0xb19   :  { %v2129_v63 = vpop.xlane.xlu2 %2128 }
 0xb1a   :  { %v2130_v45 = vrot.slane %v2129_v63, 4 }
 0xb1b   :  { %v2147_v38 = vpop.xlane.xlu1 %2146 }
 0xb1c   :  { %v2148_v48 = vrot.slane %v2147_v38, 4  ;;  %v2131_v29 = vadd.f32 %v2130_v45, %v2129_v63 }
 0xb1e   :  { %v2149_v56 = vadd.f32 %v2148_v48, %v2147_v38  ;;  %v2132_v2 = vrot.slane %v2131_v29, 2 }
 0xb20   :  { %v2150_v4 = vrot.slane %v2149_v56, 2  ;;  %v2133_v58 = vadd.f32 %v2132_v2, %v2131_v29 }
 0xb22   :  { %v2151_v44 = vadd.f32 %v2150_v4, %v2149_v56  ;;  %v2134_v31 = vrot.slane %v2133_v58, 1 }
 0xb24   :  { %v2152_v43 = vrot.slane %v2151_v44, 1  ;;  %v2135_v52 = vadd.f32 %v2134_v31, %v2133_v58 }
 0xb26   :  { %v2153_v7 = vadd.f32 %v2152_v43, %v2151_v44 }
 0xb2f   :  { %s3077_s27 = spop %3076 }
 0xb30   :  { %s4469_s30 = smul.f32 0.006535948, %s3077_s27 }
 0xb31   :  { %s3079_s5 = spop %3078 }
 0xb32   :  { %s2085_s6 = smul.f32 %s4469_s30, %s4469_s30  ;;  %v2088_v3 = vstv %s4469_s30 }
 0xb33   :  { %s2084_s7 = smul.f32 0.006535948, %s3079_s5  ;;  %v2089_v40 = vsub.f32 %v4419_v42, %v2088_v3  ;;  %v2090_v42 = vsub.f32 %v4416_v26, %v2088_v3  ;;  %v2091_v24 = vsub.f32 %v4428_v57, %v2088_v3 }
 0xb35   :  { %s2086_s8 = ssub.f32 %s2084_s7, %s2085_s6  ;;  %v2093_v16 = vmul.f32 %v3124_v10, %v2089_v40  ;;  %v2094_v50 = vmul.f32 %v3124_v10, %v2090_v42  ;;  %v2095_v49 = vmul.f32 %v3124_v10, %v2091_v24 }
 0xb37   :  { %s2087_s9 = smax.f32 %s3231_s4, %s2086_s8  ;;  %s3236_s8 = smov 40  }
 0xb38   :  { %s2096_s10 = sadd.f32 1e-08, %s2087_s9  ;;  %s3237_s9 = smov 48  }
 0xb3a   :  { %v2097_v28 = vstv %s2096_s10  ;;  %s3238_s10 = smov 56  }
 0xb3b   :  { %3171 = vrsqrt.f32 %v2097_v28  ;;  %vm2104_vm11 = vweird.f32 %v2097_v28 }
 0xb41   :  { %v3172_v5 = vpop.eup %3171 }
 0xb42   :  { %v2099_v9 = vmul.f32 %v3172_v5, %v2097_v28  ;;  %vm2105_vm0 = vweird.f32 %v3172_v5 }
 0xb43   :  { %vm2106_vm12 = vmor %vm2104_vm11, %vm2105_vm0 }
 0xb44   :  { %v2100_v11 = vmul.f32 %v3172_v5, %v2099_v9 }
 0xb46   :  { %v2101_v19 = vmul.f32 0.5, %v2100_v11 }
 0xb48   :  { %v2102_v27 = vsub.f32 1.5, %v2101_v19 }
 0xb4a   :  { %v2103_v13 = vmul.f32 %v3172_v5, %v2102_v27 }
 0xb4c   :  { %v2107_v33 = vsel %vm2106_vm12, %v3172_v5, %v2103_v13 }
 0xb4d   :  { %3080 = vpush %v2107_v33 }
 0xb4e   :  { %3082 = vpush %v2135_v52 }
 0xb4f   :  { %3084 = vpush %v2153_v7 }
 0xb7e   :  { %s3081_s14 = spop %3080 }
 0xb7f   :  { %v2109_v12 = vstv %s3081_s14  ;;  %s3083_s18 = spop %3082  ;;  %s3241_s14 = smov 80  }
 0xb80   :  { %v2110_v25 = vmul.f32 %v2109_v12, %v2093_v16  ;;  %s4482_s19 = smul.f32 0.006535948, %s3083_s18  ;;  %s3085_s20 = spop %3084  ;;  %v2111_v54 = vmul.f32 %v2109_v12, %v2094_v50  ;;  %v2112_v18 = vmul.f32 %v2109_v12, %v2095_v49 }
 0xb81   :  { %s2155_s21 = smul.f32 0.006535948, %s3085_s20  ;;  %s3244_s18 = smov 104  }
 0xb82   :  { %v2114_v8 = vadd.f32 %v3125_v21, %v2110_v25  ;;  %s2156_s22 = smul.f32 %s4482_s19, %s4482_s19  ;;  %v2115_v26 = vadd.f32 %v3125_v21, %v2111_v54  ;;  %v2116_v35 = vadd.f32 %v3125_v21, %v2112_v18  ;;  %v2159_v15 = vstv %s4482_s19  ;;  %s3245_s19 = smov 112  }
 0xb83   :  { %v2160_v14 = vsub.f32 %v4442_v41, %v2159_v15  ;;  %v2161_v45 = vsub.f32 %v4439_v17, %v2159_v15  ;;  %v2162_v29 = vsub.f32 %v4451_v61, %v2159_v15 }
 0xb84   :  { %v2117_v39 = vmul.f32 %v3357_v55, %v2114_v8  ;;  %s2157_s23 = ssub.f32 %s2155_s21, %s2156_s22  ;;  %v2119_v57 = vmul.f32 %v3379_v1, %v2116_v35  ;;  %s2936_s21 = sshll.u32 %s4891_s3, 4  ;;  %s2937_s21 = int_to_ptr.hbm [resolvable:$true] %s2936_s21 }
 0xb85   :  { %v2163_v30 = vmul.f32 %v3124_v10, %v2160_v14  ;;  %v2164_v56 = vmul.f32 %v3124_v10, %v2161_v45  ;;  %v2165_v5 = vmul.f32 %v3124_v10, %v2162_v29 }
 0xb86   :  { %s2158_s25 = smax.f32 %s3231_s4, %s2157_s23  ;;  %2997 = vmatmul.msk.f32.vlgmr.msrb.gmra.mxu0 %vm622_vm15, %v2117_v39 }
 0xb87   :  { %s2166_s26 = sadd.f32 1e-08, %s2158_s25 }
 0xb89   :  { %v2167_v22 = vstv %s2166_s26 }
 0xb8a   :  { %3173 = vrsqrt.f32 %v2167_v22  ;;  %vm2174_vm13 = vweird.f32 %v2167_v22 }
 0xb8e   :  { %2998 = vmatmul.msk.f32.gmra.mxu0 %vm622_vm15, %v2115_v26 }
 0xb90   :  { %v3174_v37 = vpop.eup %3173 }
 0xb91   :  { %v2169_v23 = vmul.f32 %v3174_v37, %v2167_v22  ;;  %vm2175_vm4 = vweird.f32 %v3174_v37 }
 0xb92   :  { %vm2176_vm14 = vmor %vm2174_vm13, %vm2175_vm4 }
 0xb93   :  { %v2170_v62 = vmul.f32 %v3174_v37, %v2169_v23 }
 0xb95   :  { %v2171_v20 = vmul.f32 0.5, %v2170_v62 }
 0xb96   :  { %2999 = vmatmul.msk.f32.gmra.mxu0 %vm622_vm15, %v2119_v57 }
 0xb97   :  { %v2172_v36 = vsub.f32 1.5, %v2171_v20 }
 0xb99   :  { %v2173_v34 = vmul.f32 %v3174_v37, %v2172_v36 }
 0xb9b   :  { %v2177_v6 = vsel %vm2176_vm14, %v3174_v37, %v2173_v34 }
 0xb9c   :  { %3086 = vpush %v2177_v6 }
 0xbcd   :  { %s3087_s4 = spop %3086 }
 0xbce   :  { %v2179_v63 = vstv %s3087_s4 }
 0xbcf   :  { %v2180_v38 = vmul.f32 %v2179_v63, %v2163_v30  ;;  %v2181_v2 = vmul.f32 %v2179_v63, %v2164_v56  ;;  %v2182_v4 = vmul.f32 %v2179_v63, %v2165_v5  ;;  %v2401_v56 = vld [vmem:[%s4889_s1 + $0xe0] sm:$0x3]  ;;  %v2400_v5 = vld [vmem:[%s4889_s1 + $0xd8] sm:$0xff] }
 0xbd1   :  { %v2183_v48 = vadd.f32 %v3125_v21, %v2180_v38  ;;  %v2184_v9 = vadd.f32 %v3125_v21, %v2181_v2  ;;  %v2185_v41 = vadd.f32 %v3125_v21, %v2182_v4 }
 0xbd3   :  { %v2186_v28 = vmul.f32 %v3357_v55, %v2183_v48  ;;  %v2188_v11 = vmul.f32 %v3379_v1, %v2185_v41  ;;  %v4506_v55 = vld [vmem:[%s4890_s2 + $0x8] ss:$0 sm:$0xff] }
 0xbd5   :  { %3000 = vmatmul.msk.f32.gmra.mxu0 %vm622_vm15, %v2186_v28 }
 0xbdd   :  { %3001 = vmatmul.msk.f32.gmra.mxu0 %vm622_vm15, %v2184_v9 }
 0xbe5   :  { %3002 = vmatmul.msk.f32.gmra.mxu0 %vm622_vm15, %v2188_v11 }
 0xc03   :  { %v2231_v17 = vpop.f32.mrf.mxu0 }
 0xc04   :  { %v2232_v61 = vadd.f32 %v4506_v55, %v2231_v17 }
 0xc06   :  { %v2249_v58 = vsub.f32 0.0, %v2232_v61  ;;  %v2399_v61 = vld [vmem:[%s4889_s1 + $0xd0] sm:$0xff]  ;;  %s3234_s1 = smov 120  }
 0xc08   :  { %v2255_v44 = vmul.f32 1.442695, %v2249_v58 }
 0xc0a   :  { %3175 = vpow2.f32 %v2255_v44 }
 0xc0b   :  { %v2234_v19 = vpop.f32.mrf.mxu0 }
 0xc0c   :  { %v2235_v27 = vadd.f32 %v4506_v55, %v2234_v19 }
 0xc0e   :  { %v2250_v31 = vsub.f32 0.0, %v2235_v27 }
 0xc10   :  { %v3176_v43 = vpop.eup %3175  ;;  %v2257_v13 = vmul.f32 1.442695, %v2250_v31 }
 0xc11   :  { %v2267_v1 = vadd.f32 1.0, %v3176_v43 }
 0xc12   :  { %3177 = vpow2.f32 %v2257_v13 }
 0xc13   :  { %3179 = vrcp.f32 %v2267_v1  ;;  %v2237_v33 = vpop.f32.mrf.mxu0  ;;  %v2284_v25 = vand.u32 2147483648, %v2267_v1  ;;  %v2282_v8 = vand.u32 2147483647, %v2267_v1  ;;  %vm2278_vm6 = vweird.f32 %v2267_v1 }
 0xc14   :  { %v2238_v52 = vadd.f32 %v4506_v55, %v2237_v33 }
 0xc15   :  { %v2285_v22 = vor.u32 1.1754944e-38, %v2284_v25  ;;  %vm2283_vm0 = vcmp.eq.f32.partialorder %v2282_v8, 8.507059e+37 }
 0xc16   :  { %v2251_v7 = vsub.f32 0.0, %v2238_v52 }
 0xc18   :  { %v3178_v3 = vpop.eup %3177  ;;  %v2259_v40 = vmul.f32 1.442695, %v2251_v7 }
 0xc19   :  { %v3180_v10 = vpop.eup %3179  ;;  %v2268_v16 = vadd.f32 1.0, %v3178_v3 }
 0xc1a   :  { %3181 = vpow2.f32 %v2259_v40  ;;  %v2274_v21 = vmul.f32 %v3180_v10, %v2267_v1  ;;  %vm2279_vm5 = vweird.f32 %v3180_v10 }
 0xc1b   :  { %3183 = vrcp.f32 %v2268_v16  ;;  %vm2280_vm7 = vmor %vm2278_vm6, %vm2279_vm5  ;;  %v2299_v35 = vand.u32 2147483648, %v2268_v16  ;;  %v2297_v62 = vand.u32 2147483647, %v2268_v16  ;;  %vm2293_vm12 = vweird.f32 %v2268_v16 }
 0xc1c   :  { %v2275_v12 = vsub.f32 1.0, %v2274_v21 }
 0xc1d   :  { %v2300_v36 = vor.u32 1.1754944e-38, %v2299_v35  ;;  %vm2298_vm13 = vcmp.eq.f32.partialorder %v2297_v62, 8.507059e+37 }
 0xc1e   :  { %v2276_v42 = vmul.f32 %v3180_v10, %v2275_v12 }
 0xc20   :  { %v3182_v39 = vpop.eup %3181  ;;  %v2277_v24 = vadd.f32 %v3180_v10, %v2276_v42 }
 0xc21   :  { %v3184_v50 = vpop.eup %3183  ;;  %v2269_v54 = vadd.f32 1.0, %v3182_v39 }
 0xc22   :  { %v2281_v49 = vsel %vm2280_vm7, %v3180_v10, %v2277_v24  ;;  %v2289_v18 = vmul.f32 %v3184_v50, %v2268_v16  ;;  %vm2294_vm11 = vweird.f32 %v3184_v50 }
 0xc23   :  { %3185 = vrcp.f32 %v2269_v54  ;;  %v4511_v26 = vsel %vm2283_vm0, %v2285_v22, %v2281_v49  ;;  %vm2295_vm4 = vmor %vm2293_vm12, %vm2294_vm11  ;;  %v2314_v30 = vand.u32 2147483648, %v2269_v54  ;;  %v2312_v38 = vand.u32 2147483647, %v2269_v54 }
 0xc24   :  { %2369 = vrot.lane.b32.xlu0 %v4511_v26, %s3229_s0  ;;  %v2290_v37 = vsub.f32 1.0, %v2289_v18  ;;  %vm2308_vm5 = vweird.f32 %v2269_v54  ;;  %vm2420_vm0 = vcmask 1041408  }
 0xc25   :  { %v2315_v48 = vor.u32 1.1754944e-38, %v2314_v30  ;;  %vm2313_vm7 = vcmp.eq.f32.partialorder %v2312_v38, 8.507059e+37  ;;  %3003 = vmatpush.msk.msrb.mxu1 %vm2420_vm0, %v2401_v56 }
 0xc26   :  { %v2291_v23 = vmul.f32 %v3184_v50, %v2290_v37 }
 0xc27   :  { %2438 = vmatpush.msrb.mxu1 %v2400_v5 }
 0xc28   :  { %v2292_v57 = vadd.f32 %v3184_v50, %v2291_v23 }
 0xc29   :  { %v3186_v20 = vpop.eup %3185  ;;  %2439 = vmatpush.msrb.mxu1 %v2399_v61 }
 0xc2a   :  { %v2296_v34 = vsel %vm2295_vm4, %v3184_v50, %v2292_v57  ;;  %v2304_v6 = vmul.f32 %v3186_v20, %v2269_v54  ;;  %vm2309_vm14 = vweird.f32 %v3186_v20 }
 0xc2b   :  { %v4515_v15 = vsel %vm2298_vm13, %v2300_v36, %v2296_v34  ;;  %vm2310_vm6 = vmor %vm2308_vm5, %vm2309_vm14 }
 0xc2c   :  { %2371 = vrot.lane.b32.xlu2 %v4515_v15, %s3229_s0  ;;  %v2305_v14 = vsub.f32 1.0, %v2304_v6 }
 0xc2e   :  { %v2306_v63 = vmul.f32 %v3186_v20, %v2305_v14 }
 0xc30   :  { %v2307_v45 = vadd.f32 %v3186_v20, %v2306_v63 }
 0xc32   :  { %v2311_v28 = vsel %vm2310_vm6, %v3186_v20, %v2307_v45 }
 0xc33   :  { %v4519_v29 = vsel %vm2313_vm7, %v2315_v48, %v2311_v28 }
 0xc34   :  { %2373 = vrot.lane.b32.xlu1 %v4519_v29, %s3229_s0 }
 0xc52   :  { %v2240_v2 = vpop.f32.mrf.mxu0 }
 0xc53   :  { %v2241_v4 = vadd.f32 %v4506_v55, %v2240_v2 }
 0xc55   :  { %v2252_v9 = vsub.f32 0.0, %v2241_v4 }
 0xc57   :  { %v2261_v41 = vmul.f32 1.442695, %v2252_v9 }
 0xc59   :  { %3187 = vpow2.f32 %v2261_v41 }
 0xc5a   :  { %v2243_v11 = vpop.f32.mrf.mxu0 }
 0xc5b   :  { %v2244_v17 = vadd.f32 %v4506_v55, %v2243_v11 }
 0xc5d   :  { %v2253_v58 = vsub.f32 0.0, %v2244_v17 }
 0xc5f   :  { %v3188_v44 = vpop.eup %3187  ;;  %v2263_v19 = vmul.f32 1.442695, %v2253_v58 }
 0xc60   :  { %v2270_v27 = vadd.f32 1.0, %v3188_v44 }
 0xc61   :  { %3189 = vpow2.f32 %v2263_v19 }
 0xc62   :  { %3191 = vrcp.f32 %v2270_v27  ;;  %v2246_v31 = vpop.f32.mrf.mxu0  ;;  %v2329_v10 = vand.u32 2147483648, %v2270_v27  ;;  %v2327_v21 = vand.u32 2147483647, %v2270_v27  ;;  %vm2323_vm12 = vweird.f32 %v2270_v27 }
 0xc63   :  { %v2247_v43 = vadd.f32 %v4506_v55, %v2246_v31 }
 0xc64   :  { %v2330_v55 = vor.u32 1.1754944e-38, %v2329_v10  ;;  %vm2328_vm13 = vcmp.eq.f32.partialorder %v2327_v21, 8.507059e+37 }
 0xc65   :  { %v2254_v13 = vsub.f32 0.0, %v2247_v43 }
 0xc67   :  { %v3190_v1 = vpop.eup %3189  ;;  %v2265_v33 = vmul.f32 1.442695, %v2254_v13 }
 0xc68   :  { %v3192_v52 = vpop.eup %3191  ;;  %v2271_v7 = vadd.f32 1.0, %v3190_v1 }
 0xc69   :  { %3193 = vpow2.f32 %v2265_v33  ;;  %v2319_v3 = vmul.f32 %v3192_v52, %v2270_v27  ;;  %vm2324_vm11 = vweird.f32 %v3192_v52 }
 0xc6a   :  { %3195 = vrcp.f32 %v2271_v7  ;;  %vm2325_vm4 = vmor %vm2323_vm12, %vm2324_vm11  ;;  %v2344_v22 = vand.u32 2147483648, %v2271_v7  ;;  %v2342_v18 = vand.u32 2147483647, %v2271_v7  ;;  %vm2338_vm5 = vweird.f32 %v2271_v7 }
 0xc6b   :  { %v2320_v40 = vsub.f32 1.0, %v2319_v3 }
 0xc6c   :  { %v2345_v23 = vor.u32 1.1754944e-38, %v2344_v22  ;;  %vm2343_vm7 = vcmp.eq.f32.partialorder %v2342_v18, 8.507059e+37 }
 0xc6d   :  { %v2321_v16 = vmul.f32 %v3192_v52, %v2320_v40 }
 0xc6f   :  { %v3194_v12 = vpop.eup %3193  ;;  %v2322_v25 = vadd.f32 %v3192_v52, %v2321_v16 }
 0xc70   :  { %v3196_v42 = vpop.eup %3195  ;;  %v2272_v8 = vadd.f32 1.0, %v3194_v12 }
 0xc71   :  { %v2326_v39 = vsel %vm2325_vm4, %v3192_v52, %v2322_v25  ;;  %v2334_v24 = vmul.f32 %v3196_v42, %v2271_v7  ;;  %vm2339_vm14 = vweird.f32 %v3196_v42 }
 0xc72   :  { %3197 = vrcp.f32 %v2272_v8  ;;  %v2331_v50 = vsel %vm2328_vm13, %v2330_v55, %v2326_v39  ;;  %vm2340_vm6 = vmor %vm2338_vm5, %vm2339_vm14  ;;  %v2359_v34 = vand.u32 2147483648, %v2272_v8  ;;  %v2357_v14 = vand.u32 2147483647, %v2272_v8 }
 0xc73   :  { %2375 = vrot.lane.b32.xlu0 %v2331_v50, %s3229_s0  ;;  %v2335_v54 = vsub.f32 1.0, %v2334_v24  ;;  %vm2353_vm11 = vweird.f32 %v2272_v8  ;;  %vm2649_vm13 = vcmask 457728   ;;  %vm2653_vm14 = vcmask 523264  }
 0xc74   :  { %v2360_v63 = vor.u32 1.1754944e-38, %v2359_v34  ;;  %vm2358_vm4 = vcmp.eq.f32.partialorder %v2357_v14, 8.507059e+37  ;;  %vm4897_vm5 = vcmask 588800  }
 0xc75   :  { %v2336_v49 = vmul.f32 %v3196_v42, %v2335_v54 }
 0xc77   :  { %v2337_v37 = vadd.f32 %v3196_v42, %v2336_v49 }
 0xc78   :  { %v3198_v35 = vpop.eup %3197 }
 0xc79   :  { %v2341_v62 = vsel %vm2340_vm6, %v3196_v42, %v2337_v37  ;;  %v2349_v57 = vmul.f32 %v3198_v35, %v2272_v8  ;;  %vm2354_vm0 = vweird.f32 %v3198_v35  ;;  %vm4896_vm6 = vcmask 654336  }
 0xc7a   :  { %v2346_v20 = vsel %vm2343_vm7, %v2345_v23, %v2341_v62  ;;  %vm2355_vm12 = vmor %vm2353_vm11, %vm2354_vm0  ;;  %vm4895_vm7 = vcmask 719872   ;;  %vm4894_vm0 = vcmask 785408   ;;  %vm4893_vm11 = vcmask 850944  }
 0xc7b   :  { %2377 = vrot.lane.b32.xlu2 %v2346_v20, %s3229_s0  ;;  %v2350_v36 = vsub.f32 1.0, %v2349_v57 }
 0xc7d   :  { %v2351_v6 = vmul.f32 %v3198_v35, %v2350_v36 }
 0xc7f   :  { %v2352_v30 = vadd.f32 %v3198_v35, %v2351_v6 }
 0xc81   :  { %v2356_v38 = vsel %vm2355_vm12, %v3198_v35, %v2352_v30  ;;  %vm4898_vm12 = vcmask 916480  }
 0xc82   :  { %v2361_v45 = vsel %vm2358_vm4, %v2360_v63, %v2356_v38  ;;  %vm2681_vm4 = vcmask 982016  }
 0xc83   :  { %2379 = vrot.lane.b32.xlu1 %v2361_v45, %s3229_s0  ;;  %s3235_s0 = smov 24  }
 0xc86   :  { %v2372_v2 = vpop.permute.xlu2 %2371 }
 0xc87   :  { %v2388_v5 = vsel %vm622_vm15, %v4515_v15, %v2372_v2 }
 0xc88   :  { %v2394_v4 = vmul.f32 %v2388_v5, %v3355_v53 }
 0xc96   :  { %v2370_v48 = vpop.permute.xlu0 %2369 }
 0xc97   :  { %v2387_v28 = vsel %vm622_vm15, %v4511_v26, %v2370_v48 }
 0xc98   :  { %v2393_v56 = vmul.f32 %v2387_v28, %v3341_v47 }
 0xc9a   :  { %3004 = vmatmul.msk.f32.vlgmr.msrb.gmra.mxu1 %vm635_vm3, %v2393_v56 }
 0xca2   :  { %3005 = vmatmul.msk.f32.gmra.mxu1 %vm635_vm3, %v2394_v4 }
 0xca6   :  { %v2374_v9 = vpop.permute.xlu1 %2373 }
 0xca7   :  { %v2389_v41 = vsel %vm622_vm15, %v4519_v29, %v2374_v9 }
 0xca8   :  { %v2395_v11 = vmul.f32 %v2389_v41, %v3368_v59 }
 0xcaa   :  { %3006 = vmatmul.msk.f32.gmra.mxu1 %vm635_vm3, %v2395_v11 }
 0xcd5   :  { %v2378_v61 = vpop.permute.xlu2 %2377 }
 0xcd6   :  { %v2391_v53 = vsel %vm622_vm15, %v2346_v20, %v2378_v61 }
 0xcd7   :  { %v2397_v15 = vmul.f32 %v2391_v53, %v3399_v32 }
 0xce5   :  { %v2376_v26 = vpop.permute.xlu0 %2375 }
 0xce6   :  { %v2390_v47 = vsel %vm622_vm15, %v2331_v50, %v2376_v26 }
 0xce7   :  { %v2396_v17 = vmul.f32 %v2390_v47, %v3377_v0 }
 0xce9   :  { %3007 = vmatmul.msk.f32.gmra.mxu1 %vm635_vm3, %v2396_v17 }
 0xcf1   :  { %3008 = vmatmul.msk.f32.gmra.mxu1 %vm635_vm3, %v2397_v15 }
 0xcf5   :  { %v2380_v58 = vpop.permute.xlu1 %2379 }
 0xcf6   :  { %v2392_v29 = vsel %vm622_vm15, %v2361_v45, %v2380_v58  ;;  %vm2635_vm15 = vcmask 195584  }
 0xcf7   :  { %v2398_v59 = vmul.f32 %v2392_v29, %v3414_v60 }
 0xcf9   :  { %3009 = vmatmul.msk.f32.gmra.mxu1 %vm635_vm3, %v2398_v59  ;;  %vm2642_vm3 = vcmask 326656  }
 0xd17   :  { %v2441_v44 = vpop.f32.mrf.mxu1 }
 0xd18   :  { %v2474_v19 = vrot.slane %v2441_v44, 7 }
 0xd1a   :  { %2479 = vrot.lane.b32.xlu0 %v2474_v19, %s3234_s1 }
 0xd1f   :  { %v2444_v0 = vpop.f32.mrf.mxu1 }
 0xd20   :  { %v2475_v27 = vrot.slane %v2444_v0, 7 }
 0xd22   :  { %v2476_v31 = vsel %vm4892_vm9, %v2474_v19, %v2475_v27 }
 0xd23   :  { %2481 = vrot.lane.b32.xlu2 %v2476_v31, %s3234_s1 }
 0xd27   :  { %v2447_v32 = vpop.f32.mrf.mxu1 }
 0xd28   :  { %v2477_v43 = vrot.slane %v2447_v32, 7 }
 0xd2a   :  { %v2478_v13 = vsel %vm4892_vm9, %v2475_v27, %v2477_v43 }
 0xd2b   :  { %2483 = vrot.lane.b32.xlu1 %v2478_v13, %s3234_s1 }
 0xd66   :  { %v4564_v60 = vpop.f32.mrf.mxu1 }
 0xd67   :  { %v2708_v1 = vrot.slane %v4564_v60, 7 }
 0xd69   :  { %2713 = vrot.lane.b32.xlu0 %v2708_v1, %s3234_s1 }
 0xd6e   :  { %v4568_v33 = vpop.f32.mrf.mxu1 }
 0xd6f   :  { %v2709_v52 = vrot.slane %v4568_v33, 7 }
 0xd71   :  { %v2710_v7 = vsel %vm4892_vm9, %v2708_v1, %v2709_v52 }
 0xd72   :  { %2715 = vrot.lane.b32.xlu2 %v2710_v7, %s3234_s1 }
 0xd76   :  { %v4573_v3 = vpop.f32.mrf.mxu1 }
 0xd77   :  { %v2711_v40 = vrot.slane %v4573_v3, 7 }
 0xd79   :  { %v2712_v10 = vsel %vm4892_vm9, %v2709_v52, %v2711_v40  ;;  %vm2688_vm9 = vcmask 1045504  }
 0xd7a   :  { %2717 = vrot.lane.b32.xlu1 %v2712_v10, %s3234_s1 }
 0xd7d   :  { %v2482_v16 = vpop.permute.xlu2 %2481 }
 0xd7e   :  { %v2489_v21 = vadd.f32 %v2482_v16, %v2444_v0 }
 0xd80   :  { %2496 = vrot.lane.b32.xlu2 %v2489_v21, %s3225_s24 }
 0xd88   :  { %2505 = vrot.lane.b32.xlu2 %v2489_v21, %s3232_s12 }
 0xd8c   :  { %v2480_v12 = vpop.permute.xlu0 %2479 }
 0xd8d   :  { %v4580_v25 = vadd.f32 %v2480_v12, %v2441_v44 }
 0xd8f   :  { %2494 = vrot.lane.b32.xlu0 %v4580_v25, %s3225_s24 }
 0xd90   :  { %2514 = vrot.lane.b32.xlu2 %v2489_v21, %s3235_s0 }
 0xd97   :  { %2503 = vrot.lane.b32.xlu0 %v4580_v25, %s3232_s12 }
 0xd98   :  { %2523 = vrot.lane.b32.xlu2 %v2489_v21, %s3233_s15 }
 0xd9d   :  { %v2484_v42 = vpop.permute.xlu1 %2483 }
 0xd9e   :  { %v4588_v8 = vadd.f32 %v2484_v42, %v2447_v32 }
 0xd9f   :  { %2512 = vrot.lane.b32.xlu0 %v4580_v25, %s3235_s0 }
 0xda0   :  { %2498 = vrot.lane.b32.xlu1 %v4588_v8, %s3225_s24  ;;  %2532 = vrot.lane.b32.xlu2 %v2489_v21, %s3236_s8 }
 0xda7   :  { %2521 = vrot.lane.b32.xlu0 %v4580_v25, %s3233_s15 }
 0xda8   :  { %2507 = vrot.lane.b32.xlu1 %v4588_v8, %s3232_s12  ;;  %2541 = vrot.lane.b32.xlu2 %v2489_v21, %s3237_s9 }
 0xdaf   :  { %2530 = vrot.lane.b32.xlu0 %v4580_v25, %s3236_s8 }
 0xdb0   :  { %2516 = vrot.lane.b32.xlu1 %v4588_v8, %s3235_s0  ;;  %2550 = vrot.lane.b32.xlu2 %v2489_v21, %s3238_s10 }
 0xdb7   :  { %2539 = vrot.lane.b32.xlu0 %v4580_v25, %s3237_s9 }
 0xdb8   :  { %2525 = vrot.lane.b32.xlu1 %v4588_v8, %s3233_s15  ;;  %2559 = vrot.lane.b32.xlu2 %v2489_v21, %s3239_s11 }
 0xdbf   :  { %2548 = vrot.lane.b32.xlu0 %v4580_v25, %s3238_s10 }
 0xdc0   :  { %2534 = vrot.lane.b32.xlu1 %v4588_v8, %s3236_s8  ;;  %2568 = vrot.lane.b32.xlu2 %v2489_v21, %s3240_s13 }
 0xdc7   :  { %2557 = vrot.lane.b32.xlu0 %v4580_v25, %s3239_s11 }
 0xdc8   :  { %2543 = vrot.lane.b32.xlu1 %v4588_v8, %s3237_s9  ;;  %2577 = vrot.lane.b32.xlu2 %v2489_v21, %s3241_s14 }
 0xdcc   :  { %v2716_v55 = vpop.permute.xlu2 %2715 }
 0xdcd   :  { %v4650_v35 = vadd.f32 %v2716_v55, %v4568_v33 }
 0xdcf   :  { %2566 = vrot.lane.b32.xlu0 %v4580_v25, %s3240_s13 }
 0xdd0   :  { %2552 = vrot.lane.b32.xlu1 %v4588_v8, %s3238_s10  ;;  %2586 = vrot.lane.b32.xlu2 %v2489_v21, %s3242_s16 }
 0xdd7   :  { %2575 = vrot.lane.b32.xlu0 %v4580_v25, %s3241_s14 }
 0xdd8   :  { %2561 = vrot.lane.b32.xlu1 %v4588_v8, %s3239_s11  ;;  %2595 = vrot.lane.b32.xlu2 %v2489_v21, %s3243_s17 }
 0xdda   :  { %v2497_v39 = vpop.permute.xlu2 %2496 }
 0xddb   :  { %v2630_v24 = vsel %vm121_vm1, %v2489_v21, %v2497_v39  ;;  %v2714_v23 = vpop.permute.xlu0 %2713 }
 0xddc   :  { %v4667_v6 = vadd.f32 %v2714_v23, %v4564_v60 }
 0xddf   :  { %2584 = vrot.lane.b32.xlu0 %v4580_v25, %s3242_s16 }
 0xde0   :  { %2570 = vrot.lane.b32.xlu1 %v4588_v8, %s3240_s13  ;;  %2604 = vrot.lane.b32.xlu2 %v2489_v21, %s3244_s18 }
 0xde2   :  { %v2506_v50 = vpop.permute.xlu2 %2505 }
 0xde3   :  { %v2633_v54 = vsel %vm136_vm2, %v2630_v24, %v2506_v50 }
 0xde7   :  { %2593 = vrot.lane.b32.xlu0 %v4580_v25, %s3243_s17 }
 0xde8   :  { %2579 = vrot.lane.b32.xlu1 %v4588_v8, %s3241_s14  ;;  %2613 = vrot.lane.b32.xlu2 %v2489_v21, %s3245_s19 }
 0xdea   :  { %v2515_v22 = vpop.permute.xlu2 %2514 }
 0xdeb   :  { %v2637_v49 = vsel %vm2635_vm15, %v2633_v54, %v2515_v22 }
 0xdec   :  { %v2718_v63 = vpop.permute.xlu1 %2717 }
 0xded   :  { %v4688_v9 = vadd.f32 %v2718_v63, %v4573_v3 }
 0xdef   :  { %2602 = vrot.lane.b32.xlu0 %v4580_v25, %s3244_s18 }
 0xdf0   :  { %2588 = vrot.lane.b32.xlu1 %v4588_v8, %s3242_s16  ;;  %2622 = vrot.lane.b32.xlu2 %v2489_v21, %s3234_s1 }
 0xdf2   :  { %v2524_v18 = vpop.permute.xlu2 %2523 }
 0xdf3   :  { %v2640_v37 = vsel %vm1198_vm8, %v2637_v49, %v2524_v18 }
 0xdf7   :  { %2611 = vrot.lane.b32.xlu0 %v4580_v25, %s3245_s19 }
 0xdf8   :  { %2597 = vrot.lane.b32.xlu1 %v4588_v8, %s3243_s17  ;;  %2730 = vrot.lane.b32.xlu2 %v4650_v35, %s3225_s24 }
 0xdfa   :  { %v2533_v62 = vpop.permute.xlu2 %2532 }
 0xdfb   :  { %v2644_v57 = vsel %vm2642_vm3, %v2640_v37, %v2533_v62 }
 0xdff   :  { %2620 = vrot.lane.b32.xlu0 %v4580_v25, %s3234_s1 }
 0xe00   :  { %2606 = vrot.lane.b32.xlu1 %v4588_v8, %s3244_s18  ;;  %2739 = vrot.lane.b32.xlu2 %v4650_v35, %s3232_s12 }
 0xe01   :  { %v2495_v20 = vpop.permute.xlu0 %2494 }
 0xe02   :  { %v2542_v36 = vpop.permute.xlu2 %2541  ;;  %v2629_v14 = vsel %vm121_vm1, %v4580_v25, %v2495_v20 }
 0xe03   :  { %v2647_v34 = vsel %vm1211_vm10, %v2644_v57, %v2542_v36 }
 0xe07   :  { %2728 = vrot.lane.b32.xlu0 %v4667_v6, %s3225_s24 }
 0xe08   :  { %2615 = vrot.lane.b32.xlu1 %v4588_v8, %s3245_s19  ;;  %2748 = vrot.lane.b32.xlu2 %v4650_v35, %s3235_s0 }
 0xe09   :  { %v2504_v30 = vpop.permute.xlu0 %2503 }
 0xe0a   :  { %v2632_v38 = vsel %vm136_vm2, %v2629_v14, %v2504_v30  ;;  %v2551_v45 = vpop.permute.xlu2 %2550 }
 0xe0b   :  { %v2651_v48 = vsel %vm2649_vm13, %v2647_v34, %v2551_v45 }
 0xe0f   :  { %2737 = vrot.lane.b32.xlu0 %v4667_v6, %s3232_s12 }
 0xe10   :  { %2624 = vrot.lane.b32.xlu1 %v4588_v8, %s3234_s1  ;;  %2757 = vrot.lane.b32.xlu2 %v4650_v35, %s3233_s15 }
 0xe11   :  { %v2513_v28 = vpop.permute.xlu0 %2512 }
 0xe12   :  { %v2636_v56 = vsel %vm2635_vm15, %v2632_v38, %v2513_v28  ;;  %v2499_v2 = vpop.permute.xlu1 %2498  ;;  %v2560_v5 = vpop.permute.xlu2 %2559 }
 0xe13   :  { %v2655_v4 = vsel %vm2653_vm14, %v2651_v48, %v2560_v5  ;;  %v2631_v11 = vsel %vm121_vm1, %v4588_v8, %v2499_v2 }
 0xe17   :  { %2746 = vrot.lane.b32.xlu0 %v4667_v6, %s3235_s0 }
 0xe18   :  { %2732 = vrot.lane.b32.xlu1 %v4688_v9, %s3225_s24  ;;  %2766 = vrot.lane.b32.xlu2 %v4650_v35, %s3236_s8  ;;  %s3246_s24 = smov [#allocation2]  }
 0xe19   :  { %v2522_v41 = vpop.permute.xlu0 %2521 }
 0xe1a   :  { %v2639_v26 = vsel %vm1198_vm8, %v2636_v56, %v2522_v41  ;;  %v2508_v47 = vpop.permute.xlu1 %2507  ;;  %v2569_v17 = vpop.permute.xlu2 %2568 }
 0xe1b   :  { %v2634_v61 = vsel %vm136_vm2, %v2631_v11, %v2508_v47  ;;  %v2659_v53 = vsel %vm4897_vm5, %v2655_v4, %v2569_v17 }
 0xe1f   :  { %2755 = vrot.lane.b32.xlu0 %v4667_v6, %s3233_s15 }
 0xe20   :  { %2741 = vrot.lane.b32.xlu1 %v4688_v9, %s3232_s12  ;;  %2775 = vrot.lane.b32.xlu2 %v4650_v35, %s3237_s9  ;;  %s2934_s12 = sshll.u32 %s3246_s24, 4  ;;  %s2935_s12 = int_to_ptr.vmem [resolvable:$true] %s2934_s12 }
 0xe21   :  { %v2531_v15 = vpop.permute.xlu0 %2530 }
 0xe22   :  { %v2643_v58 = vsel %vm2642_vm3, %v2639_v26, %v2531_v15  ;;  %v2517_v29 = vpop.permute.xlu1 %2516  ;;  %v2578_v59 = vpop.permute.xlu2 %2577 }
 0xe23   :  { %v2638_v44 = vsel %vm2635_vm15, %v2634_v61, %v2517_v29  ;;  %v2663_v19 = vsel %vm4896_vm6, %v2659_v53, %v2578_v59 }
 0xe27   :  { %2764 = vrot.lane.b32.xlu0 %v4667_v6, %s3236_s8 }
 0xe28   :  { %2750 = vrot.lane.b32.xlu1 %v4688_v9, %s3235_s0  ;;  %2784 = vrot.lane.b32.xlu2 %v4650_v35, %s3238_s10 }
 0xe29   :  { %v2540_v0 = vpop.permute.xlu0 %2539 }
 0xe2a   :  { %v2646_v27 = vsel %vm1211_vm10, %v2643_v58, %v2540_v0  ;;  %v2526_v31 = vpop.permute.xlu1 %2525  ;;  %v2587_v32 = vpop.permute.xlu2 %2586 }
 0xe2b   :  { %v2641_v43 = vsel %vm1198_vm8, %v2638_v44, %v2526_v31  ;;  %v2667_v13 = vsel %vm4895_vm7, %v2663_v19, %v2587_v32  ;;  %v17_v32 = vadd.s32 8, %v3349_v51 }
 0xe2f   :  { %2773 = vrot.lane.b32.xlu0 %v4667_v6, %s3237_s9 }
 0xe30   :  { %2759 = vrot.lane.b32.xlu1 %v4688_v9, %s3233_s15  ;;  %2793 = vrot.lane.b32.xlu2 %v4650_v35, %s3239_s11 }
 0xe31   :  { %v2549_v60 = vpop.permute.xlu0 %2548 }
 0xe32   :  { %v2650_v1 = vsel %vm2649_vm13, %v2646_v27, %v2549_v60  ;;  %v2535_v33 = vpop.permute.xlu1 %2534  ;;  %v2596_v52 = vpop.permute.xlu2 %2595  ;;  %v2462_v60 = vmul.u32 8, %v17_v32 }
 0xe33   :  { %v2645_v7 = vsel %vm2642_vm3, %v2641_v43, %v2535_v33  ;;  %v2671_v3 = vsel %vm4894_vm0, %v2667_v13, %v2596_v52  ;;  %v2461_v43 = vmul.u32 8, %v3349_v51  ;;  %v2460_v52 = vand.u32 127, %v15_v46 }
 0xe37   :  { %2782 = vrot.lane.b32.xlu0 %v4667_v6, %s3238_s10 }
 0xe38   :  { %2768 = vrot.lane.b32.xlu1 %v4688_v9, %s3236_s8  ;;  %2802 = vrot.lane.b32.xlu2 %v4650_v35, %s3240_s13 }
 0xe39   :  { %v2558_v40 = vpop.permute.xlu0 %2557 }
 0xe3a   :  { %v2654_v10 = vsel %vm2653_vm14, %v2650_v1, %v2558_v40  ;;  %v2544_v16 = vpop.permute.xlu1 %2543  ;;  %v2605_v21 = vpop.permute.xlu2 %2604 }
 0xe3b   :  { %v2648_v12 = vsel %vm1211_vm10, %v2645_v7, %v2544_v16  ;;  %v2675_v25 = vsel %vm4893_vm11, %v2671_v3, %v2605_v21  ;;  %v2465_v7 = vadd.s32 8, %v2461_v43  ;;  %v2466_v3 = vadd.s32 8, %v2462_v60 }
 0xe3f   :  { %2791 = vrot.lane.b32.xlu0 %v4667_v6, %s3239_s11 }
 0xe40   :  { %2777 = vrot.lane.b32.xlu1 %v4688_v9, %s3237_s9  ;;  %2811 = vrot.lane.b32.xlu2 %v4650_v35, %s3241_s14 }
 0xe41   :  { %v2567_v42 = vpop.permute.xlu0 %2566 }
 0xe42   :  { %v2658_v8 = vsel %vm4897_vm5, %v2654_v10, %v2567_v42  ;;  %v2553_v55 = vpop.permute.xlu1 %2552  ;;  %v2614_v39 = vpop.permute.xlu2 %2613 }
 0xe43   :  { %v2652_v24 = vsel %vm2649_vm13, %v2648_v12, %v2553_v55  ;;  %v2679_v50 = vsel %vm4898_vm12, %v2675_v25, %v2614_v39 }
 0xe47   :  { %2800 = vrot.lane.b32.xlu0 %v4667_v6, %s3240_s13 }
 0xe48   :  { %2786 = vrot.lane.b32.xlu1 %v4688_v9, %s3238_s10  ;;  %2820 = vrot.lane.b32.xlu2 %v4650_v35, %s3242_s16 }
 0xe49   :  { %v2576_v54 = vpop.permute.xlu0 %2575 }
 0xe4a   :  { %v2662_v22 = vsel %vm4896_vm6, %v2658_v8, %v2576_v54  ;;  %v2562_v49 = vpop.permute.xlu1 %2561  ;;  %v2623_v18 = vpop.permute.xlu2 %2622 }
 0xe4b   :  { %v2656_v37 = vsel %vm2653_vm14, %v2652_v24, %v2562_v49  ;;  %v4755_v23 = vsel %vm2681_vm4, %v2679_v50, %v2623_v18 }
 0xe4c   :  { %v2690_v44 = vrot.slane %v4755_v23, 2 }
 0xe4f   :  { %2809 = vrot.lane.b32.xlu0 %v4667_v6, %s3241_s14 }
 0xe50   :  { %2795 = vrot.lane.b32.xlu1 %v4688_v9, %s3239_s11  ;;  %2829 = vrot.lane.b32.xlu2 %v4650_v35, %s3243_s17 }
 0xe51   :  { %v2585_v62 = vpop.permute.xlu0 %2584 }
 0xe52   :  { %v2666_v57 = vsel %vm4895_vm7, %v2662_v22, %v2585_v62  ;;  %v2571_v20 = vpop.permute.xlu1 %2570  ;;  %v2731_v36 = vpop.permute.xlu2 %2730 }
 0xe53   :  { %v2660_v34 = vsel %vm4897_vm5, %v2656_v37, %v2571_v20  ;;  %v2864_v30 = vsel %vm121_vm1, %v4650_v35, %v2731_v36 }
 0xe57   :  { %2818 = vrot.lane.b32.xlu0 %v4667_v6, %s3242_s16 }
 0xe58   :  { %2804 = vrot.lane.b32.xlu1 %v4688_v9, %s3240_s13  ;;  %2838 = vrot.lane.b32.xlu2 %v4650_v35, %s3244_s18 }
 0xe59   :  { %v2594_v14 = vpop.permute.xlu0 %2593 }
 0xe5a   :  { %v2670_v63 = vsel %vm4894_vm0, %v2666_v57, %v2594_v14  ;;  %v2580_v38 = vpop.permute.xlu1 %2579  ;;  %v2740_v45 = vpop.permute.xlu2 %2739 }
 0xe5b   :  { %v2664_v48 = vsel %vm4896_vm6, %v2660_v34, %v2580_v38  ;;  %v2867_v28 = vsel %vm136_vm2, %v2864_v30, %v2740_v45  ;;  %vm2468_vm6 = vcmp.lt.s32.totalorder %v2460_v52, %v2466_v3 }
 0xe5f   :  { %2827 = vrot.lane.b32.xlu0 %v4667_v6, %s3243_s17 }
 0xe60   :  { %2813 = vrot.lane.b32.xlu1 %v4688_v9, %s3241_s14  ;;  %2847 = vrot.lane.b32.xlu2 %v4650_v35, %s3245_s19 }
 0xe61   :  { %v2603_v56 = vpop.permute.xlu0 %2602 }
 0xe62   :  { %v2674_v2 = vsel %vm4893_vm11, %v2670_v63, %v2603_v56  ;;  %v2589_v5 = vpop.permute.xlu1 %2588  ;;  %v2749_v4 = vpop.permute.xlu2 %2748 }
 0xe63   :  { %v2668_v41 = vsel %vm4895_vm7, %v2664_v48, %v2589_v5  ;;  %v2870_v11 = vsel %vm2635_vm15, %v2867_v28, %v2749_v4  ;;  %vm2464_vm7 = vcmp.ge.s32.totalorder %v2460_v52, %v2462_v60 }
 0xe67   :  { %2836 = vrot.lane.b32.xlu0 %v4667_v6, %s3244_s18 }
 0xe68   :  { %2822 = vrot.lane.b32.xlu1 %v4688_v9, %s3242_s16  ;;  %2856 = vrot.lane.b32.xlu2 %v4650_v35, %s3234_s1 }
 0xe69   :  { %v2612_v26 = vpop.permute.xlu0 %2611 }
 0xe6a   :  { %v2678_v47 = vsel %vm4898_vm12, %v2674_v2, %v2612_v26  ;;  %v2598_v17 = vpop.permute.xlu1 %2597  ;;  %v2758_v61 = vpop.permute.xlu2 %2757 }
 0xe6b   :  { %v2672_v53 = vsel %vm4894_vm0, %v2668_v41, %v2598_v17  ;;  %v2873_v15 = vsel %vm1198_vm8, %v2870_v11, %v2758_v61  ;;  %vm2467_vm0 = vcmp.lt.s32.totalorder %v2460_v52, %v2465_v7 }
 0xe6f   :  { %2845 = vrot.lane.b32.xlu0 %v4667_v6, %s3245_s19 }
 0xe70   :  { %2831 = vrot.lane.b32.xlu1 %v4688_v9, %s3243_s17 }
 0xe71   :  { %v2621_v58 = vpop.permute.xlu0 %2620 }
 0xe72   :  { %v2682_v29 = vsel %vm2681_vm4, %v2678_v47, %v2621_v58  ;;  %v2607_v35 = vpop.permute.xlu1 %2606  ;;  %v2767_v59 = vpop.permute.xlu2 %2766 }
 0xe73   :  { %v2689_v19 = vrot.slane %v2682_v29, 2  ;;  %v2676_v0 = vsel %vm4893_vm11, %v2672_v53, %v2607_v35  ;;  %v4802_v27 = vsel %vm2642_vm3, %v2873_v15, %v2767_v59  ;;  %vm2463_vm11 = vcmp.ge.s32.totalorder %v2460_v52, %v2461_v43 }
 0xe74   :  { %vm4818_vm5 = vmand %vm2463_vm11, %vm2467_vm0  ;;  %vm4911_vm11 = vcmask 916480  }
 0xe75   :  { %v2691_v31 = vsel %vm2688_vm9, %v2689_v19, %v2690_v44 }
 0xe77   :  { %2854 = vrot.lane.b32.xlu0 %v4667_v6, %s3234_s1 }
 0xe78   :  { %2840 = vrot.lane.b32.xlu1 %v4688_v9, %s3244_s18 }
 0xe79   :  { %v2729_v13 = vpop.permute.xlu0 %2728 }
 0xe7a   :  { %v2616_v1 = vpop.permute.xlu1 %2615  ;;  %v2863_v51 = vsel %vm121_vm1, %v4667_v6, %v2729_v13  ;;  %v2696_v6 = vsel %vm4818_vm5, %v2691_v31, 0.0  ;;  %v2776_v54 = vpop.permute.xlu2 %2775 }
 0xe7b   :  { %v2680_v33 = vsel %vm4898_vm12, %v2676_v0, %v2616_v1  ;;  %vm4823_vm12 = vmand %vm2464_vm7, %vm2468_vm6  ;;  %v2879_v19 = vsel %vm1211_vm10, %v4802_v27, %v2776_v54  ;;  %vm4909_vm7 = vcmask 850944  }
 0xe80   :  { %2849 = vrot.lane.b32.xlu1 %v4688_v9, %s3245_s19 }
 0xe81   :  { %v2738_v40 = vpop.permute.xlu0 %2737 }
 0xe82   :  { %v2866_v10 = vsel %vm136_vm2, %v2863_v51, %v2738_v40  ;;  %v2625_v16 = vpop.permute.xlu1 %2624  ;;  %v2785_v62 = vpop.permute.xlu2 %2784 }
 0xe83   :  { %v2684_v46 = vsel %vm2681_vm4, %v2680_v33, %v2625_v16  ;;  %v2882_v0 = vsel %vm2649_vm13, %v2879_v19, %v2785_v62 }
 0xe84   :  { %v2692_v25 = vrot.slane %v2684_v46, 2 }
 0xe86   :  { %v2693_v42 = vsel %vm2688_vm9, %v2690_v44, %v2692_v25 }
 0xe87   :  { %v2697_v8 = vsel %vm4823_vm12, %v2693_v42, 0.0 }
 0xe88   :  { %v4832_v55 = vadd.f32 %v2697_v8, %v2696_v6  ;;  %2858 = vrot.lane.b32.xlu1 %v4688_v9, %s3234_s1 }
 0xe89   :  { %v2747_v39 = vpop.permute.xlu0 %2746 }
 0xe8a   :  { %v2869_v24 = vsel %vm2635_vm15, %v2866_v10, %v2747_v39  ;;  %v2733_v50 = vpop.permute.xlu1 %2732  ;;  %v2794_v14 = vpop.permute.xlu2 %2793 }
 0xe8b   :  { %v2865_v49 = vsel %vm121_vm1, %v4688_v9, %v2733_v50  ;;  %v2885_v31 = vsel %vm2653_vm14, %v2882_v0, %v2794_v14  ;;  %vm4903_vm1 = vcmask 588800  }
 0xe91   :  { %v2756_v22 = vpop.permute.xlu0 %2755 }
 0xe92   :  { %v2872_v18 = vsel %vm1198_vm8, %v2869_v24, %v2756_v22  ;;  %v2742_v37 = vpop.permute.xlu1 %2741  ;;  %v2803_v45 = vpop.permute.xlu2 %2802 }
 0xe93   :  { %v2868_v23 = vsel %vm136_vm2, %v2865_v49, %v2742_v37  ;;  %v2888_v13 = vsel %vm4903_vm1, %v2885_v31, %v2803_v45  ;;  %vm4904_vm2 = vcmask 654336  }
 0xe94   :  { %vm4908_vm6 = vmmov %vm4904_vm2 }
 0xe99   :  { %v2765_v57 = vpop.permute.xlu0 %2764 }
 0xe9a   :  { %v2875_v20 = vsel %vm2642_vm3, %v2872_v18, %v2765_v57  ;;  %v2751_v36 = vpop.permute.xlu1 %2750  ;;  %v2812_v5 = vpop.permute.xlu2 %2811 }
 0xe9b   :  { %v2871_v34 = vsel %vm2635_vm15, %v2868_v23, %v2751_v36  ;;  %v2891_v33 = vsel %vm4904_vm2, %v2888_v13, %v2812_v5  ;;  %vm4906_vm15 = vmmov %vm4903_vm1 }
 0xe9c   :  { %vm4913_vm2 = vmmov %vm4909_vm7 }
 0xea1   :  { %v2774_v30 = vpop.permute.xlu0 %2773 }
 0xea2   :  { %v2760_v63 = vpop.permute.xlu1 %2759  ;;  %v2821_v11 = vpop.permute.xlu2 %2820  ;;  %v2878_v32 = vsel %vm1211_vm10, %v2875_v20, %v2774_v30 }
 0xea3   :  { %v2874_v38 = vsel %vm1198_vm8, %v2871_v34, %v2760_v63  ;;  %vm4905_vm8 = vcmask 719872   ;;  %v2699_v34 = vrot.slane %v4832_v55, 4 }
 0xea4   :  { %v2894_v7 = vsel %vm4905_vm8, %v2891_v33, %v2821_v11  ;;  %vm4910_vm0 = vmmov %vm4905_vm8 }
 0xea5   :  { %vm4914_vm8 = vmmov %vm4911_vm11 }
 0xea9   :  { %v2783_v48 = vpop.permute.xlu0 %2782 }
 0xeaa   :  { %v2769_v9 = vpop.permute.xlu1 %2768  ;;  %v2830_v17 = vpop.permute.xlu2 %2829  ;;  %v2881_v60 = vsel %vm2649_vm13, %v2878_v32, %v2783_v48  ;;  %v2700_v48 = vadd.f32 %v2699_v34, %v4832_v55 }
 0xeab   :  { %v2877_v28 = vsel %vm2642_vm3, %v2874_v38, %v2769_v9  ;;  %vm4907_vm3 = vcmask 785408  }
 0xeac   :  { %v2897_v3 = vsel %vm4907_vm3, %v2894_v7, %v2830_v17  ;;  %vm4912_vm1 = vmmov %vm4907_vm3 }
 0xead   :  { %vm4915_vm3 = vmmov %vm4908_vm6 }
 0xeb1   :  { %v2792_v56 = vpop.permute.xlu0 %2791 }
 0xeb2   :  { %v2778_v2 = vpop.permute.xlu1 %2777  ;;  %v2839_v15 = vpop.permute.xlu2 %2838  ;;  %v2884_v52 = vsel %vm2653_vm14, %v2881_v60, %v2792_v56 }
 0xeb3   :  { %v2900_v10 = vsel %vm4909_vm7, %v2897_v3, %v2839_v15  ;;  %v2880_v18 = vsel %vm1211_vm10, %v2877_v28, %v2778_v2  ;;  %vm4917_vm7 = vmmov %vm4912_vm1 }
 0xeb9   :  { %v2801_v4 = vpop.permute.xlu0 %2800 }
 0xeba   :  { %v2787_v41 = vpop.permute.xlu1 %2786  ;;  %v2848_v44 = vpop.permute.xlu2 %2847  ;;  %v2887_v27 = vsel %vm4906_vm15, %v2884_v52, %v2801_v4  ;;  %v2701_v4 = vrot.slane %v2700_v48, 2 }
 0xebb   :  { %v2903_v46 = vsel %vm4911_vm11, %v2900_v10, %v2848_v44  ;;  %v2883_v23 = vsel %vm2649_vm13, %v2880_v18, %v2787_v41  ;;  %vm4919_vm11 = vmmov %vm4914_vm8 }
 0xec1   :  { %v2810_v26 = vpop.permute.xlu0 %2809 }
 0xec2   :  { %v2796_v47 = vpop.permute.xlu1 %2795  ;;  %v2890_v51 = vsel %vm4908_vm6, %v2887_v27, %v2810_v26  ;;  %v2857_v40 = vpop.permute.xlu2 %2856  ;;  %vm4916_vm6 = vmmov %vm4910_vm0  ;;  %v2702_v26 = vadd.f32 %v2701_v4, %v2700_v48 }
 0xec3   :  { %v2906_v42 = vsel %vm2681_vm4, %v2903_v46, %v2857_v40  ;;  %v2886_v62 = vsel %vm2653_vm14, %v2883_v23, %v2796_v47 }
 0xec4   :  { %v2912_v54 = vrot.slane %v2906_v42, 2  ;;  %v2703_v17 = vrot.slane %v2702_v26, 1 }
 0xec6   :  { %v2704_v21 = vadd.f32 %v2703_v17, %v2702_v26 }
 0xec9   :  { %v2819_v61 = vpop.permute.xlu0 %2818 }
 0xeca   :  { %v2805_v53 = vpop.permute.xlu1 %2804  ;;  %v2893_v16 = vsel %vm4910_vm0, %v2890_v51, %v2819_v61  ;;  %vm4918_vm0 = vmmov %vm4913_vm2 }
 0xecb   :  { %v2889_v57 = vsel %vm4906_vm15, %v2886_v62, %v2805_v53 }
 0xed1   :  { %v2828_v58 = vpop.permute.xlu0 %2827 }
 0xed2   :  { %v2814_v29 = vpop.permute.xlu1 %2813  ;;  %v2896_v25 = vsel %vm4912_vm1, %v2893_v16, %v2828_v58 }
 0xed3   :  { %v2892_v20 = vsel %vm4915_vm3, %v2889_v57, %v2814_v29 }
 0xed9   :  { %v2837_v35 = vpop.permute.xlu0 %2836 }
 0xeda   :  { %v2823_v59 = vpop.permute.xlu1 %2822  ;;  %v2899_v6 = vsel %vm4913_vm2, %v2896_v25, %v2837_v35 }
 0xedb   :  { %v2895_v36 = vsel %vm4916_vm6, %v2892_v20, %v2823_v59 }
 0xee1   :  { %v2846_v43 = vpop.permute.xlu0 %2845 }
 0xee2   :  { %v2832_v1 = vpop.permute.xlu1 %2831  ;;  %v2902_v8 = vsel %vm4914_vm8, %v2899_v6, %v2846_v43 }
 0xee3   :  { %v2898_v14 = vsel %vm4917_vm7, %v2895_v36, %v2832_v1 }
 0xee9   :  { %v2855_v39 = vpop.permute.xlu0 %2854 }
 0xeea   :  { %v2905_v24 = vsel %vm2681_vm4, %v2902_v8, %v2855_v39  ;;  %v2841_v50 = vpop.permute.xlu1 %2840 }
 0xeeb   :  { %v2911_v22 = vrot.slane %v2905_v24, 2  ;;  %v2901_v30 = vsel %vm4918_vm0, %v2898_v14, %v2841_v50 }
 0xeed   :  { %v2913_v49 = vsel %vm2688_vm9, %v2911_v22, %v2912_v54 }
 0xeee   :  { %v2918_v56 = vsel %vm4818_vm5, %v2913_v49, 0.0 }
 0xef2   :  { %v2850_v37 = vpop.permute.xlu1 %2849 }
 0xef3   :  { %v2904_v63 = vsel %vm4919_vm11, %v2901_v30, %v2850_v37 }
 0xefa   :  { %v2859_v38 = vpop.permute.xlu1 %2858 }
 0xefb   :  { %v2907_v45 = vsel %vm2681_vm4, %v2904_v63, %v2859_v38 }
 0xefc   :  { %v2914_v9 = vrot.slane %v2907_v45, 2 }
 0xefe   :  { %v2915_v28 = vsel %vm2688_vm9, %v2912_v54, %v2914_v9  ;;  %vm4920_vm9 = vcmask 1040384  }
 0xeff   :  { %v2919_v2 = vsel %vm4823_vm12, %v2915_v28, 0.0 }
 0xf00   :  { %v2920_v5 = vadd.f32 %v2919_v2, %v2918_v56 }
 0xf02   :  { %v2921_v41 = vrot.slane %v2920_v5, 4 }
 0xf04   :  { %v2922_v11 = vadd.f32 %v2921_v41, %v2920_v5 }
 0xf06   :  { %v2923_v47 = vrot.slane %v2922_v11, 2 }
 0xf08   :  { %v2924_v61 = vadd.f32 %v2923_v47, %v2922_v11 }
 0xf0a   :  { %v2925_v53 = vrot.slane %v2924_v61, 1 }
 0xf0c   :  { %v2926_v55 = vadd.f32 %v2925_v53, %v2924_v61 }
 0xf0e   :  { %v2927_v12 = vsel %vm4920_vm9, %v2704_v21, %v2926_v55 }
 0xf0f   :  { %2928 = vst [vmem:[#allocation2] sm:$0x3] %v2927_v12 }
 0xf10   :  { %2939 = dma.vmem_to_hbm [thread:$0]  %s2935_s12, 32, %s2937_s21, [#allocation3]  }
 0xf11   :  { %3223 = dma.done.wait [#allocation3], 32  }
 0xf12   :  { %3224 = vsyncadd [#allocation3], 4294967264 }
 0xf13   :  { %2944 = vsyncpa [#allocation3], 1 }

</bundles_post_ra>
